<compile_context>
chip_gen: v5e
topology: v5e:2x2
jax: 0.10.0
libtpu: 0.0.40
codegen_flags: <defaults>
</compile_context>

<pallas_src>
import functools

import jax
import jax.numpy as jnp
from jax.experimental import pallas as pl
from jax.experimental.pallas import tpu as pltpu


# ---------------------------------------------------------------------------
# Pallas kernel: attention over a slab of R regions, each (N, C)
# ---------------------------------------------------------------------------
def region_attn_kernel(gamma_ref,      # SMEM (1,)
                       x_ref,          # VMEM (R, N, C)
                       wqkv_ref,       # VMEM (C, O)   O = C + 2*C8, order [Wv|Wq|Wk]
                       bqkv_ref,       # VMEM (1, O)
                       o_ref,          # VMEM (R, N, C)
                       *, c8, mxu_dtype):
    x = x_ref[...]                                           # (R, N, C) f32
    R, N, C = x.shape

    # ---- fused V|Q|K projection: one MXU pass for all R regions ------------
    # (leading-dim merge only -> layout-safe reshape)
    x2 = x.reshape(R * N, C)
    qkv = jnp.dot(x2.astype(mxu_dtype), wqkv_ref[...].astype(mxu_dtype),
                  preferred_element_type=jnp.float32) + bqkv_ref[...]   # (R*N, O)
    qkv = qkv.reshape(R, N, -1)
    # V first so the big slice starts at lane 0 (128-aligned at production C=128).
    v = qkv[:, :, :C]                                        # (R, N, C)
    q = qkv[:, :, C:C + c8]                                  # (R, N, C8)
    k = qkv[:, :, C + c8:]                                   # (R, N, C8)

    # ---- batched attention over the R regions ------------------------------
    # energy[r, i, j] = sum_c Q[r, i, c] * K[r, j, c]   (== bmm(Q^T, K) in torch)
    energy = jnp.einsum('ric,rjc->rij', q.astype(mxu_dtype), k.astype(mxu_dtype),
                        preferred_element_type=jnp.float32)   # (R, N, N)

    # Numerically stable softmax; divide -> reciprocal*mul on the EUP slot.
    # NOTE(v6e): at production N the single EUP (exp) can become the binding
    # slot once the matmuls run bf16 — check a bundle dump before more MXU work.
    energy = energy - jnp.max(energy, axis=-1, keepdims=True)
    p = jnp.exp(energy)
    attn = p * pl.reciprocal(jnp.sum(p, axis=-1, keepdims=True), approx=True)

    # out[r, i, c] = sum_j attn[r, i, j] * V[r, j, c]   (== bmm(V, attn^T))
    out = jnp.einsum('rij,rjc->ric', attn.astype(mxu_dtype), v.astype(mxu_dtype),
                     preferred_element_type=jnp.float32)      # (R, N, C)

    # f32 epilogue (safe on v5e's non-bf16 VPU)
    o_ref[...] = (gamma_ref[0] * out + x).astype(o_ref.dtype)


# ---------------------------------------------------------------------------
# Region <-> tile reshaping (plain JAX glue, layout plumbing only)
# ---------------------------------------------------------------------------
# TODO(synk): fetch regions directly from the NCDHW layout (BlockSpec over the
# free 7-D view (B,C,rf,RD,rf,RH,W)) once the in-kernel (C,RD,RH,RW)->(C,N)
# collapse lowers cleanly; until then allow_input_fusion is the stopgap.
def _to_regions(x, rf):
    """(B, C, D, H, W) -> (B*rf^3, N, C) with N = RD*RH*RW (row-major D,H,W)."""
    B, C, D, H, W = x.shape
    RD, RH, RW = D // rf, H // rf, W // rf
    x = x.reshape(B, C, rf, RD, rf, RH, rf, RW)
    x = x.transpose(0, 2, 4, 6, 3, 5, 7, 1)          # (B, rf, rf, rf, RD, RH, RW, C)
    return x.reshape(B * rf ** 3, RD * RH * RW, C)


def _from_regions(y, B, C, D, H, W, rf):
    """Inverse of _to_regions: (B*rf^3, N, C) -> (B, C, D, H, W)."""
    RD, RH, RW = D // rf, H // rf, W // rf
    y = y.reshape(B, rf, rf, rf, RD, RH, RW, C)
    y = y.transpose(0, 7, 1, 4, 2, 5, 3, 6)          # (B, C, rf, RD, rf, RH, rf, RW)
    return y.reshape(B, C, D, H, W)


# ---------------------------------------------------------------------------
# VMEM budget / grid planning (review items: get_tpu_info budget, even S,
# padded BR, corrected per-region model, loud failure on oversized regions)
# ---------------------------------------------------------------------------
def _vmem_budget_bytes():
    cap = 64 * 1024 * 1024                    # conservative fallback (v7x per-TC)
    try:
        info = pltpu.get_tpu_info()
        cap = int(getattr(info, "vmem_capacity_bytes", cap)) or cap
    except Exception:
        pass
    # headroom for compiler-internal scratch; cap well below physical.
    return min(int(0.6 * cap), 96 * 1024 * 1024)


def _region_vmem_bytes(N, C, O, c8, mxu_itemsize):
    """Conservative per-region VMEM footprint in bytes for one grid step."""
    f32 = 4
    io = 4 * N * C * f32                                  # x + out, double-buffered
    proj = N * O * f32 + N * (C + O) * mxu_itemsize       # qkv slab + x2/qkv casts
    softmax = 3 * N * N * f32 + 2 * N * N * mxu_itemsize  # energy, p, attn + casts
    qkv_mx = N * (C + 2 * c8) * mxu_itemsize              # q/k/v mxu-dtype copies
    acc = N * C * f32                                     # attn @ v accumulator
    return io + proj + softmax + qkv_mx + acc


def _plan_grid(BR, N, C, O, c8, mxu_itemsize, budget_bytes):
    """Return (S grid steps, R regions/step, padded region count)."""
    per_region = _region_vmem_bytes(N, C, O, c8, mxu_itemsize)
    resident = C * O * (4 + mxu_itemsize) + O * 4 + (64 << 10)   # weights + slack
    avail = budget_bytes - resident
    if per_region > avail:
        # TODO(synk): key-axis-tiled (online-softmax) path so the (N,N) temps
        # never materialize; needed for very large regions on v7x (64 MiB VMEM).
        raise ValueError(
            f"one region needs ~{per_region / 2**20:.1f} MiB of VMEM "
            f"(> budget {avail / 2**20:.1f} MiB); shrink the region or add a "
            "key-tiled softmax path")
    R = int(max(1, min(BR, avail // per_region)))
    S = pl.cdiv(BR, R)
    if S == 1 and BR > 1:
        S = 2                    # >=2 steps keeps both v7x TensorCores busy
    if S > 1 and S % 2:
        S += 1                   # even step count -> balanced megacore split
    R = pl.cdiv(BR, S)
    return int(S), int(R), int(S * R)


# ---------------------------------------------------------------------------
# Wrapper
# ---------------------------------------------------------------------------
def region_localized_attention(x, params, region_factor=1, mxu_dtype=jnp.float32):
    """x: (B, C, D, H, W) float32. params: dict of weights (see init_params).

    mxu_dtype: dtype fed to the MXU matmuls (accumulation always f32).  bf16 is
    safe on ALL TPU generations (v5e/v6e/v7x MXUs are bf16-native; the epilogue
    stays f32) and is recommended at production sizes; f32 default only keeps
    the small-shape numerical test tight.
    """
    B, C, D, H, W = x.shape
    rf = region_factor
    xr = _to_regions(x, rf)                          # (BR, N, C)
    BR, N, _ = xr.shape
    C8 = params["wq"].shape[1]

    # Fuse the three 1x1x1 projections into one weight / bias, V first so the
    # large V slice is lane-0 aligned (128-aligned at production C=128).
    w_qkv = jnp.concatenate([params["wv"], params["wq"], params["wk"]], axis=1)  # (C, O)
    b_qkv = jnp.concatenate([params["bv"], params["bq"], params["bk"]], axis=1)  # (1, O)
    O = w_qkv.shape[1]

    budget = _vmem_budget_bytes()
    S, R, BR_pad = _plan_grid(BR, N, C, O, C8,
                              jnp.dtype(mxu_dtype).itemsize, budget)
    if BR_pad != BR:                                 # pad with zero regions
        xr = jnp.pad(xr, ((0, BR_pad - BR), (0, 0), (0, 0)))
    xs = xr.reshape(S, R, N, C)

    flops = 2 * BR_pad * (N * C * O + N * N * C8 + N * N * C)
    transcendentals = BR_pad * (N * N + N)           # exp + reciprocal
    bytes_accessed = 4 * (2 * BR_pad * N * C + C * O + O + 1)

    kernel = functools.partial(region_attn_kernel, c8=C8, mxu_dtype=mxu_dtype)

    out_s = pl.pallas_call(
        kernel,
        out_shape=jax.ShapeDtypeStruct((S, R, N, C), x.dtype),
        grid=(S,),
        in_specs=[
            pl.BlockSpec(memory_space=pltpu.MemorySpace.SMEM),        # gamma
            pl.BlockSpec((None, R, N, C), lambda i: (i, 0, 0, 0)),    # region slab
            pl.BlockSpec((C, O), lambda i: (0, 0)),                   # fused W_vqk
            pl.BlockSpec((1, O), lambda i: (0, 0)),                   # fused b_vqk
        ],
        # At production C>=128 the trailing dim is lane-dense; at toy C=16 the
        # stores are masked (property of the test shape only).
        out_specs=pl.BlockSpec((None, R, N, C), lambda i: (i, 0, 0, 0)),
        compiler_params=pltpu.CompilerParams(
            dimension_semantics=("parallel",),
            vmem_limit_bytes=int(budget),
            # Let XLA fuse the region-gather transpose into the operand fetch.
            allow_input_fusion=[False, True, False, False]),
        cost_estimate=pl.CostEstimate(
            flops=flops,
            transcendentals=transcendentals,
            bytes_accessed=bytes_accessed),
    )(params["gamma"], xs, w_qkv, b_qkv)

    out_r = out_s.reshape(BR_pad, N, C)[:BR]
    return _from_regions(out_r, B, C, D, H, W, rf)


# ---------------------------------------------------------------------------
# Pure-JAX reference (mirrors the PyTorch forward, uses UNfused weights)
# ---------------------------------------------------------------------------
def reference(x, params, region_factor=1):
    xr = _to_regions(x, region_factor)
    q = xr @ params["wq"] + params["bq"]             # (BR, N, C8)
    k = xr @ params["wk"] + params["bk"]             # (BR, N, C8)
    v = xr @ params["wv"] + params["bv"]             # (BR, N, C)
    e = jnp.einsum("bnc,bmc->bnm", q, k)
    a = jax.nn.softmax(e, axis=-1)
    o = jnp.einsum("bnm,bmc->bnc", a, v)
    out_r = params["gamma"][0] * o + xr
    B, C, D, H, W = x.shape
    return _from_regions(out_r, B, C, D, H, W, region_factor)


# ---------------------------------------------------------------------------
# Deterministic parameter init (shapes per the module's __init__)
# ---------------------------------------------------------------------------
def init_params(key, in_channels):
    C = in_channels
    C8 = C // 8
    ks = jax.random.split(key, 7)
    scale = 1.0 / jnp.sqrt(C)
    # Conv3d(kernel_size=1) weights are (out, in, 1, 1, 1); stored here
    # transposed as (in, out) so the kernel computes x @ W.
    return {
        "wq": (jax.random.normal(ks[0], (C, C8)) * scale).astype(jnp.float32),
        "bq": (jax.random.normal(ks[1], (1, C8)) * 0.1).astype(jnp.float32),
        "wk": (jax.random.normal(ks[2], (C, C8)) * scale).astype(jnp.float32),
        "bk": (jax.random.normal(ks[3], (1, C8)) * 0.1).astype(jnp.float32),
        "wv": (jax.random.normal(ks[4], (C, C)) * scale).astype(jnp.float32),
        "bv": (jax.random.normal(ks[5], (1, C)) * 0.1).astype(jnp.float32),
        # nn.Parameter(torch.zeros(1)) -> shape (1,); nonzero deterministic
        # value so the attention path is actually exercised.
        "gamma": jnp.full((1,), 0.5, dtype=jnp.float32),
    }


if __name__ == "__main__":
    key = jax.random.PRNGKey(0)
    k_x, k_p = jax.random.split(key)

    B, C, D, H, W = 2, 16, 8, 8, 8
    region_factor = 2

    x = jax.random.normal(k_x, (B, C, D, H, W), dtype=jnp.float32)
    params = init_params(k_p, C)

    out = region_localized_attention(x, params, region_factor=region_factor)
    out = jax.block_until_ready(out)

    ref = jax.block_until_ready(reference(x, params, region_factor=region_factor))
    assert out.shape == x.shape
    # tolerance accounts for the approximate (EUP) reciprocal in the softmax
    assert jnp.allclose(out, ref, atol=2e-3, rtol=2e-3), "mismatch vs reference"

    print("KERNEL_OK")
</pallas_src>

<mosaic_0001>
module attributes {stable_mosaic.version = 11 : i64} {
  func.func @region_attn_kernel(%arg0: i32, %arg1: memref<1xf32, #tpu.memory_space<smem>>, %arg2: memref<1x8x64x16xf32, #tpu.memory_space<vmem>>, %arg3: memref<16x20xf32, #tpu.memory_space<vmem>>, %arg4: memref<1x20xf32, #tpu.memory_space<vmem>>, %arg5: memref<1x8x64x16xf32, #tpu.memory_space<vmem>>) attributes {dimension_semantics = [#tpu.dimension_semantics<parallel>], iteration_bounds = array<i64: 2>, scalar_prefetch = 0 : i64, scratch_operands = 0 : i64, tpu.core_type = #tpu.core_type<tc>, window_params = [{transform_indices = @transform_0, window_bounds = array<i64: 1>}, {transform_indices = @transform_1, window_bounds = array<i64: 1, 8, 64, 16>}, {pipeline_mode = #tpu.pipeline_mode<synchronous>, transform_indices = @transform_2, window_bounds = array<i64: 16, 20>}, {pipeline_mode = #tpu.pipeline_mode<synchronous>, transform_indices = @transform_3, window_bounds = array<i64: 1, 20>}, {transform_indices = @transform_4, window_bounds = array<i64: 1, 8, 64, 16>}]} {
    %c0 = arith.constant 0 : index
    %c0_0 = arith.constant 0 : index
    %c0_1 = arith.constant 0 : index
    %c0_2 = arith.constant 0 : index
    %0 = vector.load %arg2[%c0, %c0_0, %c0_1, %c0_2] : memref<1x8x64x16xf32, #tpu.memory_space<vmem>>, vector<1x8x64x16xf32>
    %1 = vector.shape_cast %0 : vector<1x8x64x16xf32> to vector<8x64x16xf32>
    %2 = vector.shape_cast %1 : vector<8x64x16xf32> to vector<512x16xf32>
    %c0_3 = arith.constant 0 : index
    %c0_4 = arith.constant 0 : index
    %3 = vector.load %arg3[%c0_3, %c0_4] : memref<16x20xf32, #tpu.memory_space<vmem>>, vector<16x20xf32>
    %cst = arith.constant dense<0.000000e+00> : vector<512x20xf32>
    %4 = tpu.matmul %2, %3, %cst {dimension_numbers = #tpu.dot_dimension_numbers<[1], [0], [0], [1], [0, 0, 1, 1], [], []>} : vector<512x16xf32>, vector<16x20xf32>, vector<512x20xf32> -> vector<512x20xf32>
    %c0_5 = arith.constant 0 : index
    %c0_6 = arith.constant 0 : index
    %5 = vector.load %arg4[%c0_5, %c0_6] : memref<1x20xf32, #tpu.memory_space<vmem>>, vector<1x20xf32>
    %6 = vector.broadcast %5 : vector<1x20xf32> to vector<512x20xf32>
    %7 = arith.addf %4, %6 : vector<512x20xf32>
    %8 = vector.shape_cast %7 : vector<512x20xf32> to vector<8x64x20xf32>
    %9 = vector.extract_strided_slice %8 {offsets = [0, 0, 0], sizes = [8, 64, 16], strides = [1, 1, 1]} : vector<8x64x20xf32> to vector<8x64x16xf32>
    %10 = vector.extract_strided_slice %8 {offsets = [0, 0, 16], sizes = [8, 64, 2], strides = [1, 1, 1]} : vector<8x64x20xf32> to vector<8x64x2xf32>
    %11 = vector.extract_strided_slice %8 {offsets = [0, 0, 18], sizes = [8, 64, 2], strides = [1, 1, 1]} : vector<8x64x20xf32> to vector<8x64x2xf32>
    "tpu.trace_start"() <{level = 10 : i32, message = "ric,rjc->rij"}> : () -> ()
    %cst_7 = arith.constant dense<0.000000e+00> : vector<8x64x64xf32>
    %12 = tpu.matmul %10, %11, %cst_7 {dimension_numbers = #tpu.dot_dimension_numbers<[2], [2], [1], [1], [0, 0, 0, 1, 1, 1], [0], [0]>} : vector<8x64x2xf32>, vector<8x64x2xf32>, vector<8x64x64xf32> -> vector<8x64x64xf32>
    "tpu.trace_stop"() : () -> ()
    %cst_8 = arith.constant dense<0xFF800000> : vector<8x64xf32>
    %13 = vector.multi_reduction <maximumf>, %12, %cst_8 [2] : vector<8x64x64xf32> to vector<8x64xf32>
    %14 = vector.shape_cast %13 : vector<8x64xf32> to vector<8x64x1xf32>
    %15 = vector.broadcast %14 : vector<8x64x1xf32> to vector<8x64x64xf32>
    %16 = arith.subf %12, %15 : vector<8x64x64xf32>
    %17 = math.exp %16 : vector<8x64x64xf32>
    %cst_9 = arith.constant dense<0.000000e+00> : vector<8x64xf32>
    %18 = vector.multi_reduction <add>, %17, %cst_9 [2] : vector<8x64x64xf32> to vector<8x64xf32>
    %19 = vector.shape_cast %18 : vector<8x64xf32> to vector<8x64x1xf32>
    %20 = tpu.reciprocal %19 {approx = true} : vector<8x64x1xf32> -> vector<8x64x1xf32>
    %21 = vector.broadcast %20 : vector<8x64x1xf32> to vector<8x64x64xf32>
    %22 = arith.mulf %17, %21 : vector<8x64x64xf32>
    "tpu.trace_start"() <{level = 10 : i32, message = "rij,rjc->ric"}> : () -> ()
    %cst_10 = arith.constant dense<0.000000e+00> : vector<8x64x16xf32>
    %23 = tpu.matmul %22, %9, %cst_10 {dimension_numbers = #tpu.dot_dimension_numbers<[2], [1], [1], [2], [0, 0, 0, 1, 1, 2], [0], [0]>} : vector<8x64x64xf32>, vector<8x64x16xf32>, vector<8x64x16xf32> -> vector<8x64x16xf32>
    "tpu.trace_stop"() : () -> ()
    %c0_11 = arith.constant 0 : index
    %24 = memref.load %arg1[%c0_11] : memref<1xf32, #tpu.memory_space<smem>>
    %25 = vector.broadcast %24 : f32 to vector<8x64x16xf32>
    %26 = arith.mulf %25, %23 : vector<8x64x16xf32>
    %27 = arith.addf %26, %1 : vector<8x64x16xf32>
    %c0_12 = arith.constant 0 : index
    %c0_13 = arith.constant 0 : index
    %c0_14 = arith.constant 0 : index
    %c0_15 = arith.constant 0 : index
    %28 = vector.load %arg5[%c0_12, %c0_13, %c0_14, %c0_15] : memref<1x8x64x16xf32, #tpu.memory_space<vmem>>, vector<1x8x64x16xf32>
    %29 = vector.shape_cast %28 : vector<1x8x64x16xf32> to vector<8x64x16xf32>
    %30 = vector.shape_cast %27 : vector<8x64x16xf32> to vector<1x8x64x16xf32>
    tpu.vector_store %arg5[%c0_12, %c0_13, %c0_14, %c0_15], %30 {strides = array<i32>} : memref<1x8x64x16xf32, #tpu.memory_space<vmem>>, vector<1x8x64x16xf32>,
    return
  }
  func.func @transform_0(%arg0: i32) -> i32 {
    %c0_i32 = arith.constant 0 : i32
    %c0_i32_0 = arith.constant 0 : i32
    return %c0_i32 : i32
  }
  func.func @transform_1(%arg0: i32) -> (i32, i32, i32, i32) {
    %c0_i32 = arith.constant 0 : i32
    %c0_i32_0 = arith.constant 0 : i32
    %c0_i32_1 = arith.constant 0 : i32
    %c0_i32_2 = arith.constant 0 : i32
    return %arg0, %c0_i32, %c0_i32_0, %c0_i32_1 : i32, i32, i32, i32
  }
  func.func @transform_2(%arg0: i32) -> (i32, i32) {
    %c0_i32 = arith.constant 0 : i32
    %c0_i32_0 = arith.constant 0 : i32
    %c0_i32_1 = arith.constant 0 : i32
    return %c0_i32, %c0_i32_0 : i32, i32
  }
  func.func @transform_3(%arg0: i32) -> (i32, i32) {
    %c0_i32 = arith.constant 0 : i32
    %c0_i32_0 = arith.constant 0 : i32
    %c0_i32_1 = arith.constant 0 : i32
    return %c0_i32, %c0_i32_0 : i32, i32
  }
  func.func @transform_4(%arg0: i32) -> (i32, i32, i32, i32) {
    %c0_i32 = arith.constant 0 : i32
    %c0_i32_0 = arith.constant 0 : i32
    %c0_i32_1 = arith.constant 0 : i32
    %c0_i32_2 = arith.constant 0 : i32
    return %arg0, %c0_i32, %c0_i32_0, %c0_i32_1 : i32, i32, i32, i32
  }
}

</mosaic_0001>

<bundles_post_ra>
// kernel: tpu_custom_call.1
= control target key start
LH: loop header
LB: loop body
LE: loop exit
PB: predicated region body
PF: predicated region fallthrough
CT: control target
= control target key end

     0   :  { %s3701_s17 = smov 0   ;;  %s5775_s0 = inlined_call_operand.<no memory space> [shape: f32[1], index: 0, kind: input, shape index: {}]   ;;  %s5776_s1 = inlined_call_operand.vmem [shape: f32[2,8,64,16], index: 1, kind: input, shape index: {}]   ;;  %s5777_s2 = inlined_call_operand.vmem [shape: f32[16,20], index: 2, kind: input, shape index: {}]   ;;  %s5778_s3 = inlined_call_operand.vmem [shape: f32[1,20], index: 3, kind: input, shape index: {}]   ;;  %s5779_s4 = inlined_call_operand.vmem [shape: f32[2,8,64,16], index: 4, kind: output, shape index: {}]  }
   0x1   :  { %9 = sst [smem:[#allocation2]] %s5775_s0 }
   0x2 LB: > { %s3050_s18 = sadd.s32 4294967295, %s3669_s17   ;;  %p3054_p0 = scmp.ge.s32.totalorder %s3669_s17, 1  ;;  %s3669_s17 = sphi %s3701_s17, %s15_s17  }
   0x3   : > { %p163_p1 = scmp.lt.s32.totalorder %s3669_s17, 3 }
   0x5   : > { %p164_p2 = pnand %p3054_p0, %p163_p1 }
   0x7   : > { %167 = sbr.rel (%p164_p2) target bundleno = 1428 (0x594), region = 36 }
   0xc   : > { %v264_v0 = vld [vmem:[%s5777_s2 + $0x8] sm:$0xff]  ;;  %v263_v1 = vld [vmem:[%s5777_s2] sm:$0xff]  ;;  %p189_p3 = scmp.lt.s32.totalorder %s3050_s18, 1  ;;  %vm269_vm0 = vcmask 130048   ;;  %s3671_s28 = smov 110   ;;  %vm711_vm1 = vcmask 15360  }
   0xd   : > { %476 = vmatpush.msra.mxu0 %v264_v0  ;;  %3319 = vmatpush.msra.mxu2 %v264_v0  ;;  %v3788_v32 = vld [vmem:[%s5778_s3] ss:$0 sm:$0xff]  ;;  %s3672_s29 = smov 112   ;;  %vm1576_vm2 = vcmask 523264   ;;  %s2801_s6 = sld [smem:[#allocation2]] }
   0xe   : > { %3320 = vmatpush.msra.mxu3 %v264_v0  ;;  %s5916_s18 = smov (!%p189_p3, %s3050_s18), 1 }
   0xf   : > { %477 = vmatpush.msra.mxu0 %v263_v1  ;;  %3321 = vmatpush.msra.mxu2 %v263_v1  ;;  %s3317_s22 = sshll.u32 %s5916_s18, 9 }
  0x10   : > { %3322 = vmatpush.msra.mxu3 %v263_v1  ;;  %s3723_s25 = scalar_lea.vmem %s5776_s1, %s3317_s22  ;;  %s5234_s9 = scalar_lea.vmem %s5779_s4, %s3317_s22 }
  0x11   : > { %v199_v2 = vld [vmem:[%s3723_s25] sm:$0xff]  ;;  %v249_v3 = vld [vmem:[%s3723_s25 + $0x190] sm:$0xff]  ;;  %v258_v4 = vld [vmem:[%s3723_s25 + $0x1d8] sm:$0xff] }
  0x12   : > { %3059 = vmatmul.msk.f32.vlgmr.msra.gmra.mxu0 %vm269_vm0, %v199_v2  ;;  %3109 = vmatmul.msk.f32.vlgmr.msra.gmra.mxu2 %vm269_vm0, %v249_v3  ;;  %v200_v5 = vld [vmem:[%s3723_s25 + $0x8] sm:$0xff]  ;;  %v250_v6 = vld [vmem:[%s3723_s25 + $0x198] sm:$0xff]  ;;  %v259_v7 = vld [vmem:[%s3723_s25 + $0x1e0] sm:$0xff] }
  0x13   : > { %3118 = vmatmul.msk.f32.vlgmr.msra.gmra.mxu3 %vm269_vm0, %v258_v4  ;;  %v201_v8 = vld [vmem:[%s3723_s25 + $0x10] sm:$0xff]  ;;  %v251_v9 = vld [vmem:[%s3723_s25 + $0x1a0] sm:$0xff]  ;;  %v260_v10 = vld [vmem:[%s3723_s25 + $0x1e8] sm:$0xff] }
  0x14   : > { %v202_v11 = vld [vmem:[%s3723_s25 + $0x18] sm:$0xff]  ;;  %v252_v12 = vld [vmem:[%s3723_s25 + $0x1a8] sm:$0xff]  ;;  %v261_v13 = vld [vmem:[%s3723_s25 + $0x1f0] sm:$0xff] }
  0x15   : > { %v203_v14 = vld [vmem:[%s3723_s25 + $0x20] sm:$0xff]  ;;  %v262_v15 = vld [vmem:[%s3723_s25 + $0x1f8] sm:$0xff]  ;;  %v253_v16 = vld [vmem:[%s3723_s25 + $0x1b0] sm:$0xff] }
  0x16   : > { %v204_v17 = vld [vmem:[%s3723_s25 + $0x28] sm:$0xff]  ;;  %v205_v18 = vld [vmem:[%s3723_s25 + $0x30] sm:$0xff]  ;;  %v254_v19 = vld [vmem:[%s3723_s25 + $0x1b8] sm:$0xff] }
  0x17   : > { %v206_v20 = vld [vmem:[%s3723_s25 + $0x38] sm:$0xff]  ;;  %v255_v21 = vld [vmem:[%s3723_s25 + $0x1c0] sm:$0xff]  ;;  %v256_v23 = vld [vmem:[%s3723_s25 + $0x1c8] sm:$0xff] }
  0x18   : > { %v207_v22 = vld [vmem:[%s3723_s25 + $0x40] sm:$0xff]  ;;  %v208_v24 = vld [vmem:[%s3723_s25 + $0x48] sm:$0xff]  ;;  %v257_v25 = vld [vmem:[%s3723_s25 + $0x1d0] sm:$0xff] }
  0x19   : > { %v209_v26 = vld [vmem:[%s3723_s25 + $0x50] sm:$0xff]  ;;  %v210_v27 = vld [vmem:[%s3723_s25 + $0x58] sm:$0xff]  ;;  %v211_v28 = vld [vmem:[%s3723_s25 + $0x60] sm:$0xff] }
  0x1a   : > { %3060 = vmatmul.msk.f32.gmra.mxu0 %vm269_vm0, %v200_v5  ;;  %3110 = vmatmul.msk.f32.gmra.mxu2 %vm269_vm0, %v250_v6  ;;  %v212_v29 = vld [vmem:[%s3723_s25 + $0x68] sm:$0xff]  ;;  %v213_v30 = vld [vmem:[%s3723_s25 + $0x70] sm:$0xff]  ;;  %v214_v31 = vld [vmem:[%s3723_s25 + $0x78] sm:$0xff] }
  0x1b   : > { %3119 = vmatmul.msk.f32.gmra.mxu3 %vm269_vm0, %v259_v7  ;;  %v215_v34 = vld [vmem:[%s3723_s25 + $0x80] sm:$0xff]  ;;  %v216_v41 = vld [vmem:[%s3723_s25 + $0x88] sm:$0xff]  ;;  %v217_v46 = vld [vmem:[%s3723_s25 + $0x90] sm:$0xff] }
  0x1c   : > { %v218_v50 = vld [vmem:[%s3723_s25 + $0x98] sm:$0xff]  ;;  %v219_v55 = vld [vmem:[%s3723_s25 + $0xa0] sm:$0xff]  ;;  %v220_v59 = vld [vmem:[%s3723_s25 + $0xa8] sm:$0xff] }
  0x1d   : > { %v221_v0 = vld [vmem:[%s3723_s25 + $0xb0] sm:$0xff]  ;;  %v222_v4 = vld [vmem:[%s3723_s25 + $0xb8] sm:$0xff] }
  0x22   : > { %3061 = vmatmul.msk.f32.gmra.mxu0 %vm269_vm0, %v201_v8  ;;  %3111 = vmatmul.msk.f32.gmra.mxu2 %vm269_vm0, %v251_v9  ;;  %v223_v9 = vld [vmem:[%s3723_s25 + $0xc0] sm:$0xff] }
  0x23   : > { %3120 = vmatmul.msk.f32.gmra.mxu3 %vm269_vm0, %v260_v10 }
  0x2a   : > { %3062 = vmatmul.msk.f32.gmra.mxu0 %vm269_vm0, %v202_v11  ;;  %3112 = vmatmul.msk.f32.gmra.mxu2 %vm269_vm0, %v252_v12 }
  0x2b   : > { %3121 = vmatmul.msk.f32.gmra.mxu3 %vm269_vm0, %v261_v13  ;;  %v224_v13 = vld [vmem:[%s3723_s25 + $0xc8] sm:$0xff] }
  0x32   : > { %3063 = vmatmul.msk.f32.gmra.mxu0 %vm269_vm0, %v203_v14  ;;  %3113 = vmatmul.msk.f32.gmra.mxu2 %vm269_vm0, %v253_v16  ;;  %v225_v16 = vld [vmem:[%s3723_s25 + $0xd0] sm:$0xff] }
  0x33   : > { %3122 = vmatmul.msk.f32.gmra.mxu3 %vm269_vm0, %v262_v15 }
  0x3a   : > { %3064 = vmatmul.msk.f32.gmra.mxu0 %vm269_vm0, %v204_v17  ;;  %3114 = vmatmul.msk.f32.gmra.mxu2 %vm269_vm0, %v254_v19 }
  0x42   : > { %3065 = vmatmul.msk.f32.gmra.mxu0 %vm269_vm0, %v205_v18  ;;  %3115 = vmatmul.msk.f32.gmra.mxu2 %vm269_vm0, %v255_v21 }
  0x4a   : > { %3066 = vmatmul.msk.f32.gmra.mxu0 %vm269_vm0, %v206_v20  ;;  %3116 = vmatmul.msk.f32.gmra.mxu2 %vm269_vm0, %v256_v23  ;;  %v226_v20 = vld [vmem:[%s3723_s25 + $0xd8] sm:$0xff] }
  0x52   : > { %3067 = vmatmul.msk.f32.gmra.mxu0 %vm269_vm0, %v207_v22  ;;  %3117 = vmatmul.msk.f32.gmra.mxu2 %vm269_vm0, %v257_v25 }
  0x5a   : > { %3068 = vmatmul.msk.f32.gmra.mxu0 %vm269_vm0, %v208_v24 }
  0x62   : > { %3069 = vmatmul.msk.f32.gmra.mxu0 %vm269_vm0, %v209_v26  ;;  %v227_v26 = vld [vmem:[%s3723_s25 + $0xe0] sm:$0xff] }
  0x6a   : > { %3070 = vmatmul.msk.f32.gmra.mxu0 %vm269_vm0, %v210_v27 }
  0x72   : > { %3071 = vmatmul.msk.f32.gmra.mxu0 %vm269_vm0, %v211_v28 }
  0x7a   : > { %3072 = vmatmul.msk.f32.gmra.mxu0 %vm269_vm0, %v212_v29 }
  0x82   : > { %3073 = vmatmul.msk.f32.gmra.mxu0 %vm269_vm0, %v213_v30 }
  0x8a   : > { %3074 = vmatmul.msk.f32.gmra.mxu0 %vm269_vm0, %v214_v31 }
  0x8f   : > { %v479_v33 = vpop.f32.mrf.mxu0 }
  0x90   : > { %v3792_v35 = vadd.f32 %v3788_v32, %v479_v33  ;;  %v228_v33 = vld [vmem:[%s3723_s25 + $0xe8] sm:$0xff] }
  0x92   : > { %5821 = vst [vmem:[#allocation3_spill] sm:$0xff] %v3792_v35  ;;  %3075 = vmatmul.msk.f32.gmra.mxu0 %vm269_vm0, %v215_v34  ;;  %695 = vrot.lane.b32.xlu2 %v3792_v35, %s3671_s28 }
  0x93   : > { %679 = vrot.lane.b32.xlu0 %v3792_v35, %s3672_s29 }
  0x95   : > { %v629_v36 = vpop.f32.mrf.mxu2 }
  0x96   : > { %v3800_v37 = vadd.f32 %v3788_v32, %v629_v36  ;;  %v656_v38 = vpop.f32.mrf.mxu3 }
  0x97   : > { %v3803_v39 = vadd.f32 %v3788_v32, %v656_v38  ;;  %v482_v40 = vpop.f32.mrf.mxu0 }
  0x98   : > { %5822 = vst [vmem:[#allocation4_spill] sm:$0xff] %v3800_v37  ;;  %v3807_v42 = vadd.f32 %v3788_v32, %v482_v40 }
  0x99   : > { %5823 = vst [vmem:[#allocation5_spill] sm:$0xff] %v3803_v39  ;;  %1493 = vrot.lane.b32.xlu1 %v3803_v39, %s3671_s28 }
  0x9a   : > { %5824 = vst [vmem:[#allocation6_spill] sm:$0xff] %v3807_v42  ;;  %3076 = vmatmul.msk.f32.gmra.mxu0 %vm269_vm0, %v216_v41  ;;  %1378 = vrot.lane.b32.xlu2 %v3800_v37, %s3671_s28 }
  0x9b   : > { %681 = vrot.lane.b32.xlu0 %v3807_v42, %s3672_s29 }
  0x9d   : > { %v632_v43 = vpop.f32.mrf.mxu2 }
  0x9e   : > { %v3817_v44 = vadd.f32 %v3788_v32, %v632_v43  ;;  %v659_v47 = vpop.f32.mrf.mxu3  ;;  %v229_v43 = vld [vmem:[%s3723_s25 + $0xf0] sm:$0xff] }
  0x9f   : > { %v485_v45 = vpop.f32.mrf.mxu0  ;;  %v3828_v48 = vadd.f32 %v3788_v32, %v659_v47 }
  0xa0   : > { %5825 = vst [vmem:[#allocation7_spill] sm:$0xff] %v3817_v44  ;;  %v3839_v52 = vadd.f32 %v3788_v32, %v485_v45 }
  0xa1   : > { %1364 = vrot.lane.b32.xlu1 %v3817_v44, %s3672_s29  ;;  %5826 = vst [vmem:[#allocation8_spill] sm:$0xff] %v3828_v48 }
  0xa2   : > { %3077 = vmatmul.msk.f32.gmra.mxu0 %vm269_vm0, %v217_v46  ;;  %1362 = vrot.lane.b32.xlu2 %v3800_v37, %s3672_s29  ;;  %5827 = vst [vmem:[#allocation9_spill] sm:$0xff] %v3839_v52 }
  0xa3   : > { %697 = vrot.lane.b32.xlu0 %v3807_v42, %s3671_s28 }
  0xa5   : > { %v635_v56 = vpop.f32.mrf.mxu2 }
  0xa6   : > { %v662_v51 = vpop.f32.mrf.mxu3  ;;  %v3853_v58 = vadd.f32 %v3788_v32, %v635_v56 }
  0xa7   : > { %v488_v49 = vpop.f32.mrf.mxu0  ;;  %v3842_v54 = vadd.f32 %v3788_v32, %v662_v51 }
  0xa8   : > { %5829 = vst [vmem:[#allocation11_spill] sm:$0xff] %v3853_v58  ;;  %v3857_v60 = vadd.f32 %v3788_v32, %v488_v49 }
  0xa9   : > { %1479 = vrot.lane.b32.xlu1 %v3828_v48, %s3672_s29  ;;  %5828 = vst [vmem:[#allocation10_spill] sm:$0xff] %v3842_v54 }
  0xaa   : > { %3078 = vmatmul.msk.f32.gmra.mxu0 %vm269_vm0, %v218_v50  ;;  %1477 = vrot.lane.b32.xlu2 %v3803_v39, %s3672_s29  ;;  %5830 = vst [vmem:[#allocation12_spill] sm:$0xff] %v3857_v60  ;;  %v230_v50 = vld [vmem:[%s3723_s25 + $0xf8] sm:$0xff] }
  0xab   : > { %1380 = vrot.lane.b32.xlu0 %v3817_v44, %s3671_s28  ;;  %v239_v44 = vld [vmem:[%s3723_s25 + $0x140] sm:$0xff] }
  0xad   : > { %v638_v61 = vpop.f32.mrf.mxu2 }
  0xae   : > { %v3867_v62 = vadd.f32 %v3788_v32, %v638_v61  ;;  %v665_v1 = vpop.f32.mrf.mxu3 }
  0xaf   : > { %v491_v53 = vpop.f32.mrf.mxu0  ;;  %v3878_v3 = vadd.f32 %v3788_v32, %v665_v1 }
  0xb0   : > { %5831 = vst [vmem:[#allocation13_spill] sm:$0xff] %v3867_v62  ;;  %v3882_v5 = vadd.f32 %v3788_v32, %v491_v53 }
  0xb1   : > { %683 = vrot.lane.b32.xlu1 %v3839_v52, %s3672_s29  ;;  %5832 = vst [vmem:[#allocation14_spill] sm:$0xff] %v3878_v3 }
  0xb2   : > { %3079 = vmatmul.msk.f32.gmra.mxu0 %vm269_vm0, %v219_v55  ;;  %1495 = vrot.lane.b32.xlu2 %v3828_v48, %s3671_s28  ;;  %5833 = vst [vmem:[#allocation15_spill] sm:$0xff] %v3882_v5 }
  0xb3   : > { %1497 = vrot.lane.b32.xlu0 %v3842_v54, %s3671_s28 }
  0xb5   : > { %v641_v10 = vpop.f32.mrf.mxu2 }
  0xb6   : > { %v668_v6 = vpop.f32.mrf.mxu3  ;;  %v3903_v11 = vadd.f32 %v3788_v32, %v641_v10 }
  0xb7   : > { %v494_v57 = vpop.f32.mrf.mxu0  ;;  %v3892_v7 = vadd.f32 %v3788_v32, %v668_v6 }
  0xb8   : > { %5835 = vst [vmem:[#allocation17_spill] sm:$0xff] %v3903_v11  ;;  %v3914_v14 = vadd.f32 %v3788_v32, %v494_v57 }
  0xb9   : > { %699 = vrot.lane.b32.xlu1 %v3839_v52, %s3671_s28  ;;  %5834 = vst [vmem:[#allocation16_spill] sm:$0xff] %v3892_v7 }
  0xba   : > { %3080 = vmatmul.msk.f32.gmra.mxu0 %vm269_vm0, %v220_v59  ;;  %701 = vrot.lane.b32.xlu2 %v3857_v60, %s3671_s28  ;;  %5836 = vst [vmem:[#allocation18_spill] sm:$0xff] %v3914_v14  ;;  %v231_v59 = vld [vmem:[%s3723_s25 + $0x100] sm:$0xff] }
  0xbb   : > { %1366 = vrot.lane.b32.xlu0 %v3853_v58, %s3672_s29 }
  0xbd   : > { %v644_v17 = vpop.f32.mrf.mxu2 }
  0xbe   : > { %v3925_v18 = vadd.f32 %v3788_v32, %v644_v17 }
  0xbf   : > { %v497_v63 = vpop.f32.mrf.mxu0 }
  0xc0   : > { %5837 = vst [vmem:[#allocation19_spill] sm:$0xff] %v3925_v18  ;;  %v3929_v21 = vadd.f32 %v3788_v32, %v497_v63 }
  0xc1   : > { %1382 = vrot.lane.b32.xlu1 %v3853_v58, %s3671_s28 }
  0xc2   : > { %3081 = vmatmul.msk.f32.gmra.mxu0 %vm269_vm0, %v221_v0  ;;  %1384 = vrot.lane.b32.xlu2 %v3867_v62, %s3671_s28  ;;  %5838 = vst [vmem:[#allocation20_spill] sm:$0xff] %v3929_v21 }
  0xc3   : > { %1368 = vrot.lane.b32.xlu0 %v3867_v62, %s3672_s29 }
  0xc5   : > { %v647_v22 = vpop.f32.mrf.mxu2 }
  0xc6   : > { %v3941_v24 = vadd.f32 %v3788_v32, %v647_v22 }
  0xc7   : > { %v500_v2 = vpop.f32.mrf.mxu0 }
  0xc8   : > { %5839 = vst [vmem:[#allocation21_spill] sm:$0xff] %v3941_v24  ;;  %v3945_v27 = vadd.f32 %v3788_v32, %v500_v2 }
  0xc9   : > { %1481 = vrot.lane.b32.xlu1 %v3842_v54, %s3672_s29 }
  0xca   : > { %3082 = vmatmul.msk.f32.gmra.mxu0 %vm269_vm0, %v222_v4  ;;  %687 = vrot.lane.b32.xlu2 %v3882_v5, %s3672_s29  ;;  %5840 = vst [vmem:[#allocation22_spill] sm:$0xff] %v3945_v27  ;;  %v232_v4 = vld [vmem:[%s3723_s25 + $0x108] sm:$0xff] }
  0xcb   : > { %1483 = vrot.lane.b32.xlu0 %v3878_v3, %s3672_s29 }
  0xcd   : > { %v650_v28 = vpop.f32.mrf.mxu2 }
  0xce   : > { %v3957_v30 = vadd.f32 %v3788_v32, %v650_v28 }
  0xcf   : > { %v503_v8 = vpop.f32.mrf.mxu0 }
  0xd0   : > { %5841 = vst [vmem:[#allocation23_spill] sm:$0xff] %v3957_v30  ;;  %v3961_v34 = vadd.f32 %v3788_v32, %v503_v8 }
  0xd1   : > { %685 = vrot.lane.b32.xlu1 %v3857_v60, %s3672_s29  ;;  %v242_v60 = vld [vmem:[%s3723_s25 + $0x158] sm:$0xff] }
  0xd2   : > { %3083 = vmatmul.msk.f32.gmra.mxu0 %vm269_vm0, %v223_v9  ;;  %1501 = vrot.lane.b32.xlu2 %v3892_v7, %s3671_s28  ;;  %5842 = vst [vmem:[#allocation24_spill] sm:$0xff] %v3961_v34 }
  0xd3   : > { %703 = vrot.lane.b32.xlu0 %v3882_v5, %s3671_s28 }
  0xd5   : > { %v653_v38 = vpop.f32.mrf.mxu2 }
  0xd6   : > { %v3973_v41 = vadd.f32 %v3788_v32, %v653_v38 }
  0xd7   : > { %v506_v12 = vpop.f32.mrf.mxu0 }
  0xd8   : > { %5844 = vst [vmem:[#allocation26_spill] sm:$0xff] %v3973_v41  ;;  %v3977_v45 = vadd.f32 %v3788_v32, %v506_v12 }
  0xd9   : > { %1499 = vrot.lane.b32.xlu1 %v3878_v3, %s3671_s28  ;;  %v238_v3 = vld [vmem:[%s3723_s25 + $0x138] sm:$0xff] }
  0xda   : > { %3084 = vmatmul.msk.f32.gmra.mxu0 %vm269_vm0, %v224_v13  ;;  %1370 = vrot.lane.b32.xlu2 %v3903_v11, %s3672_s29  ;;  %5845 = vst [vmem:[#allocation27_spill] sm:$0xff] %v3977_v45 }
  0xdb   : > { %1386 = vrot.lane.b32.xlu0 %v3903_v11, %s3671_s28 }
  0xdf   : > { %v509_v15 = vpop.f32.mrf.mxu0 }
  0xe0   : > { %v3992_v51 = vadd.f32 %v3788_v32, %v509_v15  ;;  %v233_v15 = vld [vmem:[%s3723_s25 + $0x110] sm:$0xff] }
  0xe1   : > { %705 = vrot.lane.b32.xlu1 %v3914_v14, %s3671_s28 }
  0xe2   : > { %3085 = vmatmul.msk.f32.gmra.mxu0 %vm269_vm0, %v225_v16  ;;  %689 = vrot.lane.b32.xlu2 %v3914_v14, %s3672_s29  ;;  %5846 = vst [vmem:[#allocation28_spill] sm:$0xff] %v3992_v51 }
  0xe3   : > { %1485 = vrot.lane.b32.xlu0 %v3892_v7, %s3672_s29 }
  0xe7   : > { %v512_v19 = vpop.f32.mrf.mxu0 }
  0xe8   : > { %v4029_v8 = vadd.f32 %v3788_v32, %v512_v19 }
  0xe9   : > { %1388 = vrot.lane.b32.xlu1 %v3925_v18, %s3671_s28 }
  0xea   : > { %3086 = vmatmul.msk.f32.gmra.mxu0 %vm269_vm0, %v226_v20  ;;  %707 = vrot.lane.b32.xlu2 %v3929_v21, %s3671_s28  ;;  %5848 = vst [vmem:[#allocation30_spill] sm:$0xff] %v4029_v8 }
  0xeb   : > { %691 = vrot.lane.b32.xlu0 %v3929_v21, %s3672_s29 }
  0xec   : > { %v3938_v23 = vpop.permute.xlu2 %695 }
  0xef   : > { %v515_v25 = vpop.f32.mrf.mxu0 }
  0xf0   : > { %v4009_v61 = vadd.f32 %v3788_v32, %v515_v25  ;;  %v234_v25 = vld [vmem:[%s3723_s25 + $0x118] sm:$0xff] }
  0xf1   : > { %1372 = vrot.lane.b32.xlu1 %v3925_v18, %s3672_s29 }
  0xf2   : > { %3087 = vmatmul.msk.f32.gmra.mxu0 %vm269_vm0, %v227_v26  ;;  %1471 = vrot.lane.b32.xlu2 %v3941_v24, %s3672_s29 }
  0xf3   : > { %709 = vrot.lane.b32.xlu0 %v3945_v27, %s3671_s28 }
  0xf4   : > { %v3954_v29 = vpop.permute.xlu2 %1378 }
  0xf7   : > { %v518_v31 = vpop.f32.mrf.mxu0 }
  0xf8   : > { %v4026_v6 = vadd.f32 %v3788_v32, %v518_v31 }
  0xf9   : > { %1487 = vrot.lane.b32.xlu1 %v3941_v24, %s3671_s28 }
  0xfa   : > { %3088 = vmatmul.msk.f32.gmra.mxu0 %vm269_vm0, %v228_v33  ;;  %1489 = vrot.lane.b32.xlu2 %v3957_v30, %s3671_s28 }
  0xfb   : > { %809 = vrot.lane.b32.xlu0 %v3961_v34, %s3671_s28 }
  0xfc   : > { %v3970_v36 = vpop.permute.xlu2 %1362 }
  0xfd   : > { %5843 = vst [vmem:[#allocation25_spill] sm:$0xff] %v3970_v36 }
  0xff   : > { %v521_v40 = vpop.f32.mrf.mxu0 }
 0x100   : > { %v4066_v28 = vadd.f32 %v3788_v32, %v521_v40 }
 0x101   : > { %693 = vrot.lane.b32.xlu1 %v3945_v27, %s3672_s29 }
 0x102   : > { %3089 = vmatmul.msk.f32.gmra.mxu0 %vm269_vm0, %v229_v43  ;;  %795 = vrot.lane.b32.xlu2 %v3977_v45, %s3672_s29  ;;  %v235_v43 = vld [vmem:[%s3723_s25 + $0x120] sm:$0xff] }
 0x103   : > { %1491 = vrot.lane.b32.xlu0 %v3973_v41, %s3671_s28 }
 0x104   : > { %v3986_v46 = vpop.permute.xlu2 %1477 }
 0x105   : > { %v3988_v47 = vpop.permute.xlu0 %679 }
 0x107   : > { %v524_v49 = vpop.f32.mrf.mxu0 }
 0x108   : > { %v4046_v16 = vadd.f32 %v3788_v32, %v524_v49 }
 0x109   : > { %1473 = vrot.lane.b32.xlu1 %v3957_v30, %s3672_s29  ;;  %v237_v30 = vld [vmem:[%s3723_s25 + $0x130] sm:$0xff] }
 0x10a   : > { %3090 = vmatmul.msk.f32.gmra.mxu0 %vm269_vm0, %v230_v50  ;;  %813 = vrot.lane.b32.xlu2 %v3992_v51, %s3671_s28 }
 0x10b   : > { %v3999_v53 = vpop.permute.xlu1 %1493  ;;  %1475 = vrot.lane.b32.xlu0 %v3973_v41, %s3672_s29 }
 0x10c   : > { %v4003_v55 = vpop.permute.xlu2 %1495 }
 0x10d   : > { %v4005_v56 = vpop.permute.xlu0 %681 }
 0x10f   : > { %v527_v57 = vpop.f32.mrf.mxu0 }
 0x110   : > { %v4063_v26 = vadd.f32 %v3788_v32, %v527_v57 }
 0x111   : > { %793 = vrot.lane.b32.xlu1 %v3961_v34, %s3672_s29 }
 0x112   : > { %3091 = vmatmul.msk.f32.gmra.mxu0 %vm269_vm0, %v231_v59  ;;  %801 = vrot.lane.b32.xlu2 %v4009_v61, %s3672_s29 }
 0x113   : > { %v4016_v63 = vpop.permute.xlu1 %1364  ;;  %797 = vrot.lane.b32.xlu0 %v3992_v51, %s3672_s29 }
 0x114   : > { %5847 = vst [vmem:[#allocation29_spill] sm:$0xff] %v4016_v63  ;;  %v4020_v0 = vpop.permute.xlu2 %701 }
 0x115   : > { %v4022_v1 = vpop.permute.xlu0 %697 }
 0x117   : > { %v530_v2 = vpop.f32.mrf.mxu0 }
 0x118   : > { %v4083_v49 = vadd.f32 %v3788_v32, %v530_v2 }
 0x119   : > { %811 = vrot.lane.b32.xlu1 %v3977_v45, %s3671_s28 }
 0x11a   : > { %3092 = vmatmul.msk.f32.gmra.mxu0 %vm269_vm0, %v232_v4  ;;  %819 = vrot.lane.b32.xlu2 %v4026_v6, %s3671_s28  ;;  %v236_v4 = vld [vmem:[%s3723_s25 + $0x128] sm:$0xff] }
 0x11b   : > { %v4036_v9 = vpop.permute.xlu1 %1479  ;;  %815 = vrot.lane.b32.xlu0 %v4029_v8, %s3671_s28 }
 0x11c   : > { %v4040_v10 = vpop.permute.xlu2 %1384 }
 0x11d   : > { %v4042_v12 = vpop.permute.xlu0 %1380 }
 0x11f   : > { %v533_v13 = vpop.f32.mrf.mxu0 }
 0x121   : > { %799 = vrot.lane.b32.xlu1 %v4029_v8, %s3672_s29 }
 0x122   : > { %3093 = vmatmul.msk.f32.gmra.mxu0 %vm269_vm0, %v233_v15  ;;  %807 = vrot.lane.b32.xlu2 %v4046_v16, %s3672_s29 }
 0x123   : > { %v4053_v17 = vpop.permute.xlu1 %683  ;;  %803 = vrot.lane.b32.xlu0 %v4026_v6, %s3672_s29 }
 0x124   : > { %v4057_v19 = vpop.permute.xlu2 %687 }
 0x125   : > { %v4059_v20 = vpop.permute.xlu0 %1497 }
 0x127   : > { %v536_v22 = vpop.f32.mrf.mxu0 }
 0x128   : > { %v4100_v15 = vadd.f32 %v3788_v32, %v536_v22 }
 0x129   : > { %817 = vrot.lane.b32.xlu1 %v4009_v61, %s3671_s28 }
 0x12a   : > { %3094 = vmatmul.msk.f32.gmra.mxu0 %vm269_vm0, %v234_v25  ;;  %906 = vrot.lane.b32.xlu2 %v4063_v26, %s3672_s29  ;;  %v4103_v25 = vadd.f32 %v3788_v32, %v533_v13 }
 0x12b   : > { %v4073_v31 = vpop.permute.xlu1 %699  ;;  %821 = vrot.lane.b32.xlu0 %v4066_v28, %s3671_s28 }
 0x12c   : > { %v4077_v33 = vpop.permute.xlu2 %1501 }
 0x12d   : > { %v4079_v38 = vpop.permute.xlu0 %1366 }
 0x12e   : > { %5849 = vst [vmem:[#allocation31_spill] sm:$0xff] %v4079_v38 }
 0x12f   : > { %v539_v40 = vpop.f32.mrf.mxu0 }
 0x130   : > { %v4120_v41 = vadd.f32 %v3788_v32, %v539_v40 }
 0x131   : > { %805 = vrot.lane.b32.xlu1 %v4066_v28, %s3672_s29 }
 0x132   : > { %3095 = vmatmul.msk.f32.gmra.mxu0 %vm269_vm0, %v235_v43  ;;  %924 = vrot.lane.b32.xlu2 %v4083_v49, %s3671_s28 }
 0x133   : > { %v4090_v50 = vpop.permute.xlu1 %1382  ;;  %908 = vrot.lane.b32.xlu0 %v4083_v49, %s3672_s29 }
 0x134   : > { %v4094_v57 = vpop.permute.xlu2 %1370 }
 0x135   : > { %5850 = vst [vmem:[#allocation32_spill] sm:$0xff] %v4094_v57  ;;  %v4096_v59 = vpop.permute.xlu0 %1368 }
 0x136   : > { %5851 = vst [vmem:[#allocation33_spill] sm:$0xff] %v4096_v59 }
 0x137   : > { %v542_v2 = vpop.f32.mrf.mxu0 }
 0x138   : > { %v4136_v7 = vadd.f32 %v3788_v32, %v542_v2 }
 0x139   : > { %823 = vrot.lane.b32.xlu1 %v4046_v16, %s3671_s28 }
 0x13a   : > { %3096 = vmatmul.msk.f32.gmra.mxu0 %vm269_vm0, %v236_v4  ;;  %912 = vrot.lane.b32.xlu2 %v4100_v15, %s3672_s29 }
 0x13b   : > { %v4110_v43 = vpop.permute.xlu1 %1481  ;;  %926 = vrot.lane.b32.xlu0 %v4103_v25, %s3671_s28 }
 0x13c   : > { %v4114_v24 = vpop.permute.xlu2 %689 }
 0x13d   : > { %v4116_v22 = vpop.permute.xlu0 %1483 }
 0x13f   : > { %v545_v13 = vpop.f32.mrf.mxu0 }
 0x140   : > { %v4133_v40 = vadd.f32 %v3788_v32, %v545_v13 }
 0x141   : > { %922 = vrot.lane.b32.xlu1 %v4063_v26, %s3671_s28 }
 0x142   : > { %3097 = vmatmul.msk.f32.gmra.mxu0 %vm269_vm0, %v237_v30  ;;  %930 = vrot.lane.b32.xlu2 %v4120_v41, %s3671_s28 }
 0x143   : > { %v4127_v4 = vpop.permute.xlu1 %685  ;;  %914 = vrot.lane.b32.xlu0 %v4120_v41, %s3672_s29 }
 0x144   : > { %v708_v39 = vpop.permute.xlu2 %707 }
 0x145   : > { %v704_v48 = vpop.permute.xlu0 %703 }
 0x147   : > { %v548_v54 = vpop.f32.mrf.mxu0 }
 0x148   : > { %v4153_v58 = vadd.f32 %v3788_v32, %v548_v54  ;;  %v240_v54 = vld [vmem:[%s3723_s25 + $0x148] sm:$0xff] }
 0x149   : > { %910 = vrot.lane.b32.xlu1 %v4103_v25, %s3672_s29 }
 0x14a   : > { %3098 = vmatmul.msk.f32.gmra.mxu0 %vm269_vm0, %v238_v3  ;;  %918 = vrot.lane.b32.xlu2 %v4133_v40, %s3672_s29 }
 0x14b   : > { %v4143_v30 = vpop.permute.xlu1 %1499  ;;  %932 = vrot.lane.b32.xlu0 %v4136_v7, %s3671_s28 }
 0x14c   : > { %v4147_v37 = vpop.permute.xlu2 %1471 }
 0x14d   : > { %v4149_v13 = vpop.permute.xlu0 %1386 }
 0x14f   : > { %v551_v2 = vpop.f32.mrf.mxu0 }
 0x150   : > { %v4168_v57 = vadd.f32 %v3788_v32, %v551_v2  ;;  %v241_v2 = vld [vmem:[%s3723_s25 + $0x150] sm:$0xff] }
 0x151   : > { %928 = vrot.lane.b32.xlu1 %v4100_v15, %s3671_s28 }
 0x152   : > { %3099 = vmatmul.msk.f32.gmra.mxu0 %vm269_vm0, %v239_v44  ;;  %936 = vrot.lane.b32.xlu2 %v4153_v58, %s3671_s28  ;;  %5852 = vst [vmem:[#allocation34_spill] sm:$0xff] %v4168_v57 }
 0x153   : > { %v706_v3 = vpop.permute.xlu1 %705  ;;  %920 = vrot.lane.b32.xlu0 %v4153_v58, %s3672_s29 }
 0x154   : > { %v4162_v62 = vpop.permute.xlu2 %1489 }
 0x155   : > { %v4164_v11 = vpop.permute.xlu0 %1485 }
 0x157   : > { %v554_v18 = vpop.f32.mrf.mxu0 }
 0x158   : > { %v4188_v42 = vadd.f32 %v3788_v32, %v554_v18 }
 0x159   : > { %916 = vrot.lane.b32.xlu1 %v4136_v7, %s3672_s29 }
 0x15a   : > { %3100 = vmatmul.msk.f32.gmra.mxu0 %vm269_vm0, %v240_v54  ;;  %1035 = vrot.lane.b32.xlu2 %v4168_v57, %s3671_s28  ;;  %5854 = vst [vmem:[#allocation36_spill] sm:$0xff] %v4188_v42 }
 0x15b   : > { %v4175_v44 = vpop.permute.xlu1 %1388  ;;  %1019 = vrot.lane.b32.xlu0 %v4168_v57, %s3672_s29 }
 0x15c   : > { %v4179_v59 = vpop.permute.xlu2 %795 }
 0x15d   : > { %v4181_v38 = vpop.permute.xlu0 %691 }
 0x15f   : > { %v557_v35 = vpop.f32.mrf.mxu0 }
 0x160   : > { %v4185_v63 = vadd.f32 %v3788_v32, %v557_v35 }
 0x161   : > { %934 = vrot.lane.b32.xlu1 %v4133_v40, %s3671_s28 }
 0x162   : > { %5853 = vst [vmem:[#allocation35_spill] sm:$0xff] %v4185_v63  ;;  %3101 = vmatmul.msk.f32.gmra.mxu0 %vm269_vm0, %v241_v2  ;;  %1023 = vrot.lane.b32.xlu2 %v4185_v63, %s3672_s29 }
 0x163   : > { %v4195_v54 = vpop.permute.xlu1 %1372  ;;  %1037 = vrot.lane.b32.xlu0 %v4188_v42, %s3671_s28 }
 0x164   : > { %5855 = vst [vmem:[#allocation37_spill] sm:$0xff] %v4195_v54  ;;  %v4199_v57 = vpop.permute.xlu2 %813 }
 0x165   : > { %v710_v35 = vpop.permute.xlu0 %709 }
 0x166   : > { %3123 = vmatpush.xpose.msk.msra.mxu1 %vm711_vm1, %v710_v35  ;;  %3323 = vmatpush.xpose.msk.msrb.mxu3 %vm711_vm1, %v710_v35 }
 0x167   : > { %v560_v18 = vpop.f32.mrf.mxu0 }
 0x168   : > { %v4204_v52 = vadd.f32 %v3788_v32, %v560_v18 }
 0x169   : > { %1021 = vrot.lane.b32.xlu1 %v4188_v42, %s3672_s29 }
 0x16a   : > { %5856 = vst [vmem:[#allocation38_spill] sm:$0xff] %v4204_v52  ;;  %3124 = vmatpush.xpose.msk.msra.mxu1 %vm711_vm1, %v708_v39  ;;  %3324 = vmatpush.xpose.msk.msrb.mxu3 %vm711_vm1, %v708_v39 }
 0x16b   : > { %v4210_v2 = vpop.permute.xlu1 %1487  ;;  %1041 = vrot.lane.b32.xlu2 %v4204_v52, %s3671_s28  ;;  %1025 = vrot.lane.b32.xlu0 %v4204_v52, %s3672_s29 }
 0x16c   : > { %v4216_v35 = vpop.permute.xlu2 %801  ;;  %3102 = vmatmul.msk.f32.gmra.mxu0 %vm269_vm0, %v242_v60 }
 0x16d   : > { %v4218_v18 = vpop.permute.xlu0 %809 }
 0x16e   : > { %3125 = vmatpush.xpose.msk.msra.mxu1 %vm711_vm1, %v706_v3  ;;  %3325 = vmatpush.xpose.msk.msrb.mxu3 %vm711_vm1, %v706_v3 }
 0x16f   : > { %v563_v54 = vpop.f32.mrf.mxu0 }
 0x170   : > { %v4223_v39 = vadd.f32 %v3788_v32, %v563_v54 }
 0x171   : > { %1039 = vrot.lane.b32.xlu1 %v4185_v63, %s3671_s28 }
 0x172   : > { %5857 = vst [vmem:[#allocation39_spill] sm:$0xff] %v4223_v39  ;;  %3126 = vmatpush.xpose.msk.msra.mxu1 %vm711_vm1, %v704_v48  ;;  %3326 = vmatpush.xpose.msk.msrb.mxu3 %vm711_vm1, %v704_v48 }
 0x173   : > { %v4229_v42 = vpop.permute.xlu1 %693  ;;  %1043 = vrot.lane.b32.xlu0 %v4223_v39, %s3671_s28 }
 0x174   : > { %v4233_v52 = vpop.permute.xlu2 %819 }
 0x175   : > { %v4235_v3 = vpop.permute.xlu0 %1491 }
 0x176   : > { %3127 = vmatpush.xpose.msk.msra.mxu1 %vm711_vm1, %v4020_v0  ;;  %3327 = vmatpush.xpose.msk.msrb.mxu3 %vm711_vm1, %v4020_v0 }
 0x177   : > { %v566_v54 = vpop.f32.mrf.mxu0 }
 0x178   : > { %v4244_v48 = vadd.f32 %v3788_v32, %v566_v54  ;;  %v243_v54 = vld [vmem:[%s3723_s25 + $0x160] sm:$0xff] }
 0x179   : > { %1027 = vrot.lane.b32.xlu1 %v4223_v39, %s3672_s29  ;;  %3103 = vmatmul.msk.f32.gmra.mxu0 %vm269_vm0, %v243_v54 }
 0x17a   : > { %5858 = vst [vmem:[#allocation40_spill] sm:$0xff] %v4244_v48  ;;  %3128 = vmatpush.xpose.msk.msra.mxu1 %vm711_vm1, %v4073_v31  ;;  %3328 = vmatpush.xpose.msk.msrb.mxu3 %vm711_vm1, %v4073_v31 }
 0x17b   : > { %v4252_v63 = vpop.permute.xlu1 %1473  ;;  %1029 = vrot.lane.b32.xlu2 %v4244_v48, %s3672_s29 }
 0x17c   : > { %v4256_v0 = vpop.permute.xlu2 %807 }
 0x17d   : > { %v4258_v60 = vpop.permute.xlu0 %1475 }
 0x17e   : > { %3129 = vmatpush.xpose.msk.msra.mxu1 %vm711_vm1, %v4022_v1  ;;  %3329 = vmatpush.xpose.msk.msrb.mxu3 %vm711_vm1, %v4022_v1 }
 0x17f   : > { %v569_v39 = vpop.f32.mrf.mxu0 }
 0x180   : > { %v4267_v31 = vadd.f32 %v3788_v32, %v569_v39 }
 0x181   : > { %1045 = vrot.lane.b32.xlu1 %v4244_v48, %s3671_s28 }
 0x182   : > { %5859 = vst [vmem:[#allocation41_spill] sm:$0xff] %v4267_v31  ;;  %3130 = vmatpush.xpose.msk.msra.mxu1 %vm711_vm1, %v3938_v23  ;;  %3330 = vmatpush.xpose.msk.msrb.mxu3 %vm711_vm1, %v3938_v23  ;;  %v244_v23 = vld [vmem:[%s3723_s25 + $0x168] sm:$0xff] }
 0x183   : > { %v4275_v5 = vpop.permute.xlu1 %793  ;;  %1031 = vrot.lane.b32.xlu0 %v4267_v31, %s3672_s29  ;;  %1047 = vrot.lane.b32.xlu2 %v4267_v31, %s3671_s28 }
 0x184   : > { %v4281_v1 = vpop.permute.xlu2 %906  ;;  %3104 = vmatmul.msk.f32.gmra.mxu0 %vm269_vm0, %v244_v23  ;;  %v245_v23 = vld [vmem:[%s3723_s25 + $0x170] sm:$0xff] }
 0x185   : > { %3131 = vmatmul.msk.f32.vlgmr.msra.gmra.mxu1 %vm711_vm1, %v3988_v47  ;;  %3135 = vmatmul.msk.f32.vlgmr.msrb.gmra.mxu3 %vm711_vm1, %v4057_v19  ;;  %v4287_v39 = vpop.permute.xlu0 %797 }
 0x187   : > { %v572_v54 = vpop.f32.mrf.mxu0 }
 0x188   : > { %v4292_v48 = vadd.f32 %v3788_v32, %v572_v54 }
 0x18a   : > { %5860 = vst [vmem:[#allocation42_spill] sm:$0xff] %v4292_v48  ;;  %1033 = vrot.lane.b32.xlu1 %v4292_v48, %s3672_s29 }
 0x18b   : > { %v4296_v31 = vpop.permute.xlu1 %811  ;;  %1049 = vrot.lane.b32.xlu0 %v4292_v48, %s3671_s28 }
 0x18c   : > { %v4300_v47 = vpop.permute.xlu2 %924  ;;  %3105 = vmatmul.msk.f32.gmra.mxu0 %vm269_vm0, %v245_v23  ;;  %v246_v23 = vld [vmem:[%s3723_s25 + $0x178] sm:$0xff] }
 0x18d   : > { %3132 = vmatmul.msk.f32.gmra.mxu1 %vm711_vm1, %v4005_v56  ;;  %3136 = vmatmul.msk.f32.gmra.mxu3 %vm711_vm1, %v4114_v24  ;;  %v816_v19 = vpop.permute.xlu0 %815 }
 0x18f   : > { %v575_v54 = vpop.f32.mrf.mxu0 }
 0x190   : > { %v4309_v36 = vadd.f32 %v3788_v32, %v575_v54 }
 0x192   : > { %5861 = vst [vmem:[#allocation43_spill] sm:$0xff] %v4309_v36  ;;  %1132 = vrot.lane.b32.xlu1 %v4309_v36, %s3672_s29 }
 0x193   : > { %v4313_v48 = vpop.permute.xlu1 %799  ;;  %1148 = vrot.lane.b32.xlu0 %v4309_v36, %s3671_s28 }
 0x194   : > { %v4317_v56 = vpop.permute.xlu2 %912  ;;  %3106 = vmatmul.msk.f32.gmra.mxu0 %vm269_vm0, %v246_v23  ;;  %v247_v23 = vld [vmem:[%s3723_s25 + $0x180] sm:$0xff] }
 0x195   : > { %3133 = vmatmul.msk.f32.gmra.mxu1 %vm711_vm1, %v4053_v17  ;;  %3137 = vmatmul.msk.f32.gmra.mxu3 %vm711_vm1, %v4181_v38  ;;  %v4323_v24 = vpop.permute.xlu0 %803 }
 0x197   : > { %v578_v54 = vpop.f32.mrf.mxu0 }
 0x198   : > { %v4328_v14 = vadd.f32 %v3788_v32, %v578_v54 }
 0x19a   : > { %5862 = vst [vmem:[#allocation44_spill] sm:$0xff] %v4328_v14  ;;  %1150 = vrot.lane.b32.xlu1 %v4328_v14, %s3671_s28  ;;  %1134 = vrot.lane.b32.xlu2 %v4328_v14, %s3672_s29 }
 0x19b   : > { %v818_v36 = vpop.permute.xlu1 %817 }
 0x19c   : > { %v4334_v17 = vpop.permute.xlu2 %930  ;;  %3107 = vmatmul.msk.f32.gmra.mxu0 %vm269_vm0, %v247_v23 }
 0x19d   : > { %3134 = vmatmul.msk.f32.gmra.mxu1 %vm711_vm1, %v4127_v4  ;;  %3138 = vmatmul.msk.f32.gmra.mxu3 %vm711_vm1, %v4229_v42  ;;  %v822_v38 = vpop.permute.xlu0 %821 }
 0x19f   : > { %v581_v34 = vpop.f32.mrf.mxu0 }
 0x1a0   : > { %v4343_v54 = vadd.f32 %v3788_v32, %v581_v34 }
 0x1a2   : > { %5863 = vst [vmem:[#allocation45_spill] sm:$0xff] %v4343_v54  ;;  %1152 = vrot.lane.b32.xlu2 %v4343_v54, %s3671_s28  ;;  %1136 = vrot.lane.b32.xlu0 %v4343_v54, %s3672_s29  ;;  %v248_v54 = vld [vmem:[%s3723_s25 + $0x188] sm:$0xff] }
 0x1a3   : > { %v4349_v14 = vpop.permute.xlu1 %805 }
 0x1a4   : > { %v4351_v4 = vpop.permute.xlu2 %918  ;;  %3108 = vmatmul.msk.f32.gmra.mxu0 %vm269_vm0, %v248_v54 }
 0x1a5   : > { %v4353_v42 = vpop.permute.xlu0 %908 }
 0x1a7   : > { %v584_v21 = vpop.f32.mrf.mxu0 }
 0x1a8   : > { %v4356_v45 = vadd.f32 %v3788_v32, %v584_v21 }
 0x1aa   : > { %5864 = vst [vmem:[#allocation46_spill] sm:$0xff] %v4356_v45  ;;  %1138 = vrot.lane.b32.xlu1 %v4356_v45, %s3672_s29 }
 0x1ab   : > { %v824_v34 = vpop.permute.xlu1 %823 }
 0x1ac   : > { %3139 = vmatpush.xpose.msk.msrb.mxu2 %vm711_vm1, %v824_v34  ;;  %v937_v23 = vpop.permute.xlu2 %936 }
 0x1ad   : > { %v927_v27 = vpop.permute.xlu0 %926  ;;  %3155 = vmatpush.xpose.msk.msra.mxu3 %vm711_vm1, %v937_v23 }
 0x1af   : > { %v587_v51 = vpop.f32.mrf.mxu0 }
 0x1b0   : > { %v4365_v8 = vadd.f32 %v3788_v32, %v587_v51  ;;  %3140 = vmatpush.xpose.msk.msrb.mxu2 %vm711_vm1, %v822_v38 }
 0x1b2   : > { %5865 = vst [vmem:[#allocation47_spill] sm:$0xff] %v4365_v8  ;;  %1154 = vrot.lane.b32.xlu1 %v4356_v45, %s3671_s28  ;;  %1140 = vrot.lane.b32.xlu2 %v4365_v8, %s3672_s29 }
 0x1b3   : > { %v923_v21 = vpop.permute.xlu1 %922 }
 0x1b4   : > { %3141 = vmatpush.xpose.msk.msrb.mxu2 %vm711_vm1, %v4233_v52 }
 0x1b5   : > { %v4374_v34 = vpop.permute.xlu0 %914 }
 0x1b7   : > { %v590_v23 = vpop.f32.mrf.mxu0 }
 0x1b8   : > { %v4377_v54 = vadd.f32 %v3788_v32, %v590_v23  ;;  %3142 = vmatpush.xpose.msk.msrb.mxu2 %vm711_vm1, %v818_v36 }
 0x1ba   : > { %5866 = vst [vmem:[#allocation48_spill] sm:$0xff] %v4377_v54  ;;  %1156 = vrot.lane.b32.xlu1 %v4365_v8, %s3671_s28  ;;  %1142 = vrot.lane.b32.xlu0 %v4377_v54, %s3672_s29 }
 0x1bb   : > { %v911_v51 = vpop.permute.xlu1 %910 }
 0x1bc   : > { %3143 = vmatpush.xpose.msk.msrb.mxu2 %vm711_vm1, %v816_v19 }
 0x1bd   : > { %v933_v38 = vpop.permute.xlu0 %932 }
 0x1bf   : > { %v593_v45 = vpop.f32.mrf.mxu0 }
 0x1c0   : > { %v4386_v52 = vadd.f32 %v3788_v32, %v593_v45  ;;  %3144 = vmatpush.xpose.msk.msrb.mxu2 %vm711_vm1, %v4199_v57 }
 0x1c2   : > { %5867 = vst [vmem:[#allocation49_spill] sm:$0xff] %v4386_v52  ;;  %1160 = vrot.lane.b32.xlu2 %v4386_v52, %s3671_s28  ;;  %1158 = vrot.lane.b32.xlu0 %v4377_v54, %s3671_s28 }
 0x1c3   : > { %v929_v36 = vpop.permute.xlu1 %928  ;;  %1144 = vrot.lane.b32.xlu1 %v4386_v52, %s3672_s29  ;;  %v1036_v52 = vpop.permute.xlu2 %1035 }
 0x1c4   : > { %3145 = vmatpush.xpose.msk.msrb.mxu2 %vm711_vm1, %v4296_v31 }
 0x1c5   : > { %v4398_v19 = vpop.permute.xlu0 %920 }
 0x1c7   : > { %v596_v45 = vpop.f32.mrf.mxu0 }
 0x1c8   : > { %v4401_v23 = vadd.f32 %v3788_v32, %v596_v45  ;;  %3146 = vmatpush.xpose.msk.msrb.mxu2 %vm711_vm1, %v4218_v18 }
 0x1ca   : > { %1146 = vrot.lane.b32.xlu2 %v4401_v23, %s3672_s29  ;;  %1162 = vrot.lane.b32.xlu0 %v4401_v23, %s3671_s28 }
 0x1cb   : > { %v4409_v57 = vpop.permute.xlu1 %916  ;;  %3147 = vmatmul.msk.f32.vlgmr.msrb.gmra.mxu2 %vm711_vm1, %v4275_v5 }
 0x1cd   : > { %v4413_v31 = vpop.permute.xlu0 %1019 }
 0x1cf   : > { %v599_v8 = vpop.f32.mrf.mxu0 }
 0x1d0   : > { %v4416_v45 = vadd.f32 %v3788_v32, %v599_v8 }
 0x1d2   : > { %1245 = vrot.lane.b32.xlu2 %v4416_v45, %s3672_s29  ;;  %1261 = vrot.lane.b32.xlu1 %v4416_v45, %s3671_s28 }
 0x1d3   : > { %v935_v18 = vpop.permute.xlu1 %934  ;;  %3148 = vmatmul.msk.f32.gmra.mxu2 %vm711_vm1, %v4179_v59 }
 0x1d4   : > { %3156 = vmatpush.xpose.msk.msra.mxu3 %vm711_vm1, %v935_v18 }
 0x1d5   : > { %v1038_v8 = vpop.permute.xlu0 %1037 }
 0x1d7   : > { %v602_v54 = vpop.f32.mrf.mxu0 }
 0x1d8   : > { %v4426_v5 = vadd.f32 %v3788_v32, %v602_v54  ;;  %3157 = vmatpush.xpose.msk.msra.mxu3 %vm711_vm1, %v933_v38 }
 0x1da   : > { %1263 = vrot.lane.b32.xlu2 %v4426_v5, %s3671_s28  ;;  %1247 = vrot.lane.b32.xlu0 %v4426_v5, %s3672_s29 }
 0x1db   : > { %3149 = vmatmul.msk.f32.gmra.mxu2 %vm711_vm1, %v4287_v39  ;;  %v4450_v39 = vpop.permute.xlu2 %1023 }
 0x1dc   : > { %3158 = vmatpush.xpose.msk.msra.mxu3 %vm711_vm1, %v4334_v17  ;;  %v1022_v17 = vpop.permute.xlu1 %1021 }
 0x1dd   : > { %v4445_v38 = vpop.permute.xlu0 %1025 }
 0x1df   : > { %v605_v59 = vpop.f32.mrf.mxu0 }
 0x1e0   : > { %v4438_v54 = vadd.f32 %v3788_v32, %v605_v59  ;;  %3159 = vmatpush.xpose.msk.msra.mxu3 %vm711_vm1, %v929_v36 }
 0x1e2   : > { %1249 = vrot.lane.b32.xlu1 %v4438_v54, %s3672_s29  ;;  %1265 = vrot.lane.b32.xlu0 %v4438_v54, %s3671_s28 }
 0x1e3   : > { %3150 = vmatmul.msk.f32.gmra.mxu2 %vm711_vm1, %v4313_v48  ;;  %v1042_v18 = vpop.permute.xlu2 %1041 }
 0x1e4   : > { %3160 = vmatpush.xpose.msk.msra.mxu3 %vm711_vm1, %v927_v27  ;;  %v1040_v59 = vpop.permute.xlu1 %1039 }
 0x1e5   : > { %v1044_v36 = vpop.permute.xlu0 %1043 }
 0x1e8   : > { %3161 = vmatpush.xpose.msk.msra.mxu3 %vm711_vm1, %v4300_v47 }
 0x1eb   : > { %3151 = vmatmul.msk.f32.gmra.mxu2 %vm711_vm1, %v4216_v35  ;;  %v4463_v48 = vpop.permute.xlu2 %1029 }
 0x1ec   : > { %3162 = vmatpush.xpose.msk.msra.mxu3 %vm711_vm1, %v923_v21  ;;  %v4467_v47 = vpop.permute.xlu1 %1027 }
 0x1ef   : > { %3163 = vmatmul.msk.f32.vlgmr.msra.gmra.mxu3 %vm711_vm1, %v4281_v1 }
 0x1f3   : > { %3152 = vmatmul.msk.f32.gmra.mxu2 %vm711_vm1, %v4323_v24  ;;  %v1048_v1 = vpop.permute.xlu2 %1047 }
 0x1f4   : > { %v1046_v21 = vpop.permute.xlu1 %1045 }
 0x1f5   : > { %v4461_v27 = vpop.permute.xlu0 %1031 }
 0x1f7   : > { %3164 = vmatmul.msk.f32.gmra.mxu3 %vm711_vm1, %v4353_v42 }
 0x1fb   : > { %3153 = vmatmul.msk.f32.gmra.mxu2 %vm711_vm1, %v4349_v14  ;;  %v608_v14 = vpop.f32.mrf.mxu0 }
 0x1fd   : > { %v1050_v35 = vpop.permute.xlu0 %1049 }
 0x1fe   : > { %3171 = vmatpush.xpose.msk.msrb.mxu1 %vm711_vm1, %v1050_v35 }
 0x1ff   : > { %3165 = vmatmul.msk.f32.gmra.mxu3 %vm711_vm1, %v911_v51 }
 0x202   : > { %v4473_v24 = vpop.f32.mrf.mxu1  ;;  %3172 = vmatpush.xpose.msk.msrb.mxu1 %vm711_vm1, %v1048_v1 }
 0x203   : > { %3154 = vmatmul.msk.f32.gmra.mxu2 %vm711_vm1, %v4256_v0  ;;  %v1577_v42 = vsel %vm1576_vm2, %v4473_v24, -inf }
 0x204   : > { %1578 = vmax.xlane.f32.xlu2 %v1577_v42 }
 0x206   : > { %3173 = vmatpush.xpose.msk.msrb.mxu1 %vm711_vm1, %v1046_v21 }
 0x207   : > { %3166 = vmatmul.msk.f32.gmra.mxu3 %vm711_vm1, %v4317_v56  ;;  %v611_v56 = vpop.f32.mrf.mxu0 }
 0x208   : > { %v4483_v51 = vpop.f32.mrf.mxu3 }
 0x209   : > { %v1589_v0 = vsel %vm1576_vm2, %v4483_v51, -inf }
 0x20a   : > { %v4485_v35 = vpop.f32.mrf.mxu1  ;;  %3174 = vmatpush.xpose.msk.msrb.mxu1 %vm711_vm1, %v1044_v36  ;;  %v4503_v36 = vpop.permute.xlu1 %1033 }
 0x20b   : > { %v1580_v1 = vsel %vm1576_vm2, %v4485_v35, -inf }
 0x20c   : > { %1590 = vmax.xlane.f32.xlu2 %v1589_v0  ;;  %1581 = vmax.xlane.f32.xlu1 %v1580_v1 }
 0x20e   : > { %3175 = vmatpush.xpose.msk.msrb.mxu1 %vm711_vm1, %v1042_v18 }
 0x20f   : > { %3167 = vmatmul.msk.f32.gmra.mxu3 %vm711_vm1, %v4374_v34  ;;  %v614_v18 = vpop.f32.mrf.mxu0  ;;  %v4508_v34 = vpop.permute.xlu0 %1148 }
 0x210   : > { %v4495_v42 = vpop.f32.mrf.mxu3 }
 0x211   : > { %v1592_v21 = vsel %vm1576_vm2, %v4495_v42, -inf }
 0x212   : > { %1593 = vmax.xlane.f32.xlu0 %v1592_v21  ;;  %3176 = vmatpush.xpose.msk.msrb.mxu1 %vm711_vm1, %v1040_v59 }
 0x216   : > { %3177 = vmatpush.xpose.msk.msrb.mxu1 %vm711_vm1, %v1038_v8  ;;  %v4519_v8 = vpop.permute.xlu1 %1132 }
 0x217   : > { %3168 = vmatmul.msk.f32.gmra.mxu3 %vm711_vm1, %v4409_v57  ;;  %v4517_v57 = vadd.f32 %v3788_v32, %v608_v14 }
 0x21a   : > { %3178 = vmatpush.xpose.msk.msrb.mxu1 %vm711_vm1, %v1036_v52  ;;  %v4522_v52 = vadd.f32 %v3788_v32, %v611_v56 }
 0x21d   : > { %3179 = vmatmul.msk.f32.vlgmr.msrb.gmra.mxu1 %vm711_vm1, %v4413_v31  ;;  %v4528_v31 = vpop.permute.xlu0 %1136 }
 0x21e   : > { %3219 = vmatpush.xpose.msk.msra.mxu1 %vm711_vm1, %v4175_v44  ;;  %v4526_v44 = vpop.f32.mrf.mxu0 }
 0x21f   : > { %3169 = vmatmul.msk.f32.gmra.mxu3 %vm711_vm1, %v4351_v4  ;;  %v1151_v4 = vpop.permute.xlu1 %1150 }
 0x222   : > { %3220 = vmatpush.xpose.msk.msra.mxu1 %vm711_vm1, %v4149_v13  ;;  %v1135_v13 = vpop.permute.xlu2 %1134 }
 0x224   : > { %1251 = vrot.lane.b32.xlu2 %v4517_v57, %s3672_s29 }
 0x225   : > { %3180 = vmatmul.msk.f32.gmra.mxu1 %vm711_vm1, %v1022_v17  ;;  %1267 = vrot.lane.b32.xlu1 %v4517_v57, %s3671_s28 }
 0x226   : > { %3221 = vmatpush.xpose.msk.msra.mxu1 %vm711_vm1, %v4040_v10  ;;  %1253 = vrot.lane.b32.xlu0 %v4522_v52, %s3672_s29  ;;  %v4542_v10 = vadd.f32 %v3788_v32, %v614_v18  ;;  %v620_v59 = vpop.f32.mrf.mxu0  ;;  %v3598_v18 = vld [vmem:[%s5778_s3] ss:$0 sm:$0xff] }
 0x227   : > { %3170 = vmatmul.msk.f32.gmra.mxu3 %vm711_vm1, %v4398_v19  ;;  %v4555_v19 = vadd.f32 %v3788_v32, %v620_v59  ;;  %v1139_v14 = vpop.permute.xlu1 %1138 }
 0x22a   : > { %3222 = vmatpush.xpose.msk.msra.mxu1 %vm711_vm1, %v4090_v50  ;;  %v1153_v50 = vpop.permute.xlu2 %1152 }
 0x22c   : > { %v4546_v17 = vpop.permute.xlu0 %1142 }
 0x22d   : > { %3181 = vmatmul.msk.f32.gmra.mxu1 %vm711_vm1, %v4450_v39 }
 0x22e   : > { %3223 = vmatpush.xpose.msk.msra.mxu1 %vm711_vm1, %v4042_v12  ;;  %1271 = vrot.lane.b32.xlu0 %v4542_v10, %s3671_s28  ;;  %v623_v12 = vpop.f32.mrf.mxu0 }
 0x22f   : > { %v4564_v1 = vadd.f32 %v3788_v32, %v623_v12  ;;  %v4585_v12 = vpop.f32.mrf.mxu3 }
 0x232   : > { %3224 = vmatpush.xpose.msk.msra.mxu1 %vm711_vm1, %v3954_v29  ;;  %v4561_v39 = vpop.permute.xlu2 %1140  ;;  %v1155_v29 = vpop.permute.xlu1 %1154 }
 0x234   : > { %v1159_v0 = vpop.permute.xlu0 %1158 }
 0x235   : > { %3182 = vmatmul.msk.f32.gmra.mxu1 %vm711_vm1, %v4445_v38 }
 0x236   : > { %1259 = vrot.lane.b32.xlu0 %v4555_v19, %s3672_s29  ;;  %v626_v32 = vpop.f32.mrf.mxu0 }
 0x237   : > { %v4583_v59 = vadd.f32 %v3598_v18, %v626_v32 }
 0x23a   : > { %v1161_v38 = vpop.permute.xlu2 %1160  ;;  %v1157_v21 = vpop.permute.xlu1 %1156 }
 0x23c   : > { %v1163_v56 = vpop.permute.xlu0 %1162 }
 0x23d   : > { %3183 = vmatmul.msk.f32.gmra.mxu1 %vm711_vm1, %v4467_v47  ;;  %3187 = vmatpush.xpose.msk.msra.mxu2 %vm711_vm1, %v1163_v56  ;;  %v4577_v47 = vpop.f32.mrf.mxu1 }
 0x23e   : > { %1358 = vrot.lane.b32.xlu0 %v4564_v1, %s3672_s29 }
 0x241   : > { %3188 = vmatpush.xpose.msk.msra.mxu2 %vm711_vm1, %v1161_v38 }
 0x242   : > { %v1147_v38 = vpop.permute.xlu2 %1146 }
 0x245   : > { %3184 = vmatmul.msk.f32.gmra.mxu1 %vm711_vm1, %v4463_v48  ;;  %3189 = vmatpush.xpose.msk.msra.mxu2 %vm711_vm1, %v1159_v0  ;;  %v1583_v48 = vsel %vm1576_vm2, %v4577_v47, -inf  ;;  %v1595_v0 = vsel %vm1576_vm2, %v4585_v12, -inf  ;;  %v4597_v56 = vpop.f32.mrf.mxu1 }
 0x246   : > { %1374 = vrot.lane.b32.xlu0 %v4564_v1, %s3671_s28 }
 0x249   : > { %3190 = vmatpush.xpose.msk.msra.mxu2 %vm711_vm1, %v1157_v21 }
 0x24d   : > { %1584 = vmax.xlane.f32.xlu2 %v1583_v48  ;;  %3185 = vmatmul.msk.f32.gmra.mxu1 %vm711_vm1, %v4461_v27  ;;  %v1586_v27 = vsel %vm1576_vm2, %v4597_v56, -inf }
 0x24e   : > { %1360 = vrot.lane.b32.xlu0 %v4583_v59, %s3672_s29  ;;  %3191 = vmatpush.xpose.msk.msra.mxu2 %vm711_vm1, %v1155_v29  ;;  %v4606_v29 = vpop.f32.mrf.mxu3 }
 0x24f   : > { %1596 = vmax.xlane.f32.xlu1 %v1595_v0 }
 0x252   : > { %3192 = vmatpush.xpose.msk.msra.mxu2 %vm711_vm1, %v1153_v50 }
 0x255   : > { %3186 = vmatmul.msk.f32.gmra.mxu1 %vm711_vm1, %v4503_v36  ;;  %v1598_v36 = vsel %vm1576_vm2, %v4606_v29, -inf }
 0x256   : > { %3193 = vmatpush.xpose.msk.msra.mxu2 %vm711_vm1, %v1151_v4 }
 0x257   : > { %1587 = vmax.xlane.f32.xlu1 %v1586_v27 }
 0x25a   : > { %3194 = vmatpush.xpose.msk.msra.mxu2 %vm711_vm1, %v4508_v34  ;;  %v4618_v34 = vpop.permute.xlu2 %1245 }
 0x25d   : > { %3195 = vmatmul.msk.f32.vlgmr.msra.gmra.mxu2 %vm711_vm1, %v4519_v8  ;;  %v618_v8 = vadd.f32 %v3598_v18, %v4526_v44 }
 0x25e   : > { %3235 = vmatpush.xpose.msk.msrb.mxu2 %vm711_vm1, %v4077_v33  ;;  %v4625_v33 = vpop.f32.mrf.mxu2 }
 0x25f   : > { %1599 = vmax.xlane.f32.xlu1 %v1598_v36  ;;  %v1601_v44 = vsel %vm1576_vm2, %v4625_v33, -inf }
 0x262   : > { %3236 = vmatpush.xpose.msk.msrb.mxu2 %vm711_vm1, %v4143_v30 }
 0x265   : > { %1269 = vrot.lane.b32.xlu2 %v4522_v52, %s3671_s28  ;;  %3196 = vmatmul.msk.f32.gmra.mxu2 %vm711_vm1, %v1135_v13 }
 0x266   : > { %3237 = vmatpush.xpose.msk.msrb.mxu2 %vm711_vm1, %v4059_v20  ;;  %v4633_v20 = vpop.permute.xlu2 %1263  ;;  %v4637_v30 = vpop.f32.mrf.mxu2 }
 0x26a   : > { %3238 = vmatpush.xpose.msk.msrb.mxu2 %vm711_vm1, %v4003_v55  ;;  %v4639_v55 = vpop.permute.xlu0 %1247 }
 0x26d   : > { %1257 = vrot.lane.b32.xlu2 %v618_v8, %s3672_s29  ;;  %3197 = vmatmul.msk.f32.gmra.mxu2 %vm711_vm1, %v4528_v31 }
 0x26e   : > { %3239 = vmatpush.xpose.msk.msrb.mxu2 %vm711_vm1, %v3999_v53  ;;  %v4655_v31 = vpop.f32.mrf.mxu2 }
 0x272   : > { %3240 = vmatpush.xpose.msk.msrb.mxu2 %vm711_vm1, %v4235_v3  ;;  %v4658_v13 = vpop.permute.xlu0 %1265 }
 0x275   : > { %1275 = vrot.lane.b32.xlu2 %v4555_v19, %s3671_s28  ;;  %3198 = vmatmul.msk.f32.gmra.mxu2 %vm711_vm1, %v1139_v14 }
 0x276   : > { %3241 = vmatpush.xpose.msk.msrb.mxu2 %vm711_vm1, %v4162_v62 }
 0x277   : > { %v1579_v53 = vpop.xlane.xlu2 %1578 }
 0x278   : > { %v1769_v3 = vsub.f32 %v4473_v24, %v1579_v53  ;;  %1602 = vmax.xlane.f32.xlu0 %v1601_v44  ;;  %1255 = vrot.lane.b32.xlu1 %v4542_v10, %s3672_s29  ;;  %v4679_v24 = vpop.f32.mrf.mxu3 }
 0x27a   : > { %3242 = vmatpush.xpose.msk.msrb.mxu2 %vm711_vm1, %v4210_v2  ;;  %v1833_v62 = vmul.f32 1.442695, %v1769_v3 }
 0x27c   : > { %3342 = vpow2.f32 %v1833_v62 }
 0x27d   : > { %3199 = vmatmul.msk.f32.gmra.mxu2 %vm711_vm1, %v4561_v39 }
 0x27e   : > { %2443 = vmatpush.msra.mxu2 %v4153_v58  ;;  %v1607_v58 = vsel %vm1576_vm2, %v4655_v31, -inf }
 0x280   : > { %2444 = vmatpush.msra.mxu2 %v4133_v40  ;;  %1608 = vmax.xlane.f32.xlu0 %v1607_v58  ;;  %v4704_v32 = vpop.f32.mrf.mxu3 }
 0x281   : > { %1273 = vrot.lane.b32.xlu1 %v618_v8, %s3671_s28 }
 0x282   : > { %2445 = vmatpush.msra.mxu2 %v4136_v7  ;;  %v4668_v40 = vpop.eup %3342 }
 0x283   : > { %v1961_v2 = vsel %vm1576_vm2, %v4668_v40, 0.0 }
 0x284   : > { %2446 = vmatpush.msra.mxu2 %v4120_v41 }
 0x285   : > { %3200 = vmatmul.msk.f32.gmra.mxu2 %vm711_vm1, %v4546_v17  ;;  %v1594_v7 = vpop.xlane.xlu0 %1593 }
 0x286   : > { %2447 = vmatpush.msra.mxu2 %v4100_v15  ;;  %v1774_v41 = vsub.f32 %v4495_v42, %v1594_v7  ;;  %v1625_v42 = vsel %vm1576_vm2, %v4679_v24, -inf  ;;  %v1628_v7 = vsel %vm1576_vm2, %v4704_v32, -inf }
 0x288   : > { %2448 = vmatpush.msra.mxu2 %v4103_v25  ;;  %1962 = vadd.xlane.f32.xlu0 %v1961_v2  ;;  %v1843_v15 = vmul.f32 1.442695, %v1774_v41  ;;  %v1145_v25 = vpop.permute.xlu1 %1144 }
 0x289   : > { %1376 = vrot.lane.b32.xlu1 %v4583_v59, %s3671_s28 }
 0x28a   : > { %2449 = vmatpush.msra.mxu2 %v4083_v49  ;;  %3344 = vpow2.f32 %v1843_v15  ;;  %v4682_v49 = vpop.f32.mrf.mxu2 }
 0x28b   : > { %v1610_v50 = vsel %vm1576_vm2, %v4682_v49, -inf }
 0x28c   : > { %2450 = vmatpush.msra.mxu2 %v4063_v26 }
 0x28d   : > { %3201 = vmatmul.msk.f32.gmra.mxu2 %vm711_vm1, %v1145_v25 }
 0x290   : > { %1626 = vmax.xlane.f32.xlu0 %v1625_v42  ;;  %v4686_v26 = vpop.eup %3344  ;;  %v4698_v14 = vpop.permute.xlu1 %1261 }
 0x291   : > { %v1976_v4 = vsel %vm1576_vm2, %v4686_v26, 0.0 }
 0x292   : > { %v4691_v17 = vpop.f32.mrf.mxu2 }
 0x295   : > { %3202 = vmatmul.msk.f32.gmra.mxu2 %vm711_vm1, %v1147_v38 }
 0x298   : > { %1977 = vadd.xlane.f32.xlu0 %v1976_v4  ;;  %v4725_v48 = vpop.permute.xlu0 %1253 }
 0x29a   : > { %v4701_v39 = vpop.f32.mrf.mxu2 }
 0x29d   : > { %3243 = vmatmul.msk.f32.vlgmr.msrb.gmra.mxu2 %vm711_vm1, %v4147_v37  ;;  %v1613_v37 = vsel %vm1576_vm2, %v4691_v17, -inf }
 0x29e   : > { %2638 = vmatpush.msrb.mxu2 %v4555_v19  ;;  %1611 = vmax.xlane.f32.xlu2 %v1610_v50  ;;  %v4712_v19 = vpop.permute.xlu1 %1249 }
 0x2a0   : > { %2639 = vmatpush.msrb.mxu2 %v618_v8 }
 0x2a2   : > { %2640 = vmatpush.msrb.mxu2 %v4542_v10  ;;  %v1591_v10 = vpop.xlane.xlu2 %1590  ;;  %v4717_v21 = vpop.f32.mrf.mxu2 }
 0x2a4   : > { %2641 = vmatpush.msrb.mxu2 %v4522_v52  ;;  %v1773_v52 = vsub.f32 %v4483_v51, %v1591_v10 }
 0x2a5   : > { %3244 = vmatmul.msk.f32.gmra.mxu2 %vm711_vm1, %v4252_v63  ;;  %v1616_v63 = vsel %vm1576_vm2, %v4701_v39, -inf }
 0x2a6   : > { %2642 = vmatpush.msrb.mxu2 %v4517_v57  ;;  %1614 = vmax.xlane.f32.xlu2 %v1613_v37  ;;  %v4723_v57 = vpop.f32.mrf.mxu3  ;;  %v1582_v18 = vpop.xlane.xlu1 %1581 }
 0x2a8   : > { %2643 = vmatpush.msrb.mxu2 %v4438_v54  ;;  %v1841_v54 = vmul.f32 1.442695, %v1773_v52 }
 0x2aa   : > { %2644 = vmatpush.msrb.mxu2 %v4426_v5  ;;  %v1604_v5 = vsel %vm1576_vm2, %v4637_v30, -inf  ;;  %3346 = vpow2.f32 %v1841_v54  ;;  %v4734_v51 = vpop.f32.mrf.mxu2  ;;  %v4736_v27 = vpop.permute.xlu2 %1251 }
 0x2ac   : > { %2645 = vmatpush.msrb.mxu2 %v4416_v45  ;;  %v1770_v45 = vsub.f32 %v4485_v35, %v1582_v18  ;;  %v1622_v35 = vsel %vm1576_vm2, %v4734_v51, -inf }
 0x2ad   : > { %3245 = vmatmul.msk.f32.gmra.mxu2 %vm711_vm1, %v4258_v60  ;;  %v1619_v60 = vsel %vm1576_vm2, %v4717_v21, -inf }
 0x2ae   : > { %1617 = vmax.xlane.f32.xlu2 %v1616_v63  ;;  %v1835_v0 = vmul.f32 1.442695, %v1770_v45  ;;  %v4738_v38 = vpop.f32.mrf.mxu3  ;;  %v4742_v8 = vpop.permute.xlu1 %1267  ;;  %v1631_v63 = vsel %vm1576_vm2, %v4723_v57, -inf }
 0x2b0   : > { %v4740_v36 = vpop.eup %3346  ;;  %3348 = vpow2.f32 %v1835_v0 }
 0x2b1   : > { %v1973_v53 = vsel %vm1576_vm2, %v4740_v36, 0.0 }
 0x2b3   : > { %1605 = vmax.xlane.f32.xlu1 %v1604_v5 }
 0x2b5   : > { %3246 = vmatmul.msk.f32.gmra.mxu2 %vm711_vm1, %v3986_v46  ;;  %v4746_v46 = vpop.permute.xlu0 %1271 }
 0x2b6   : > { %1620 = vmax.xlane.f32.xlu2 %v1619_v60  ;;  %v4753_v62 = vpop.eup %3348  ;;  %v4757_v41 = vpop.f32.mrf.mxu3  ;;  %v1634_v60 = vsel %vm1576_vm2, %v4738_v38, -inf }
 0x2bb   : > { %1623 = vmax.xlane.f32.xlu1 %v1622_v35 }
 0x2bd   : > { %3247 = vmatmul.msk.f32.gmra.mxu2 %vm711_vm1, %v4036_v9  ;;  %v4762_v25 = vpop.permute.xlu0 %1259 }
 0x2be   : > { %1974 = vadd.xlane.f32.xlu2 %v1973_v53 }
 0x2c0   : > { %v1585_v44 = vpop.xlane.xlu2 %1584 }
 0x2c1   : > { %v1771_v3 = vsub.f32 %v4577_v47, %v1585_v44  ;;  %v1964_v47 = vsel %vm1576_vm2, %v4753_v62, 0.0 }
 0x2c2   : > { %v1597_v58 = vpop.xlane.xlu1 %1596 }
 0x2c3   : > { %v1837_v2 = vmul.f32 1.442695, %v1771_v3  ;;  %v1775_v15 = vsub.f32 %v4585_v12, %v1597_v58  ;;  %1629 = vmax.xlane.f32.xlu1 %v1628_v7  ;;  %v1637_v7 = vsel %vm1576_vm2, %v4757_v41, -inf }
 0x2c5   : > { %3350 = vpow2.f32 %v1837_v2  ;;  %v1845_v9 = vmul.f32 1.442695, %v1775_v15  ;;  %3248 = vmatmul.msk.f32.gmra.mxu2 %vm711_vm1, %v4110_v43  ;;  %v4775_v43 = vpop.f32.mrf.mxu3 }
 0x2c6   : > { %1965 = vadd.xlane.f32.xlu2 %v1964_v47  ;;  %v1640_v47 = vsel %vm1576_vm2, %v4775_v43, -inf }
 0x2c7   : > { %3352 = vpow2.f32 %v1845_v9 }
 0x2c8   : > { %v4766_v42 = vpop.permute.xlu2 %1269 }
 0x2ca   : > { %v1588_v4 = vpop.xlane.xlu1 %1587 }
 0x2cb   : > { %v4768_v50 = vpop.eup %3350  ;;  %v1772_v12 = vsub.f32 %v4597_v56, %v1588_v4  ;;  %v1359_v56 = vpop.permute.xlu0 %1358 }
 0x2cc   : > { %v1967_v37 = vsel %vm1576_vm2, %v4768_v50, 0.0  ;;  %v4811_v4 = vpop.f32.mrf.mxu1 }
 0x2cd   : > { %v4773_v10 = vpop.eup %3352  ;;  %v1839_v52 = vmul.f32 1.442695, %v1772_v12  ;;  %3249 = vmatmul.msk.f32.gmra.mxu2 %vm711_vm1, %v4116_v22  ;;  %1968 = vadd.xlane.f32.xlu0 %v1967_v37  ;;  %v4794_v53 = vpop.f32.mrf.mxu3 }
 0x2ce   : > { %1632 = vmax.xlane.f32.xlu2 %v1631_v63  ;;  %v1979_v54 = vsel %vm1576_vm2, %v4773_v10, 0.0 }
 0x2cf   : > { %3354 = vpow2.f32 %v1839_v52  ;;  %1980 = vadd.xlane.f32.xlu1 %v1979_v54  ;;  %v1649_v54 = vsel %vm1576_vm2, %v4811_v4, -inf }
 0x2d0   : > { %v4783_v18 = vpop.permute.xlu2 %1257 }
 0x2d2   : > { %v1600_v5 = vpop.xlane.xlu1 %1599 }
 0x2d3   : > { %v1776_v45 = vsub.f32 %v4606_v29, %v1600_v5  ;;  %v1375_v3 = vpop.permute.xlu0 %1374  ;;  %v1643_v29 = vsel %vm1576_vm2, %v4794_v53, -inf }
 0x2d4   : > { %v4818_v5 = vpop.f32.mrf.mxu1 }
 0x2d5   : > { %v4788_v22 = vpop.eup %3354  ;;  %v1847_v0 = vmul.f32 1.442695, %v1776_v45  ;;  %3250 = vmatmul.msk.f32.gmra.mxu2 %vm711_vm1, %v4164_v11  ;;  %1635 = vmax.xlane.f32.xlu0 %v1634_v60  ;;  %v4805_v2 = vpop.f32.mrf.mxu3 }
 0x2d6   : > { %v1970_v35 = vsel %vm1576_vm2, %v4788_v22, 0.0  ;;  %v1646_v9 = vsel %vm1576_vm2, %v4805_v2, -inf }
 0x2d7   : > { %3356 = vpow2.f32 %v1847_v0  ;;  %1971 = vadd.xlane.f32.xlu1 %v1970_v35 }
 0x2d8   : > { %v1276_v44 = vpop.permute.xlu2 %1275 }
 0x2d9   : > { %3203 = vmatpush.xpose.msk.msrb.mxu3 %vm711_vm1, %v1276_v44 }
 0x2db   : > { %v1361_v15 = vpop.permute.xlu0 %1360 }
 0x2dd   : > { %v4799_v58 = vpop.eup %3356  ;;  %1644 = vmax.xlane.f32.xlu0 %v1643_v29  ;;  %v4828_v29 = vpop.f32.mrf.mxu1 }
 0x2de   : > { %v1982_v11 = vsel %vm1576_vm2, %v4799_v58, 0.0 }
 0x2df   : > { %1983 = vadd.xlane.f32.xlu2 %v1982_v11  ;;  %1638 = vmax.xlane.f32.xlu1 %v1637_v7 }
 0x2e5   : > { %1647 = vmax.xlane.f32.xlu0 %v1646_v9  ;;  %v5875_v9 = vld [vmem:[#allocation49_spill] sm:$0xff] }
 0x2e7   : > { %1641 = vmax.xlane.f32.xlu2 %v1640_v47  ;;  %v5876_v47 = vld [vmem:[#allocation25_spill] sm:$0xff] }
 0x2ea   : > { %v4813_v12 = vpop.permute.xlu1 %1255 }
 0x2eb   : > { %v1603_v37 = vpop.xlane.xlu0 %1602 }
 0x2ec   : > { %v1777_v52 = vsub.f32 %v4625_v33, %v1603_v37  ;;  %v5877_v37 = vld [vmem:[#allocation15_spill] sm:$0xff] }
 0x2ee   : > { %v1849_v63 = vmul.f32 1.442695, %v1777_v52  ;;  %v5879_v52 = vld [vmem:[#allocation12_spill] sm:$0xff] }
 0x2ef   : > { %1650 = vmax.xlane.f32.xlu2 %v1649_v54 }
 0x2f0   : > { %3358 = vpow2.f32 %v1849_v63  ;;  %v5880_v63 = vld [vmem:[#allocation47_spill] sm:$0xff] }
 0x2f3   : > { %v1274_v45 = vpop.permute.xlu1 %1273  ;;  %v1609_v60 = vpop.xlane.xlu0 %1608 }
 0x2f4   : > { %v1779_v0 = vsub.f32 %v4655_v31, %v1609_v60  ;;  %3204 = vmatpush.xpose.msk.msrb.mxu3 %vm711_vm1, %v1274_v45  ;;  %v4880_v45 = vpop.f32.mrf.mxu2  ;;  %v5883_v60 = vld [vmem:[#allocation6_spill] sm:$0xff] }
 0x2f6   : > { %v4822_v35 = vpop.eup %3358  ;;  %v1853_v44 = vmul.f32 1.442695, %v1779_v0  ;;  %v5884_v0 = vld [vmem:[#allocation45_spill] sm:$0xff] }
 0x2f7   : > { %v1985_v33 = vsel %vm1576_vm2, %v4822_v35, 0.0 }
 0x2f8   : > { %3360 = vpow2.f32 %v1853_v44  ;;  %3205 = vmatpush.xpose.msk.msrb.mxu3 %vm711_vm1, %v4746_v46  ;;  %1986 = vadd.xlane.f32.xlu0 %v1985_v33  ;;  %v1652_v46 = vsel %vm1576_vm2, %v4818_v5, -inf }
 0x2fb   : > { %v1377_v11 = vpop.permute.xlu1 %1376 }
 0x2fc   : > { %3206 = vmatpush.xpose.msk.msrb.mxu3 %vm711_vm1, %v4766_v42  ;;  %3225 = vmatpush.xpose.msk.msra.mxu1 %vm711_vm1, %v1377_v11  ;;  %v4847_v42 = vpop.f32.mrf.mxu1  ;;  %v5885_v11 = vld [vmem:[#allocation29_spill] sm:$0xff] }
 0x2fe   : > { %v4833_v31 = vpop.eup %3360 }
 0x2ff   : > { %v1991_v7 = vsel %vm1576_vm2, %v4833_v31, 0.0 }
 0x300   : > { %3207 = vmatpush.xpose.msk.msrb.mxu3 %vm711_vm1, %v4742_v8  ;;  %3226 = vmatpush.xpose.msk.msra.mxu1 %vm711_vm1, %v1375_v3  ;;  %v1658_v8 = vsel %vm1576_vm2, %v4847_v42, -inf }
 0x301   : > { %1653 = vmax.xlane.f32.xlu0 %v1652_v46  ;;  %1992 = vadd.xlane.f32.xlu2 %v1991_v7  ;;  %v5886_v7 = vld [vmem:[#allocation3_spill] sm:$0xff]  ;;  %v5888_v46 = vld [vmem:[#allocation44_spill] sm:$0xff] }
 0x303   : > { %3227 = vmatmul.msk.f32.vlgmr.msra.gmra.mxu1 %vm711_vm1, %v1359_v56 }
 0x304   : > { %2378 = vmatpush.msrb.mxu1 %v4046_v16  ;;  %3208 = vmatpush.xpose.msk.msrb.mxu3 %vm711_vm1, %v4658_v13  ;;  %v5868_v16 = vld [vmem:[#allocation30_spill] sm:$0xff]  ;;  %v4886_v33 = vpop.f32.mrf.mxu1 }
 0x305   : > { %v5870_v13 = vld [vmem:[#allocation22_spill] sm:$0xff] }
 0x306   : > { %2379 = vmatpush.msrb.mxu1 %v4066_v28  ;;  %v5869_v28 = vld [vmem:[#allocation28_spill] sm:$0xff] }
 0x308   : > { %2380 = vmatpush.msrb.mxu1 %v4026_v6  ;;  %3209 = vmatpush.xpose.msk.msrb.mxu3 %vm711_vm1, %v4633_v20  ;;  %v5871_v6 = vld [vmem:[#allocation27_spill] sm:$0xff]  ;;  %v5873_v20 = vld [vmem:[#allocation24_spill] sm:$0xff] }
 0x309   : > { %1659 = vmax.xlane.f32.xlu2 %v1658_v8 }
 0x30a   : > { %2381 = vmatpush.msrb.mxu1 %v4009_v61  ;;  %v5872_v61 = vld [vmem:[#allocation20_spill] sm:$0xff] }
 0x30b   : > { %3228 = vmatmul.msk.f32.gmra.mxu1 %vm711_vm1, %v1361_v15  ;;  %v5874_v15 = vld [vmem:[#allocation18_spill] sm:$0xff] }
 0x30c   : > { %2382 = vmatpush.msrb.mxu1 %v5868_v16  ;;  %3210 = vmatpush.xpose.msk.msrb.mxu3 %vm711_vm1, %v4698_v14  ;;  %v4895_v16 = vpop.xlane.xlu0 %1962 }
 0x30e   : > { %2383 = vmatpush.msrb.mxu1 %v5869_v28  ;;  %v5889_v28 = vld [vmem:[#allocation41_spill] sm:$0xff] }
 0x30f   : > { %3211 = vmatmul.msk.f32.vlgmr.msrb.gmra.mxu3 %vm711_vm1, %v4618_v34  ;;  %v5878_v34 = vld [vmem:[#allocation48_spill] sm:$0xff] }
 0x310   : > { %2313 = vmatpush.msra.mxu3 %v5870_v13  ;;  %2384 = vmatpush.msrb.mxu1 %v5871_v6  ;;  %v5890_v13 = vld [vmem:[#allocation43_spill] sm:$0xff]  ;;  %v5891_v6 = vld [vmem:[#allocation40_spill] sm:$0xff] }
 0x311   : > { %v1612_v56 = vpop.xlane.xlu2 %1611 }
 0x312   : > { %2314 = vmatpush.msra.mxu3 %v5872_v61  ;;  %2385 = vmatpush.msrb.mxu1 %v5873_v20  ;;  %v1780_v3 = vsub.f32 %v4682_v49, %v1612_v56  ;;  %v5882_v49 = vld [vmem:[#allocation46_spill] sm:$0xff]  ;;  %v5892_v56 = vld [vmem:[#allocation39_spill] sm:$0xff] }
 0x313   : > { %3229 = vmatmul.msk.f32.gmra.mxu1 %vm711_vm1, %v5876_v47  ;;  %v1661_v47 = vsel %vm1576_vm2, %v4886_v33, -inf }
 0x314   : > { %2573 = vmatpush.msra.mxu1 %v4401_v23  ;;  %2315 = vmatpush.msra.mxu3 %v5874_v15  ;;  %v1855_v14 = vmul.f32 1.442695, %v1780_v3  ;;  %v5881_v23 = vld [vmem:[#allocation9_spill] sm:$0xff]  ;;  %v4904_v3 = vpop.f32.mrf.mxu2 }
 0x316   : > { %2574 = vmatpush.msra.mxu1 %v5875_v9  ;;  %2316 = vmatpush.msra.mxu3 %v5877_v37  ;;  %3362 = vpow2.f32 %v1855_v14  ;;  %v5893_v9 = vld [vmem:[#allocation31_spill] sm:$0xff]  ;;  %v5894_v14 = vld [vmem:[#allocation38_spill] sm:$0xff]  ;;  %v4911_v37 = vpop.f32.mrf.mxu1 }
 0x317   : > { %3212 = vmatmul.msk.f32.gmra.mxu3 %vm711_vm1, %v4639_v55  ;;  %v5887_v55 = vld [vmem:[#allocation42_spill] sm:$0xff] }
 0x318   : > { %2575 = vmatpush.msra.mxu1 %v5878_v34  ;;  %2317 = vmatpush.msra.mxu3 %v5879_v52  ;;  %v5895_v34 = vld [vmem:[#allocation35_spill] sm:$0xff]  ;;  %v1627_v52 = vpop.xlane.xlu0 %1626 }
 0x319   : > { %v1615_v54 = vpop.xlane.xlu2 %1614 }
 0x31a   : > { %2576 = vmatpush.msra.mxu1 %v5880_v63  ;;  %2318 = vmatpush.msra.mxu3 %v5881_v23  ;;  %v5896_v23 = vld [vmem:[#allocation36_spill] sm:$0xff] }
 0x31b   : > { %3230 = vmatmul.msk.f32.gmra.mxu1 %vm711_vm1, %v5885_v11 }
 0x31c   : > { %2577 = vmatpush.msra.mxu1 %v5882_v49  ;;  %2319 = vmatpush.msra.mxu3 %v5883_v60  ;;  %v4884_v44 = vpop.eup %3362 }
 0x31d   : > { %v1994_v8 = vsel %vm1576_vm2, %v4884_v44, 0.0 }
 0x31e   : > { %2578 = vmatpush.msra.mxu1 %v5884_v0  ;;  %2320 = vmatpush.msra.mxu3 %v5886_v7  ;;  %v5897_v0 = vld [vmem:[#allocation34_spill] sm:$0xff]  ;;  %v1785_v7 = vsub.f32 %v4679_v24, %v1627_v52  ;;  %v1781_v24 = vsub.f32 %v4691_v17, %v1615_v54 }
 0x31f   : > { %1995 = vadd.xlane.f32.xlu0 %v1994_v8  ;;  %3213 = vmatmul.msk.f32.gmra.mxu3 %vm711_vm1, %v4712_v19 }
 0x320   : > { %2508 = vmatpush.msrb.mxu3 %v5887_v55  ;;  %2579 = vmatpush.msra.mxu1 %v5888_v46  ;;  %v5898_v55 = vld [vmem:[#allocation33_spill] sm:$0xff]  ;;  %v4927_v46 = vpop.f32.mrf.mxu2  ;;  %v4950_v54 = vpop.xlane.xlu0 %1977 }
 0x321   : > { %v1618_v61 = vpop.xlane.xlu2 %1617 }
 0x322   : > { %2509 = vmatpush.msrb.mxu3 %v5889_v28  ;;  %2580 = vmatpush.msra.mxu1 %v5890_v13  ;;  %v1782_v20 = vsub.f32 %v4701_v39, %v1618_v61  ;;  %v1865_v28 = vmul.f32 1.442695, %v1785_v7 }
 0x323   : > { %3231 = vmatmul.msk.f32.gmra.mxu1 %vm711_vm1, %v5893_v9 }
 0x324   : > { %2510 = vmatpush.msrb.mxu3 %v5891_v6  ;;  %v1859_v15 = vmul.f32 1.442695, %v1782_v20 }
 0x326   : > { %2511 = vmatpush.msrb.mxu3 %v5892_v56  ;;  %3364 = vpow2.f32 %v1859_v15  ;;  %v1606_v19 = vpop.xlane.xlu1 %1605  ;;  %v5899_v56 = vld [vmem:[#allocation32_spill] sm:$0xff]  ;;  %v1857_v15 = vmul.f32 1.442695, %v1781_v24 }
 0x327   : > { %1662 = vmax.xlane.f32.xlu0 %v1661_v47  ;;  %v1778_v39 = vsub.f32 %v4637_v30, %v1606_v19  ;;  %3214 = vmatmul.msk.f32.gmra.mxu3 %vm711_vm1, %v4736_v27 }
 0x328   : > { %2512 = vmatpush.msrb.mxu3 %v5894_v14  ;;  %v4948_v17 = vpop.f32.mrf.mxu2 }
 0x329   : > { %v1851_v63 = vmul.f32 1.442695, %v1778_v39  ;;  %v1621_v49 = vpop.xlane.xlu2 %1620 }
 0x32a   : > { %2513 = vmatpush.msrb.mxu3 %v5895_v34  ;;  %v1783_v60 = vsub.f32 %v4717_v21, %v1621_v49  ;;  %v4929_v21 = vpop.f32.mrf.mxu1  ;;  %v1655_v34 = vsel %vm1576_vm2, %v4828_v29, -inf }
 0x32b   : > { %3366 = vpow2.f32 %v1851_v63  ;;  %3232 = vmatmul.msk.f32.gmra.mxu1 %vm711_vm1, %v5898_v55  ;;  %v1667_v9 = vsel %vm1576_vm2, %v4929_v21, -inf  ;;  %v5900_v63 = vld [vmem:[#allocation37_spill] sm:$0xff] }
 0x32c   : > { %2514 = vmatpush.msrb.mxu3 %v5896_v23  ;;  %v4920_v11 = vpop.eup %3364  ;;  %v1861_v30 = vmul.f32 1.442695, %v1783_v60 }
 0x32d   : > { %v2000_v27 = vsel %vm1576_vm2, %v4920_v11, 0.0 }
 0x32e   : > { %2515 = vmatpush.msrb.mxu3 %v5897_v0  ;;  %3368 = vpow2.f32 %v1861_v30  ;;  %2001 = vadd.xlane.f32.xlu2 %v2000_v27  ;;  %v1624_v8 = vpop.xlane.xlu1 %1623 }
 0x32f   : > { %3215 = vmatmul.msk.f32.gmra.mxu3 %vm711_vm1, %v4725_v48  ;;  %3370 = vpow2.f32 %v1865_v28 }
 0x330   : > { %3372 = vpow2.f32 %v1857_v15  ;;  %v4974_v55 = vpop.f32.mrf.mxu2 }
 0x331   : > { %v4933_v13 = vpop.eup %3366  ;;  %v4936_v6 = vpop.xlane.xlu2 %1974 }
 0x332   : > { %v1988_v61 = vsel %vm1576_vm2, %v4933_v13, 0.0  ;;  %v4956_v39 = vpop.f32.mrf.mxu1 }
 0x333   : > { %1989 = vadd.xlane.f32.xlu1 %v1988_v61  ;;  %3233 = vmatmul.msk.f32.gmra.mxu1 %vm711_vm1, %v5899_v56  ;;  %v1670_v23 = vsel %vm1576_vm2, %v4956_v39, -inf }
 0x334   : > { %v4940_v20 = vpop.eup %3368 }
 0x335   : > { %v2003_v48 = vsel %vm1576_vm2, %v4940_v20, 0.0  ;;  %v4954_v19 = vpop.eup %3370 }
 0x336   : > { %2004 = vadd.xlane.f32.xlu0 %v2003_v48  ;;  %1668 = vmax.xlane.f32.xlu2 %v1667_v9  ;;  %v1630_v14 = vpop.xlane.xlu1 %1629  ;;  %v4967_v49 = vpop.eup %3372  ;;  %v1682_v9 = vsel %vm1576_vm2, %v4948_v17, -inf }
 0x337   : > { %3216 = vmatmul.msk.f32.gmra.mxu3 %vm711_vm1, %v4813_v12  ;;  %v1786_v52 = vsub.f32 %v4704_v32, %v1630_v14  ;;  %v2009_v12 = vsel %vm1576_vm2, %v4954_v19, 0.0  ;;  %v1784_v32 = vsub.f32 %v4734_v51, %v1624_v8  ;;  %v1997_v30 = vsel %vm1576_vm2, %v4967_v49, 0.0 }
 0x338   : > { %v1676_v51 = vsel %vm1576_vm2, %v4904_v3, -inf  ;;  %v4991_v48 = vpop.f32.mrf.mxu2 }
 0x339   : > { %v1966_v47 = vpop.xlane.xlu2 %1965  ;;  %v1867_v60 = vmul.f32 1.442695, %v1786_v52  ;;  %v1863_v28 = vmul.f32 1.442695, %v1784_v32 }
 0x33b   : > { %1656 = vmax.xlane.f32.xlu1 %v1655_v34  ;;  %3234 = vmatmul.msk.f32.gmra.mxu1 %vm711_vm1, %v5900_v63  ;;  %3374 = vpow2.f32 %v1867_v60  ;;  %v5902_v60 = vld [vmem:[#allocation17_spill] sm:$0xff] }
 0x33c   : > { %3376 = vrcp.f32 %v4895_v16  ;;  %v1664_v16 = vsel %vm1576_vm2, %v4911_v37, -inf }
 0x33d   : > { %3378 = vpow2.f32 %v1863_v28  ;;  %v5904_v28 = vld [vmem:[#allocation11_spill] sm:$0xff] }
 0x33e   : > { %1671 = vmax.xlane.f32.xlu2 %v1670_v23  ;;  %2010 = vadd.xlane.f32.xlu0 %v2009_v12 }
 0x33f   : > { %3217 = vmatmul.msk.f32.gmra.mxu3 %vm711_vm1, %v4783_v18  ;;  %v1673_v18 = vsel %vm1576_vm2, %v4880_v45, -inf }
 0x340   : > { %v1969_v0 = vpop.xlane.xlu0 %1968 }
 0x341   : > { %v1633_v7 = vpop.xlane.xlu2 %1632 }
 0x342   : > { %v1787_v27 = vsub.f32 %v4723_v57, %v1633_v7  ;;  %v4978_v24 = vpop.xlane.xlu1 %1980  ;;  %v4986_v57 = vpop.eup %3374 }
 0x343   : > { %1998 = vadd.xlane.f32.xlu1 %v1997_v30  ;;  %v3377_v56 = vpop.eup %3376 }
 0x344   : > { %v1869_v8 = vmul.f32 1.442695, %v1787_v27  ;;  %v2217_v14 = vmul.f32 %v3377_v56, %v4668_v40  ;;  %v4998_v34 = vpop.eup %3378  ;;  %v5903_v40 = vld [vmem:[#allocation13_spill] sm:$0xff]  ;;  %v5013_v27 = vpop.f32.mrf.mxu2  ;;  %v5906_v56 = vld [vmem:[#allocation4_spill] sm:$0xff] }
 0x346   : > { %1674 = vmax.xlane.f32.xlu2 %v1673_v18  ;;  %1677 = vmax.xlane.f32.xlu0 %v1676_v51  ;;  %3380 = vpow2.f32 %v1869_v8  ;;  %v5905_v8 = vld [vmem:[#allocation7_spill] sm:$0xff] }
 0x347   : > { %3218 = vmatmul.msk.f32.gmra.mxu3 %vm711_vm1, %v4762_v25  ;;  %3382 = vrcp.f32 %v1966_v47  ;;  %v2012_v25 = vsel %vm1576_vm2, %v4986_v57, 0.0  ;;  %v2006_v47 = vsel %vm1576_vm2, %v4998_v34, 0.0 }
 0x348   : > { %v1636_v61 = vpop.xlane.xlu0 %1635 }
 0x349   : > { %v1788_v15 = vsub.f32 %v4738_v38, %v1636_v61  ;;  %v5901_v38 = vld [vmem:[#allocation19_spill] sm:$0xff]  ;;  %v1679_v61 = vsel %vm1576_vm2, %v4927_v46, -inf }
 0x34a   : > { %v1972_v52 = vpop.xlane.xlu1 %1971 }
 0x34b   : > { %1665 = vmax.xlane.f32.xlu1 %v1664_v16  ;;  %v1871_v63 = vmul.f32 1.442695, %v1788_v15 }
 0x34c   : > { %v5002_v23 = vpop.eup %3380 }
 0x34d   : > { %v3383_v12 = vpop.eup %3382  ;;  %3384 = vpow2.f32 %v1871_v63  ;;  %v2015_v32 = vsel %vm1576_vm2, %v5002_v23, 0.0  ;;  %v5030_v63 = vpop.f32.mrf.mxu2 }
 0x34e   : > { %1683 = vmax.xlane.f32.xlu2 %v1682_v9  ;;  %2013 = vadd.xlane.f32.xlu0 %v2012_v25  ;;  %3386 = vrcp.f32 %v1969_v0  ;;  %v2218_v30 = vmul.f32 %v3383_v12, %v4753_v62 }
 0x34f   : > { %3251 = vmatmul.msk.f32.vlgmr.msra.gmra.mxu3 %vm1576_vm2, %v2217_v14  ;;  %3388 = vrcp.f32 %v1972_v52 }
 0x350   : > { %2703 = vmatpush.msra.mxu3 %v5901_v38  ;;  %v1645_v18 = vpop.xlane.xlu0 %1644 }
 0x352   : > { %2704 = vmatpush.msra.mxu3 %v5902_v60  ;;  %v5010_v7 = vpop.xlane.xlu2 %1983  ;;  %v1639_v51 = vpop.xlane.xlu1 %1638  ;;  %v1691_v60 = vsel %vm1576_vm2, %v5013_v27, -inf }
 0x353   : > { %2007 = vadd.xlane.f32.xlu1 %v2006_v47  ;;  %v5018_v0 = vpop.eup %3384  ;;  %v1789_v62 = vsub.f32 %v4757_v41, %v1639_v51  ;;  %v1688_v41 = vsel %vm1576_vm2, %v4991_v48, -inf }
 0x354   : > { %2705 = vmatpush.msra.mxu3 %v5903_v40  ;;  %v3387_v16 = vpop.eup %3386  ;;  %v2018_v15 = vsel %vm1576_vm2, %v5018_v0, 0.0 }
 0x355   : > { %v2219_v9 = vmul.f32 %v3387_v16, %v4768_v50  ;;  %v1873_v25 = vmul.f32 1.442695, %v1789_v62  ;;  %v3389_v52 = vpop.eup %3388  ;;  %v5907_v62 = vld [vmem:[#allocation16_spill] sm:$0xff] }
 0x356   : > { %2016 = vadd.xlane.f32.xlu0 %v2015_v32  ;;  %2706 = vmatpush.msra.mxu3 %v5904_v28  ;;  %v2220_v50 = vmul.f32 %v3389_v52, %v4788_v22  ;;  %v1791_v32 = vsub.f32 %v4794_v53, %v1645_v18 }
 0x357   : > { %3252 = vmatmul.msk.f32.gmra.mxu3 %vm1576_vm2, %v2218_v30  ;;  %3390 = vpow2.f32 %v1873_v25 }
 0x358   : > { %2707 = vmatpush.msra.mxu3 %v5905_v8  ;;  %v1648_v38 = vpop.xlane.xlu0 %1647  ;;  %3392 = vrcp.f32 %v4936_v6  ;;  %v1877_v28 = vmul.f32 1.442695, %v1791_v32  ;;  %v5914_v32 = vld [vmem:[#allocation21_spill] sm:$0xff] }
 0x35a   : > { %2708 = vmatpush.msra.mxu3 %v5906_v56  ;;  %v1642_v14 = vpop.xlane.xlu2 %1641 }
 0x35b   : > { %1680 = vmax.xlane.f32.xlu1 %v1679_v61  ;;  %v1694_v61 = vsel %vm1576_vm2, %v5030_v63, -inf }
 0x35c   : > { %2709 = vmatpush.msra.mxu3 %v4583_v59  ;;  %v1790_v59 = vsub.f32 %v4775_v43, %v1642_v14  ;;  %v5044_v43 = vpop.f32.mrf.mxu2 }
 0x35d   : > { %v5040_v12 = vpop.eup %3390  ;;  %v1745_v14 = vsel %vm1576_vm2, %v5044_v43, -inf }
 0x35e   : > { %2019 = vadd.xlane.f32.xlu0 %v2018_v15  ;;  %2710 = vmatpush.msra.mxu3 %v4564_v1  ;;  %v1685_v1 = vsel %vm1576_vm2, %v4974_v55, -inf  ;;  %v1875_v47 = vmul.f32 1.442695, %v1790_v59  ;;  %v3393_v40 = vpop.eup %3392  ;;  %v2021_v22 = vsel %vm1576_vm2, %v5040_v12, 0.0 }
 0x35f   : > { %3253 = vmatmul.msk.f32.gmra.mxu3 %vm1576_vm2, %v2219_v9  ;;  %v2221_v30 = vmul.f32 %v3393_v40, %v4740_v36  ;;  %v5913_v40 = vld [vmem:[#allocation23_spill] sm:$0xff] }
 0x360   : > { %3394 = vpow2.f32 %v1875_v47 }
 0x362   : > { %v1651_v36 = vpop.xlane.xlu2 %1650 }
 0x363   : > { %1689 = vmax.xlane.f32.xlu1 %v1688_v41  ;;  %v1793_v9 = vsub.f32 %v4811_v4, %v1651_v36  ;;  %v5911_v4 = vld [vmem:[#allocation5_spill] sm:$0xff] }
 0x364   : > { %v5058_v18 = vpop.f32.mrf.mxu2 }
 0x365   : > { %v1881_v52 = vmul.f32 1.442695, %v1793_v9 }
 0x366   : > { %1686 = vmax.xlane.f32.xlu0 %v1685_v1  ;;  %v5052_v51 = vpop.eup %3394 }
 0x367   : > { %3254 = vmatmul.msk.f32.gmra.mxu3 %vm1576_vm2, %v2220_v50  ;;  %v2024_v56 = vsel %vm1576_vm2, %v5052_v51, 0.0  ;;  %v5912_v50 = vld [vmem:[#allocation26_spill] sm:$0xff] }
 0x36b   : > { %1692 = vmax.xlane.f32.xlu1 %v1691_v60  ;;  %v1987_v6 = vpop.xlane.xlu0 %1986 }
 0x36c   : > { %3396 = vrcp.f32 %v1987_v6  ;;  %v5080_v1 = vpop.f32.mrf.mxu2 }
 0x36d   : > { %3398 = vrcp.f32 %v4950_v54  ;;  %v1792_v54 = vsub.f32 %v4805_v2, %v1648_v38  ;;  %v5908_v2 = vld [vmem:[#allocation14_spill] sm:$0xff]  ;;  %v5910_v38 = vld [vmem:[#allocation8_spill] sm:$0xff] }
 0x36e   : > { %2022 = vadd.xlane.f32.xlu0 %v2021_v22  ;;  %3400 = vpow2.f32 %v1877_v28 }
 0x36f   : > { %3255 = vmatmul.msk.f32.gmra.mxu3 %vm1576_vm2, %v2221_v30  ;;  %3402 = vrcp.f32 %v4978_v24  ;;  %v5909_v24 = vld [vmem:[#allocation10_spill] sm:$0xff] }
 0x372   : > { %v3397_v8 = vpop.eup %3396 }
 0x373   : > { %v3399_v16 = vpop.eup %3398  ;;  %v2225_v53 = vmul.f32 %v3397_v8, %v4822_v35  ;;  %1695 = vmax.xlane.f32.xlu1 %v1694_v61  ;;  %v1879_v35 = vmul.f32 1.442695, %v1792_v54  ;;  %v1751_v54 = vsel %vm1576_vm2, %v5080_v1, -inf }
 0x374   : > { %v2222_v15 = vmul.f32 %v3399_v16, %v4686_v26  ;;  %v5069_v25 = vpop.eup %3400  ;;  %v1654_v22 = vpop.xlane.xlu0 %1653 }
 0x375   : > { %3259 = vmatmul.msk.f32.vlgmr.msrb.gmra.mxu1 %vm1576_vm2, %v2225_v53  ;;  %v3403_v41 = vpop.eup %3402  ;;  %3404 = vpow2.f32 %v1879_v35  ;;  %v2027_v26 = vsel %vm1576_vm2, %v5069_v25, 0.0  ;;  %v1794_v61 = vsub.f32 %v4818_v5, %v1654_v22  ;;  %v5101_v16 = vpop.f32.mrf.mxu2 }
 0x376   : > { %2768 = vmatpush.msrb.mxu1 %v5907_v62  ;;  %2025 = vadd.xlane.f32.xlu0 %v2024_v56  ;;  %3406 = vrcp.f32 %v5010_v7  ;;  %v2223_v59 = vmul.f32 %v3403_v41, %v4773_v10  ;;  %v1748_v10 = vsel %vm1576_vm2, %v5058_v18, -inf  ;;  %v1993_v62 = vpop.xlane.xlu2 %1992 }
 0x377   : > { %3256 = vmatmul.msk.f32.gmra.mxu3 %vm1576_vm2, %v2222_v15  ;;  %3408 = vpow2.f32 %v1881_v52  ;;  %v1883_v36 = vmul.f32 1.442695, %v1794_v61  ;;  %v1754_v15 = vsel %vm1576_vm2, %v5101_v16, -inf }
 0x378   : > { %2769 = vmatpush.msrb.mxu1 %v5908_v2 }
 0x379   : > { %3410 = vpow2.f32 %v1883_v36 }
 0x37a   : > { %2770 = vmatpush.msrb.mxu1 %v5909_v24 }
 0x37b   : > { %1746 = vmax.xlane.f32.xlu1 %v1745_v14  ;;  %v5088_v60 = vpop.eup %3404 }
 0x37c   : > { %2771 = vmatpush.msrb.mxu1 %v5910_v38  ;;  %v3407_v6 = vpop.eup %3406  ;;  %v2030_v30 = vsel %vm1576_vm2, %v5088_v60, 0.0 }
 0x37d   : > { %v5096_v28 = vpop.eup %3408  ;;  %v2224_v8 = vmul.f32 %v3407_v6, %v4799_v58  ;;  %v5115_v35 = vpop.f32.mrf.mxu2 }
 0x37e   : > { %2772 = vmatpush.msrb.mxu1 %v5911_v4  ;;  %2028 = vadd.xlane.f32.xlu0 %v2027_v26  ;;  %v2033_v53 = vsel %vm1576_vm2, %v5096_v28, 0.0  ;;  %v1660_v14 = vpop.xlane.xlu2 %1659  ;;  %v1757_v38 = vsel %vm1576_vm2, %v5115_v35, -inf }
 0x37f   : > { %3257 = vmatmul.msk.f32.gmra.mxu3 %vm1576_vm2, %v2223_v59  ;;  %v5119_v2 = vpop.eup %3410 }
 0x380   : > { %2773 = vmatpush.msrb.mxu1 %v5912_v50  ;;  %v5084_v47 = vpop.f32.mrf.mxu1  ;;  %v2036_v41 = vsel %vm1576_vm2, %v5119_v2, 0.0 }
 0x381   : > { %v1721_v7 = vsel %vm1576_vm2, %v5084_v47, -inf }
 0x382   : > { %2774 = vmatpush.msrb.mxu1 %v5913_v40  ;;  %1722 = vmax.xlane.f32.xlu2 %v1721_v7 }
 0x383   : > { %1749 = vmax.xlane.f32.xlu1 %v1748_v10 }
 0x384   : > { %2775 = vmatpush.msrb.mxu1 %v5914_v32 }
 0x385   : > { %v5129_v4 = vpop.f32.mrf.mxu2 }
 0x386   : > { %2031 = vadd.xlane.f32.xlu0 %v2030_v30  ;;  %v1760_v10 = vsel %vm1576_vm2, %v5129_v4, -inf }
 0x387   : > { %3258 = vmatmul.msk.f32.gmra.mxu3 %vm1576_vm2, %v2224_v8 }
 0x388   : > { %v5107_v56 = vpop.f32.mrf.mxu1 }
 0x389   : > { %v1724_v58 = vsel %vm1576_vm2, %v5107_v56, -inf }
 0x38a   : > { %2034 = vadd.xlane.f32.xlu2 %v2033_v53 }
 0x38b   : > { %1752 = vmax.xlane.f32.xlu1 %v1751_v54 }
 0x38d   : > { %v5145_v30 = vpop.f32.mrf.mxu2 }
 0x38e   : > { %v1763_v53 = vsel %vm1576_vm2, %v5145_v30, -inf }
 0x390   : > { %v5131_v59 = vpop.f32.mrf.mxu1 }
 0x391   : > { %v1727_v7 = vsel %vm1576_vm2, %v5131_v59, -inf }
 0x392   : > { %v5111_v5 = vpop.f32.mrf.mxu3  ;;  %1725 = vmax.xlane.f32.xlu2 %v1724_v58  ;;  %v1996_v24 = vpop.xlane.xlu0 %1995 }
 0x393   : > { %1755 = vmax.xlane.f32.xlu1 %v1754_v15  ;;  %v1697_v9 = vsel %vm1576_vm2, %v5111_v5, -inf }
 0x394   : > { %1698 = vmax.xlane.f32.xlu0 %v1697_v9 }
 0x39a   : > { %v5123_v52 = vpop.f32.mrf.mxu3  ;;  %2037 = vadd.xlane.f32.xlu2 %v2036_v41  ;;  %v5137_v40 = vpop.xlane.xlu0 %1662 }
 0x39b   : > { %1758 = vmax.xlane.f32.xlu1 %v1757_v38  ;;  %v1700_v26 = vsel %vm1576_vm2, %v5123_v52, -inf }
 0x39c   : > { %1701 = vmax.xlane.f32.xlu0 %v1700_v26 }
 0x3a1   : > { %v5133_v50 = vpop.xlane.xlu2 %2001 }
 0x3a2   : > { %1728 = vmax.xlane.f32.xlu2 %v1727_v7  ;;  %v5141_v6 = vpop.f32.mrf.mxu3 }
 0x3a3   : > { %1761 = vmax.xlane.f32.xlu1 %v1760_v10  ;;  %v1703_v32 = vsel %vm1576_vm2, %v5141_v6, -inf }
 0x3a4   : > { %1704 = vmax.xlane.f32.xlu0 %v1703_v32 }
 0x3a6   : > { %v1990_v22 = vpop.xlane.xlu1 %1989 }
 0x3a7   : > { %3412 = vrcp.f32 %v1990_v22 }
 0x3a8   : > { %3414 = vrcp.f32 %v1993_v62 }
 0x3a9   : > { %v5147_v8 = vpop.xlane.xlu2 %1668  ;;  %v5149_v61 = vpop.xlane.xlu0 %2004 }
 0x3aa   : > { %v5153_v54 = vpop.f32.mrf.mxu3 }
 0x3ab   : > { %1764 = vmax.xlane.f32.xlu1 %v1763_v53  ;;  %v1706_v36 = vsel %vm1576_vm2, %v5153_v54, -inf  ;;  %v1796_v53 = vsub.f32 %v4847_v42, %v1660_v14 }
 0x3ac   : > { %1707 = vmax.xlane.f32.xlu0 %v1706_v36 }
 0x3ad   : > { %v3413_v58 = vpop.eup %3412  ;;  %v1887_v14 = vmul.f32 1.442695, %v1796_v53 }
 0x3ae   : > { %v1657_v15 = vpop.xlane.xlu1 %1656  ;;  %v2226_v9 = vmul.f32 %v3413_v58, %v4933_v13  ;;  %v3415_v10 = vpop.eup %3414 }
 0x3af   : > { %v1795_v41 = vsub.f32 %v4828_v29, %v1657_v15  ;;  %v2227_v13 = vmul.f32 %v3415_v10, %v4833_v31 }
 0x3b0   : > { %3260 = vmatmul.msk.f32.gmra.mxu1 %vm1576_vm2, %v2226_v9 }
 0x3b1   : > { %v1885_v38 = vmul.f32 1.442695, %v1795_v41  ;;  %v5160_v26 = vpop.xlane.xlu2 %1671  ;;  %v2011_v7 = vpop.xlane.xlu0 %2010 }
 0x3b2   : > { %v5162_v32 = vpop.f32.mrf.mxu3 }
 0x3b3   : > { %3416 = vpow2.f32 %v1885_v38  ;;  %v1709_v62 = vsel %vm1576_vm2, %v5162_v32, -inf }
 0x3b4   : > { %3418 = vrcp.f32 %v2011_v7  ;;  %1710 = vmax.xlane.f32.xlu0 %v1709_v62 }
 0x3b5   : > { %3420 = vrcp.f32 %v1996_v24 }
 0x3b6   : > { %v1999_v22 = vpop.xlane.xlu1 %1998 }
 0x3b7   : > { %3422 = vrcp.f32 %v1999_v22 }
 0x3b8   : > { %3261 = vmatmul.msk.f32.gmra.mxu1 %vm1576_vm2, %v2227_v13 }
 0x3b9   : > { %v5168_v29 = vpop.eup %3416  ;;  %v1675_v36 = vpop.xlane.xlu2 %1674 }
 0x3ba   : > { %v3419_v58 = vpop.eup %3418  ;;  %v1801_v15 = vsub.f32 %v4880_v45, %v1675_v36  ;;  %v1678_v9 = vpop.xlane.xlu0 %1677  ;;  %v2039_v41 = vsel %vm1576_vm2, %v5168_v29, 0.0 }
 0x3bb   : > { %v3421_v38 = vpop.eup %3420  ;;  %v2233_v24 = vmul.f32 %v3419_v58, %v4954_v19  ;;  %v1802_v7 = vsub.f32 %v4904_v3, %v1678_v9  ;;  %v5176_v31 = vpop.f32.mrf.mxu3  ;;  %2040 = vadd.xlane.f32.xlu2 %v2039_v41 }
 0x3bc   : > { %v1897_v10 = vmul.f32 1.442695, %v1801_v15  ;;  %v1712_v42 = vsel %vm1576_vm2, %v5176_v31, -inf  ;;  %v2228_v62 = vmul.f32 %v3421_v38, %v4884_v44  ;;  %v5184_v19 = vpop.f32.mrf.mxu1 }
 0x3bd   : > { %3267 = vmatmul.msk.f32.vlgmr.msra.gmra.mxu2 %vm1576_vm2, %v2233_v24  ;;  %1713 = vmax.xlane.f32.xlu0 %v1712_v42  ;;  %v1899_v3 = vmul.f32 1.442695, %v1802_v7  ;;  %v1730_v36 = vsel %vm1576_vm2, %v5184_v19, -inf  ;;  %v3423_v53 = vpop.eup %3422  ;;  %v1797_v7 = vsub.f32 %v4886_v33, %v5137_v40 }
 0x3be   : > { %3424 = vpow2.f32 %v1897_v10  ;;  %v5181_v45 = vpop.xlane.xlu1 %1665  ;;  %v2229_v41 = vmul.f32 %v3423_v53, %v4967_v49 }
 0x3bf   : > { %3426 = vpow2.f32 %v1887_v14 }
 0x3c0   : > { %3262 = vmatmul.msk.f32.gmra.mxu1 %vm1576_vm2, %v2228_v62  ;;  %3428 = vpow2.f32 %v1899_v3 }
 0x3c1   : > { %v1684_v40 = vpop.xlane.xlu2 %1683 }
 0x3c2   : > { %v2014_v13 = vpop.xlane.xlu0 %2013 }
 0x3c3   : > { %v5189_v22 = vpop.f32.mrf.mxu3  ;;  %1731 = vmax.xlane.f32.xlu2 %v1730_v36  ;;  %3430 = vrcp.f32 %v2014_v13  ;;  %v1889_v36 = vmul.f32 1.442695, %v1797_v7  ;;  %v5223_v7 = vstv %s2801_s6 }
 0x3c4   : > { %v5191_v58 = vpop.eup %3424  ;;  %v1715_v44 = vsel %vm1576_vm2, %v5189_v22, -inf  ;;  %3432 = vrcp.f32 %v5133_v50  ;;  %v5211_v3 = vpop.f32.mrf.mxu1 }
 0x3c5   : > { %1716 = vmax.xlane.f32.xlu0 %v1715_v44  ;;  %v2057_v15 = vsel %vm1576_vm2, %v5191_v58, 0.0  ;;  %v5199_v38 = vpop.eup %3426 }
 0x3c6   : > { %v2008_v9 = vpop.xlane.xlu1 %2007  ;;  %2058 = vadd.xlane.f32.xlu1 %v2057_v15  ;;  %v5202_v24 = vpop.eup %3428  ;;  %v2042_v42 = vsel %vm1576_vm2, %v5199_v38, 0.0 }
 0x3c7   : > { %v2060_v33 = vsel %vm1576_vm2, %v5202_v24, 0.0 }
 0x3c8   : > { %3263 = vmatmul.msk.f32.gmra.mxu1 %vm1576_vm2, %v2229_v41 }
 0x3c9   : > { %v3431_v10 = vpop.eup %3430 }
 0x3ca   : > { %v2017_v50 = vpop.xlane.xlu0 %2016  ;;  %v3433_v14 = vpop.eup %3432  ;;  %v2234_v49 = vmul.f32 %v3431_v10, %v4986_v57 }
 0x3cb   : > { %3434 = vrcp.f32 %v2017_v50  ;;  %v5208_v62 = vpop.f32.mrf.mxu3  ;;  %2043 = vadd.xlane.f32.xlu2 %v2042_v42  ;;  %v2230_v44 = vmul.f32 %v3433_v14, %v4920_v11  ;;  %v1733_v50 = vsel %vm1576_vm2, %v5211_v3, -inf }
 0x3cc   : > { %v1718_v13 = vsel %vm1576_vm2, %v5208_v62, -inf  ;;  %3436 = vrcp.f32 %v5149_v61  ;;  %3268 = vmatmul.msk.f32.gmra.mxu2 %vm1576_vm2, %v2234_v49  ;;  %v1804_v61 = vsub.f32 %v4948_v17, %v1684_v40  ;;  %v5237_v49 = vpop.f32.mrf.mxu1 }
 0x3cd   : > { %1719 = vmax.xlane.f32.xlu0 %v1718_v13  ;;  %3438 = vpow2.f32 %v1889_v36 }
 0x3ce   : > { %v1681_v53 = vpop.xlane.xlu1 %1680  ;;  %2061 = vadd.xlane.f32.xlu1 %v2060_v33  ;;  %v1903_v17 = vmul.f32 1.442695, %v1804_v61 }
 0x3cf   : > { %v1803_v57 = vsub.f32 %v4927_v46, %v1681_v53  ;;  %v1798_v53 = vsub.f32 %v4911_v37, %v5181_v45 }
 0x3d0   : > { %3264 = vmatmul.msk.f32.gmra.mxu1 %vm1576_vm2, %v2230_v44 }
 0x3d1   : > { %v3435_v15 = vpop.eup %3434  ;;  %v1901_v41 = vmul.f32 1.442695, %v1803_v57 }
 0x3d2   : > { %v2020_v10 = vpop.xlane.xlu0 %2019  ;;  %v2235_v42 = vmul.f32 %v3435_v15, %v5002_v23  ;;  %v3437_v11 = vpop.eup %3436  ;;  %v3599_v23 = vld [vmem:[%s3723_s25] sm:$0xff] }
 0x3d3   : > { %3440 = vpow2.f32 %v1901_v41  ;;  %v2322_v46 = vpop.f32.mrf.mxu3  ;;  %1734 = vmax.xlane.f32.xlu2 %v1733_v50  ;;  %v2231_v36 = vmul.f32 %v3437_v11, %v4940_v20  ;;  %v5241_v33 = vpop.eup %3438  ;;  %v3600_v11 = vld [vmem:[%s3723_s25 + $0x8] sm:$0xff] }
 0x3d4   : > { %3442 = vrcp.f32 %v2020_v10  ;;  %v2803_v14 = vmul.f32 %v5223_v7, %v2322_v46  ;;  %3269 = vmatmul.msk.f32.gmra.mxu2 %vm1576_vm2, %v2235_v42  ;;  %v2045_v15 = vsel %vm1576_vm2, %v5241_v33, 0.0  ;;  %v1891_v10 = vmul.f32 1.442695, %v1798_v53 }
 0x3d5   : > { %3444 = vrcp.f32 %v2008_v9 }
 0x3d6   : > { %v2867_v13 = vadd.f32 %v3599_v23, %v2803_v14  ;;  %v1690_v40 = vpop.xlane.xlu1 %1689  ;;  %3446 = vpow2.f32 %v1903_v17  ;;  %v5262_v23 = vpop.f32.mrf.mxu1 }
 0x3d7   : > { %3448 = vpow2.f32 %v1891_v10 }
 0x3d8   : > { %2931 = vst.msk [vmem:[%s5234_s9] sm:$0xff] %vm269_vm0, %v2867_v13  ;;  %3265 = vmatmul.msk.f32.gmra.mxu1 %vm1576_vm2, %v2231_v36  ;;  %v1736_v36 = vsel %vm1576_vm2, %v5237_v49, -inf }
 0x3d9   : > { %v5248_v44 = vpop.eup %3440 }
 0x3da   : > { %v3443_v9 = vpop.eup %3442  ;;  %v1687_v57 = vpop.xlane.xlu0 %1686  ;;  %v2063_v20 = vsel %vm1576_vm2, %v5248_v44, 0.0 }
 0x3db   : > { %v3445_v61 = vpop.eup %3444  ;;  %v1805_v37 = vsub.f32 %v4974_v55, %v1687_v57  ;;  %v2325_v45 = vpop.f32.mrf.mxu3  ;;  %2046 = vadd.xlane.f32.xlu2 %v2045_v15  ;;  %2064 = vadd.xlane.f32.xlu1 %v2063_v20  ;;  %v2236_v41 = vmul.f32 %v3443_v9, %v5018_v0  ;;  %v1806_v55 = vsub.f32 %v4991_v48, %v1690_v40  ;;  %v3601_v48 = vld [vmem:[%s3723_s25 + $0x10] sm:$0xff] }
 0x3dc   : > { %v2804_v50 = vmul.f32 %v5223_v7, %v2325_v45  ;;  %v2232_v14 = vmul.f32 %v3445_v61, %v4998_v34  ;;  %v5260_v17 = vpop.eup %3446  ;;  %v1799_v61 = vsub.f32 %v4929_v21, %v5147_v8 }
 0x3dd   : > { %v1905_v42 = vmul.f32 1.442695, %v1805_v37  ;;  %3270 = vmatmul.msk.f32.gmra.mxu2 %vm1576_vm2, %v2236_v41  ;;  %v2066_v34 = vsel %vm1576_vm2, %v5260_v17, 0.0  ;;  %v1907_v57 = vmul.f32 1.442695, %v1806_v55  ;;  %v5273_v15 = vpop.eup %3448  ;;  %v3602_v55 = vld [vmem:[%s3723_s25 + $0x18] sm:$0xff] }
 0x3de   : > { %v2868_v46 = vadd.f32 %v3600_v11, %v2804_v50  ;;  %v1693_v0 = vpop.xlane.xlu1 %1692  ;;  %v5283_v41 = vpop.f32.mrf.mxu1  ;;  %v2048_v50 = vsel %vm1576_vm2, %v5273_v15, 0.0  ;;  %v1893_v8 = vmul.f32 1.442695, %v1799_v61 }
 0x3df   : > { %3450 = vpow2.f32 %v1905_v42  ;;  %v1807_v37 = vsub.f32 %v5013_v27, %v1693_v0 }
 0x3e0   : > { %2932 = vst.msk [vmem:[%s5234_s9 + $0x8] sm:$0xff] %vm269_vm0, %v2868_v46  ;;  %3266 = vmatmul.msk.f32.gmra.mxu1 %vm1576_vm2, %v2232_v14 }
 0x3e1   : > { %v1909_v14 = vmul.f32 1.442695, %v1807_v37 }
 0x3e2   : > { %v2023_v13 = vpop.xlane.xlu0 %2022 }
 0x3e3   : > { %v2328_v53 = vpop.f32.mrf.mxu3  ;;  %1737 = vmax.xlane.f32.xlu2 %v1736_v36  ;;  %2067 = vadd.xlane.f32.xlu1 %v2066_v34  ;;  %3452 = vrcp.f32 %v2023_v13 }
 0x3e4   : > { %v2805_v9 = vmul.f32 %v5223_v7, %v2328_v53  ;;  %3454 = vpow2.f32 %v1907_v57 }
 0x3e5   : > { %v5276_v20 = vpop.eup %3450 }
 0x3e6   : > { %v2869_v40 = vadd.f32 %v3601_v48, %v2805_v9  ;;  %v2069_v42 = vsel %vm1576_vm2, %v5276_v20, 0.0  ;;  %v1696_v11 = vpop.xlane.xlu1 %1695  ;;  %v1739_v9 = vsel %vm1576_vm2, %v5262_v23, -inf }
 0x3e7   : > { %v1808_v36 = vsub.f32 %v5030_v63, %v1696_v11 }
 0x3e8   : > { %2933 = vst.msk [vmem:[%s5234_s9 + $0x10] sm:$0xff] %vm269_vm0, %v2869_v40 }
 0x3e9   : > { %v3453_v45 = vpop.eup %3452  ;;  %v1911_v37 = vmul.f32 1.442695, %v1808_v36 }
 0x3ea   : > { %v2026_v10 = vpop.xlane.xlu0 %2025  ;;  %v2237_v21 = vmul.f32 %v3453_v45, %v5040_v12  ;;  %v5293_v13 = vpop.eup %3454 }
 0x3eb   : > { %v2331_v46 = vpop.f32.mrf.mxu3  ;;  %2049 = vadd.xlane.f32.xlu2 %v2048_v50  ;;  %2070 = vadd.xlane.f32.xlu1 %v2069_v42  ;;  %3456 = vrcp.f32 %v2026_v10  ;;  %v2072_v57 = vsel %vm1576_vm2, %v5293_v13, 0.0  ;;  %v3603_v10 = vld [vmem:[%s3723_s25 + $0x40] sm:$0xff] }
 0x3ec   : > { %v2806_v27 = vmul.f32 %v5223_v7, %v2331_v46  ;;  %3271 = vmatmul.msk.f32.gmra.mxu2 %vm1576_vm2, %v2237_v21  ;;  %3458 = vpow2.f32 %v1893_v8  ;;  %v3604_v46 = vld [vmem:[%s3723_s25 + $0x20] sm:$0xff] }
 0x3ed   : > { %3460 = vpow2.f32 %v1909_v14 }
 0x3ee   : > { %v2870_v0 = vadd.f32 %v3602_v55, %v2806_v27  ;;  %v1747_v45 = vpop.xlane.xlu1 %1746 }
 0x3ef   : > { %v1825_v27 = vsub.f32 %v5044_v43, %v1747_v45 }
 0x3f0   : > { %2934 = vst.msk [vmem:[%s5234_s9 + $0x18] sm:$0xff] %vm269_vm0, %v2870_v0 }
 0x3f1   : > { %v3457_v34 = vpop.eup %3456 }
 0x3f2   : > { %v2029_v12 = vpop.xlane.xlu0 %2028  ;;  %v2387_v53 = vpop.f32.mrf.mxu1  ;;  %v2238_v61 = vmul.f32 %v3457_v34, %v5052_v51  ;;  %v1800_v51 = vsub.f32 %v4956_v39, %v5160_v26 }
 0x3f3   : > { %v2334_v48 = vpop.f32.mrf.mxu3  ;;  %v2811_v40 = vmul.f32 %v5223_v7, %v2387_v53  ;;  %1740 = vmax.xlane.f32.xlu2 %v1739_v9  ;;  %2073 = vadd.xlane.f32.xlu1 %v2072_v57  ;;  %3462 = vrcp.f32 %v2029_v12  ;;  %v5307_v11 = vpop.eup %3458  ;;  %v1945_v53 = vmul.f32 1.442695, %v1825_v27  ;;  %v3605_v9 = vld [vmem:[%s3723_s25 + $0x28] sm:$0xff]  ;;  %v3606_v27 = vld [vmem:[%s3723_s25 + $0x30] sm:$0xff] }
 0x3f4   : > { %v2807_v63 = vmul.f32 %v5223_v7, %v2334_v48  ;;  %3272 = vmatmul.msk.f32.gmra.mxu2 %vm1576_vm2, %v2238_v61  ;;  %v5310_v8 = vpop.eup %3460  ;;  %3464 = vpow2.f32 %v1911_v37  ;;  %v2051_v0 = vsel %vm1576_vm2, %v5307_v11, 0.0  ;;  %v1895_v26 = vmul.f32 1.442695, %v1800_v51 }
 0x3f5   : > { %v2875_v50 = vadd.f32 %v3603_v10, %v2811_v40  ;;  %v1723_v42 = vpop.xlane.xlu2 %1722  ;;  %v2075_v36 = vsel %vm1576_vm2, %v5310_v8, 0.0 }
 0x3f6   : > { %v2871_v21 = vadd.f32 %v3604_v46, %v2807_v63  ;;  %v1750_v40 = vpop.xlane.xlu1 %1749  ;;  %v1742_v63 = vsel %vm1576_vm2, %v5283_v41, -inf }
 0x3f7   : > { %2939 = vst.msk [vmem:[%s5234_s9 + $0x40] sm:$0xff] %vm269_vm0, %v2875_v50 }
 0x3f8   : > { %2935 = vst.msk [vmem:[%s5234_s9 + $0x20] sm:$0xff] %vm269_vm0, %v2871_v21 }
 0x3f9   : > { %v3463_v14 = vpop.eup %3462 }
 0x3fa   : > { %v2032_v55 = vpop.xlane.xlu0 %2031  ;;  %v2239_v39 = vmul.f32 %v3463_v14, %v5069_v25  ;;  %v5327_v48 = vpop.eup %3464  ;;  %v1817_v25 = vsub.f32 %v5084_v47, %v1723_v42 }
 0x3fb   : > { %v2337_v34 = vpop.f32.mrf.mxu3  ;;  %2052 = vadd.xlane.f32.xlu2 %v2051_v0  ;;  %2076 = vadd.xlane.f32.xlu1 %v2075_v36  ;;  %3466 = vrcp.f32 %v2032_v55  ;;  %v2078_v37 = vsel %vm1576_vm2, %v5327_v48, 0.0 }
 0x3fc   : > { %v2808_v12 = vmul.f32 %v5223_v7, %v2337_v34  ;;  %3273 = vmatmul.msk.f32.gmra.mxu2 %vm1576_vm2, %v2239_v39  ;;  %v1929_v21 = vmul.f32 1.442695, %v1817_v25  ;;  %v5358_v25 = vpop.f32.mrf.mxu2 }
 0x3fd   : > { %v2035_v43 = vpop.xlane.xlu2 %2034 }
 0x3fe   : > { %v2872_v57 = vadd.f32 %v3605_v9, %v2808_v12  ;;  %3468 = vrcp.f32 %v2035_v43  ;;  %v1753_v36 = vpop.xlane.xlu1 %1752  ;;  %v3607_v9 = vld [vmem:[%s3723_s25 + $0x38] sm:$0xff] }
 0x3ff   : > { %3470 = vpow2.f32 %v1895_v26 }
 0x400   : > { %2936 = vst.msk [vmem:[%s5234_s9 + $0x28] sm:$0xff] %vm269_vm0, %v2872_v57  ;;  %3472 = vpow2.f32 %v1945_v53 }
 0x401   : > { %v3467_v61 = vpop.eup %3466  ;;  %3474 = vpow2.f32 %v1929_v21 }
 0x402   : > { %v2240_v10 = vmul.f32 %v3467_v61, %v5088_v60 }
 0x403   : > { %v2340_v45 = vpop.f32.mrf.mxu3  ;;  %1743 = vmax.xlane.f32.xlu2 %v1742_v63  ;;  %2079 = vadd.xlane.f32.xlu1 %v2078_v37  ;;  %v1826_v37 = vsub.f32 %v5058_v18, %v1750_v40 }
 0x404   : > { %v3469_v50 = vpop.eup %3468  ;;  %v2809_v46 = vmul.f32 %v5223_v7, %v2340_v45  ;;  %3274 = vmatmul.msk.f32.gmra.mxu2 %vm1576_vm2, %v2240_v10 }
 0x405   : > { %v2241_v51 = vmul.f32 %v3469_v50, %v5096_v28  ;;  %v1726_v47 = vpop.xlane.xlu2 %1725  ;;  %v5340_v42 = vpop.eup %3470  ;;  %v1947_v18 = vmul.f32 1.442695, %v1826_v37 }
 0x406   : > { %v2873_v14 = vadd.f32 %v3606_v27, %v2809_v46  ;;  %v5343_v55 = vpop.eup %3472  ;;  %v1818_v28 = vsub.f32 %v5107_v56, %v1726_v47  ;;  %v2054_v39 = vsel %vm1576_vm2, %v5340_v42, 0.0  ;;  %v1766_v46 = vsel %vm1576_vm2, %v5358_v25, -inf  ;;  %v1756_v21 = vpop.xlane.xlu1 %1755 }
 0x407   : > { %3275 = vmatmul.msk.f32.vlgmr.msrb.gmra.mxu3 %vm1576_vm2, %v2241_v51  ;;  %v1699_v0 = vpop.xlane.xlu0 %1698  ;;  %v2129_v26 = vsel %vm1576_vm2, %v5343_v55, 0.0  ;;  %v5356_v56 = vpop.eup %3474 }
 0x408   : > { %2937 = vst.msk [vmem:[%s5234_s9 + $0x30] sm:$0xff] %vm269_vm0, %v2873_v14  ;;  %v1809_v60 = vsub.f32 %v5111_v5, %v1699_v0  ;;  %v1931_v43 = vmul.f32 1.442695, %v1818_v28  ;;  %v2105_v50 = vsel %vm1576_vm2, %v5356_v56, 0.0 }
 0x40a   : > { %v1913_v34 = vmul.f32 1.442695, %v1809_v60 }
 0x40b   : > { %v2343_v12 = vpop.f32.mrf.mxu3  ;;  %2055 = vadd.xlane.f32.xlu2 %v2054_v39  ;;  %2130 = vadd.xlane.f32.xlu1 %v2129_v26  ;;  %v1827_v39 = vsub.f32 %v5080_v1, %v1753_v36 }
 0x40c   : > { %3476 = vpow2.f32 %v1913_v34  ;;  %v2810_v53 = vmul.f32 %v5223_v7, %v2343_v12 }
 0x40d   : > { %v2038_v5 = vpop.xlane.xlu2 %2037 }
 0x40e   : > { %v2874_v57 = vadd.f32 %v3607_v9, %v2810_v53  ;;  %3478 = vrcp.f32 %v2038_v5  ;;  %v1759_v12 = vpop.xlane.xlu1 %1758  ;;  %v1949_v53 = vmul.f32 1.442695, %v1827_v39  ;;  %v1828_v9 = vsub.f32 %v5101_v16, %v1756_v21 }
 0x40f   : > { %v1702_v61 = vpop.xlane.xlu0 %1701  ;;  %3480 = vpow2.f32 %v1931_v43  ;;  %v1829_v21 = vsub.f32 %v5115_v35, %v1759_v12 }
 0x410   : > { %2938 = vst.msk [vmem:[%s5234_s9 + $0x38] sm:$0xff] %vm269_vm0, %v2874_v57  ;;  %v1810_v63 = vsub.f32 %v5123_v52, %v1702_v61 }
 0x412   : > { %v5364_v45 = vpop.eup %3476  ;;  %v1915_v10 = vmul.f32 1.442695, %v1810_v63 }
 0x413   : > { %2106 = vadd.xlane.f32.xlu2 %v2105_v50  ;;  %1767 = vmax.xlane.f32.xlu1 %v1766_v46  ;;  %v2081_v51 = vsel %vm1576_vm2, %v5364_v45, 0.0 }
 0x414   : > { %v3479_v47 = vpop.eup %3478  ;;  %3482 = vpow2.f32 %v1915_v10  ;;  %2082 = vadd.xlane.f32.xlu0 %v2081_v51 }
 0x415   : > { %v1729_v52 = vpop.xlane.xlu2 %1728  ;;  %v2242_v40 = vmul.f32 %v3479_v47, %v5119_v2  ;;  %v5374_v14 = vpop.eup %3480  ;;  %3484 = vpow2.f32 %v1947_v18 }
 0x416   : > { %v1819_v27 = vsub.f32 %v5131_v59, %v1729_v52  ;;  %v2108_v26 = vsel %vm1576_vm2, %v5374_v14, 0.0  ;;  %v1762_v10 = vpop.xlane.xlu1 %1761 }
 0x417   : > { %3276 = vmatmul.msk.f32.gmra.mxu3 %vm1576_vm2, %v2242_v40  ;;  %v1705_v60 = vpop.xlane.xlu0 %1704 }
 0x418   : > { %v1933_v0 = vmul.f32 1.442695, %v1819_v27  ;;  %v1811_v28 = vsub.f32 %v5141_v6, %v1705_v60  ;;  %v1953_v27 = vmul.f32 1.442695, %v1829_v21  ;;  %v3608_v60 = vld [vmem:[%s3723_s25 + $0x48] sm:$0xff] }
 0x41a   : > { %v5378_v34 = vpop.eup %3482  ;;  %3486 = vpow2.f32 %v1933_v0  ;;  %v1917_v2 = vmul.f32 1.442695, %v1811_v28 }
 0x41b   : > { %2109 = vadd.xlane.f32.xlu2 %v2108_v26  ;;  %v2084_v59 = vsel %vm1576_vm2, %v5378_v34, 0.0  ;;  %v5385_v43 = vpop.eup %3484  ;;  %v1830_v26 = vsub.f32 %v5129_v4, %v1762_v10  ;;  %v3609_v10 = vld [vmem:[%s3723_s25 + $0x50] sm:$0xff] }
 0x41c   : > { %2085 = vadd.xlane.f32.xlu0 %v2084_v59  ;;  %3488 = vpow2.f32 %v1917_v2  ;;  %v2132_v63 = vsel %vm1576_vm2, %v5385_v43, 0.0 }
 0x41d   : > { %3490 = vpow2.f32 %v1949_v53 }
 0x41e   : > { %v1765_v2 = vpop.xlane.xlu1 %1764 }
 0x41f   : > { %v1708_v5 = vpop.xlane.xlu0 %1707  ;;  %v1831_v21 = vsub.f32 %v5145_v30, %v1765_v2 }
 0x420   : > { %v5387_v6 = vpop.eup %3486  ;;  %v1812_v1 = vsub.f32 %v5153_v54, %v1708_v5  ;;  %v1951_v54 = vmul.f32 1.442695, %v1828_v9  ;;  %v1955_v9 = vmul.f32 1.442695, %v1830_v26 }
 0x421   : > { %v2111_v36 = vsel %vm1576_vm2, %v5387_v6, 0.0  ;;  %v1957_v30 = vmul.f32 1.442695, %v1831_v21 }
 0x422   : > { %2112 = vadd.xlane.f32.xlu1 %v2111_v36  ;;  %v5393_v57 = vpop.eup %3488  ;;  %v1919_v61 = vmul.f32 1.442695, %v1812_v1 }
 0x423   : > { %v2087_v37 = vsel %vm1576_vm2, %v5393_v57, 0.0  ;;  %v5399_v50 = vpop.eup %3490 }
 0x424   : > { %2133 = vadd.xlane.f32.xlu0 %v2132_v63  ;;  %3492 = vpow2.f32 %v1919_v61  ;;  %2088 = vadd.xlane.f32.xlu2 %v2087_v37  ;;  %v2135_v18 = vsel %vm1576_vm2, %v5399_v50, 0.0 }
 0x425   : > { %3494 = vpow2.f32 %v1951_v54 }
 0x427   : > { %v1711_v46 = vpop.xlane.xlu0 %1710 }
 0x428   : > { %v1813_v16 = vsub.f32 %v5162_v32, %v1711_v46 }
 0x42a   : > { %v5403_v51 = vpop.eup %3492  ;;  %v1921_v47 = vmul.f32 1.442695, %v1813_v16 }
 0x42b   : > { %v2090_v52 = vsel %vm1576_vm2, %v5403_v51, 0.0  ;;  %v5410_v35 = vpop.eup %3494 }
 0x42c   : > { %2136 = vadd.xlane.f32.xlu0 %v2135_v18  ;;  %3496 = vpow2.f32 %v1921_v47  ;;  %2091 = vadd.xlane.f32.xlu2 %v2090_v52  ;;  %v2138_v5 = vsel %vm1576_vm2, %v5410_v35, 0.0 }
 0x42d   : > { %v2390_v40 = vpop.f32.mrf.mxu1 }
 0x42e   : > { %v2812_v32 = vmul.f32 %v5223_v7, %v2390_v40  ;;  %v2041_v0 = vpop.xlane.xlu2 %2040 }
 0x42f   : > { %3498 = vrcp.f32 %v2041_v0 }
 0x430   : > { %v2876_v28 = vadd.f32 %v3608_v60, %v2812_v32  ;;  %v1714_v39 = vpop.xlane.xlu0 %1713  ;;  %3500 = vpow2.f32 %v1953_v27 }
 0x431   : > { %v1814_v59 = vsub.f32 %v5176_v31, %v1714_v39  ;;  %v3610_v39 = vld [vmem:[%s3723_s25 + $0x58] sm:$0xff] }
 0x432   : > { %2940 = vst.msk [vmem:[%s5234_s9 + $0x48] sm:$0xff] %vm269_vm0, %v2876_v28  ;;  %v5417_v12 = vpop.eup %3496 }
 0x433   : > { %v1923_v53 = vmul.f32 1.442695, %v1814_v59  ;;  %v2093_v1 = vsel %vm1576_vm2, %v5417_v12, 0.0 }
 0x434   : > { %2139 = vadd.xlane.f32.xlu0 %v2138_v5  ;;  %2094 = vadd.xlane.f32.xlu2 %v2093_v1 }
 0x435   : > { %v3499_v36 = vpop.eup %3498  ;;  %3502 = vpow2.f32 %v1923_v53  ;;  %v2393_v4 = vpop.f32.mrf.mxu1 }
 0x436   : > { %v2813_v31 = vmul.f32 %v5223_v7, %v2393_v4  ;;  %v1732_v61 = vpop.xlane.xlu2 %1731  ;;  %v2243_v63 = vmul.f32 %v3499_v36, %v5168_v29  ;;  %v5426_v54 = vpop.eup %3500  ;;  %3504 = vpow2.f32 %v1955_v9 }
 0x437   : > { %v1820_v37 = vsub.f32 %v5184_v19, %v1732_v61  ;;  %v2141_v40 = vsel %vm1576_vm2, %v5426_v54, 0.0  ;;  %v3611_v61 = vld [vmem:[%s3723_s25 + $0x80] sm:$0xff] }
 0x438   : > { %v2877_v46 = vadd.f32 %v3609_v10, %v2813_v31  ;;  %v1717_v16 = vpop.xlane.xlu0 %1716  ;;  %3277 = vmatmul.msk.f32.gmra.mxu3 %vm1576_vm2, %v2243_v63 }
 0x439   : > { %v1935_v47 = vmul.f32 1.442695, %v1820_v37  ;;  %v1815_v18 = vsub.f32 %v5189_v22, %v1717_v16  ;;  %v2059_v52 = vpop.xlane.xlu1 %2058 }
 0x43a   : > { %2941 = vst.msk [vmem:[%s5234_s9 + $0x50] sm:$0xff] %vm269_vm0, %v2877_v46  ;;  %3506 = vrcp.f32 %v2059_v52 }
 0x43b   : > { %v5434_v29 = vpop.eup %3502  ;;  %3508 = vpow2.f32 %v1935_v47  ;;  %v1925_v19 = vmul.f32 1.442695, %v1815_v18 }
 0x43c   : > { %2142 = vadd.xlane.f32.xlu0 %v2141_v40  ;;  %v2096_v27 = vsel %vm1576_vm2, %v5434_v29, 0.0  ;;  %v5441_v60 = vpop.eup %3504  ;;  %v3612_v40 = vld [vmem:[%s3723_s25 + $0x60] sm:$0xff] }
 0x43d   : > { %3510 = vpow2.f32 %v1925_v19  ;;  %2097 = vadd.xlane.f32.xlu2 %v2096_v27  ;;  %v2396_v22 = vpop.f32.mrf.mxu1 }
 0x43e   : > { %v2814_v32 = vmul.f32 %v5223_v7, %v2396_v22  ;;  %v2044_v0 = vpop.xlane.xlu2 %2043 }
 0x43f   : > { %3512 = vrcp.f32 %v2044_v0 }
 0x440   : > { %v3507_v28 = vpop.eup %3506  ;;  %v2878_v26 = vadd.f32 %v3610_v39, %v2814_v32  ;;  %v2452_v2 = vpop.f32.mrf.mxu2  ;;  %3514 = vpow2.f32 %v1957_v30 }
 0x441   : > { %v1720_v59 = vpop.xlane.xlu0 %1719  ;;  %v5444_v53 = vpop.eup %3508  ;;  %v2249_v5 = vmul.f32 %v3507_v28, %v5191_v58  ;;  %v2819_v1 = vmul.f32 %v5223_v7, %v2452_v2  ;;  %v2144_v58 = vsel %vm1576_vm2, %v5441_v60, 0.0 }
 0x442   : > { %v1816_v36 = vsub.f32 %v5208_v62, %v1720_v59  ;;  %v2062_v9 = vpop.xlane.xlu1 %2061  ;;  %2942 = vst.msk [vmem:[%s5234_s9 + $0x58] sm:$0xff] %vm269_vm0, %v2878_v26  ;;  %v2114_v4 = vsel %vm1576_vm2, %v5444_v53, 0.0  ;;  %v3613_v26 = vld [vmem:[%s3723_s25 + $0x68] sm:$0xff] }
 0x443   : > { %3516 = vrcp.f32 %v2062_v9  ;;  %v5453_v31 = vpop.eup %3510  ;;  %v2883_v63 = vadd.f32 %v3611_v61, %v2819_v1  ;;  %3283 = vmatmul.msk.f32.vlgmr.msra.gmra.mxu1 %vm1576_vm2, %v2249_v5  ;;  %2115 = vadd.xlane.f32.xlu1 %v2114_v4  ;;  %v3614_v9 = vld [vmem:[%s3723_s25 + $0x88] sm:$0xff] }
 0x444   : > { %v1927_v37 = vmul.f32 1.442695, %v1816_v36  ;;  %2145 = vadd.xlane.f32.xlu0 %v2144_v58  ;;  %v2099_v62 = vsel %vm1576_vm2, %v5453_v31, 0.0 }
 0x445   : > { %v3513_v10 = vpop.eup %3512  ;;  %2947 = vst.msk [vmem:[%s5234_s9 + $0x80] sm:$0xff] %vm269_vm0, %v2883_v63  ;;  %2100 = vadd.xlane.f32.xlu2 %v2099_v62  ;;  %v2399_v46 = vpop.f32.mrf.mxu1 }
 0x446   : > { %3518 = vpow2.f32 %v1927_v37  ;;  %v2815_v16 = vmul.f32 %v5223_v7, %v2399_v46  ;;  %v1735_v21 = vpop.xlane.xlu2 %1734  ;;  %v2244_v47 = vmul.f32 %v3513_v10, %v5199_v38  ;;  %v5465_v18 = vpop.eup %3514 }
 0x447   : > { %v1821_v52 = vsub.f32 %v5211_v3, %v1735_v21  ;;  %v2147_v38 = vsel %vm1576_vm2, %v5465_v18, 0.0 }
 0x448   : > { %v2879_v27 = vadd.f32 %v3612_v40, %v2815_v16  ;;  %3278 = vmatmul.msk.f32.gmra.mxu3 %vm1576_vm2, %v2244_v47  ;;  %v3615_v47 = vld [vmem:[%s3723_s25 + $0x70] sm:$0xff] }
 0x449   : > { %v3517_v19 = vpop.eup %3516  ;;  %v1937_v30 = vmul.f32 1.442695, %v1821_v52 }
 0x44a   : > { %v2250_v22 = vmul.f32 %v3517_v19, %v5202_v24  ;;  %2943 = vst.msk [vmem:[%s5234_s9 + $0x60] sm:$0xff] %vm269_vm0, %v2879_v27 }
 0x44b   : > { %3520 = vpow2.f32 %v1937_v30 }
 0x44c   : > { %v5473_v32 = vpop.eup %3518  ;;  %3284 = vmatmul.msk.f32.gmra.mxu1 %vm1576_vm2, %v2250_v22  ;;  %2148 = vadd.xlane.f32.xlu0 %v2147_v38 }
 0x44d   : > { %v2102_v3 = vsel %vm1576_vm2, %v5473_v32, 0.0  ;;  %v2402_v0 = vpop.f32.mrf.mxu1 }
 0x44e   : > { %2103 = vadd.xlane.f32.xlu2 %v2102_v3  ;;  %v2816_v24 = vmul.f32 %v5223_v7, %v2402_v0  ;;  %v2047_v28 = vpop.xlane.xlu2 %2046  ;;  %v2065_v39 = vpop.xlane.xlu1 %2064 }
 0x44f   : > { %3522 = vrcp.f32 %v2047_v28  ;;  %v2455_v59 = vpop.f32.mrf.mxu2 }
 0x450   : > { %v2880_v2 = vadd.f32 %v3613_v26, %v2816_v24  ;;  %3524 = vrcp.f32 %v2065_v39  ;;  %v2820_v1 = vmul.f32 %v5223_v7, %v2455_v59  ;;  %v3617_v24 = vld [vmem:[%s3723_s25 + $0x78] sm:$0xff] }
 0x451   : > { %v5482_v5 = vpop.eup %3520 }
 0x452   : > { %2944 = vst.msk [vmem:[%s5234_s9 + $0x68] sm:$0xff] %vm269_vm0, %v2880_v2  ;;  %v2117_v36 = vsel %vm1576_vm2, %v5482_v5, 0.0  ;;  %v2884_v4 = vadd.f32 %v3614_v9, %v2820_v1  ;;  %v3618_v1 = vld [vmem:[%s3723_s25 + $0x98] sm:$0xff] }
 0x453   : > { %2118 = vadd.xlane.f32.xlu1 %v2117_v36 }
 0x454   : > { %2948 = vst.msk [vmem:[%s5234_s9 + $0x88] sm:$0xff] %vm269_vm0, %v2884_v4 }
 0x455   : > { %v3523_v61 = vpop.eup %3522  ;;  %v2405_v63 = vpop.f32.mrf.mxu1 }
 0x456   : > { %v3525_v37 = vpop.eup %3524  ;;  %v2817_v58 = vmul.f32 %v5223_v7, %v2405_v63  ;;  %v1738_v62 = vpop.xlane.xlu2 %1737  ;;  %v2245_v46 = vmul.f32 %v3523_v61, %v5241_v33  ;;  %v3616_v33 = vld [vmem:[%s3723_s25 + $0x90] sm:$0xff] }
 0x457   : > { %v2068_v10 = vpop.xlane.xlu1 %2067  ;;  %v1822_v16 = vsub.f32 %v5237_v49, %v1738_v62  ;;  %v2251_v21 = vmul.f32 %v3525_v37, %v5248_v44  ;;  %v2458_v19 = vpop.f32.mrf.mxu2 }
 0x458   : > { %3526 = vrcp.f32 %v2068_v10  ;;  %v2881_v52 = vadd.f32 %v3615_v47, %v2817_v58  ;;  %3279 = vmatmul.msk.f32.gmra.mxu3 %vm1576_vm2, %v2245_v46  ;;  %v2821_v27 = vmul.f32 %v5223_v7, %v2458_v19 }
 0x459   : > { %v1939_v40 = vmul.f32 1.442695, %v1822_v16  ;;  %3285 = vmatmul.msk.f32.gmra.mxu1 %vm1576_vm2, %v2251_v21 }
 0x45a   : > { %2945 = vst.msk [vmem:[%s5234_s9 + $0x70] sm:$0xff] %vm269_vm0, %v2881_v52  ;;  %v2885_v30 = vadd.f32 %v3616_v33, %v2821_v27  ;;  %v3619_v52 = vld [vmem:[%s3723_s25 + $0xa0] sm:$0xff] }
 0x45b   : > { %3528 = vpow2.f32 %v1939_v40 }
 0x45c   : > { %2949 = vst.msk [vmem:[%s5234_s9 + $0x90] sm:$0xff] %vm269_vm0, %v2885_v30 }
 0x45d   : > { %v2408_v44 = vpop.f32.mrf.mxu1 }
 0x45e   : > { %v3527_v49 = vpop.eup %3526  ;;  %v2818_v22 = vmul.f32 %v5223_v7, %v2408_v44  ;;  %v2050_v38 = vpop.xlane.xlu2 %2049 }
 0x45f   : > { %v2071_v3 = vpop.xlane.xlu1 %2070  ;;  %v2252_v0 = vmul.f32 %v3527_v49, %v5260_v17  ;;  %3530 = vrcp.f32 %v2050_v38 }
 0x460   : > { %v2882_v28 = vadd.f32 %v3617_v24, %v2818_v22  ;;  %v2461_v39 = vpop.f32.mrf.mxu2  ;;  %3532 = vrcp.f32 %v2071_v3 }
 0x461   : > { %v5508_v26 = vpop.eup %3528  ;;  %v2822_v2 = vmul.f32 %v5223_v7, %v2461_v39  ;;  %3286 = vmatmul.msk.f32.gmra.mxu1 %vm1576_vm2, %v2252_v0  ;;  %v3620_v0 = vld [vmem:[%s3723_s25 + $0xa8] sm:$0xff] }
 0x462   : > { %2946 = vst.msk [vmem:[%s5234_s9 + $0x78] sm:$0xff] %vm269_vm0, %v2882_v28  ;;  %v2120_v59 = vsel %vm1576_vm2, %v5508_v26, 0.0 }
 0x463   : > { %v2886_v36 = vadd.f32 %v3618_v1, %v2822_v2  ;;  %2121 = vadd.xlane.f32.xlu1 %v2120_v59 }
 0x465   : > { %v3531_v17 = vpop.eup %3530  ;;  %2950 = vst.msk [vmem:[%s5234_s9 + $0x98] sm:$0xff] %vm269_vm0, %v2886_v36  ;;  %v3621_v36 = vld [vmem:[%s3723_s25 + $0xb0] sm:$0xff] }
 0x466   : > { %v3533_v9 = vpop.eup %3532  ;;  %v1741_v4 = vpop.xlane.xlu2 %1740  ;;  %v2246_v63 = vmul.f32 %v3531_v17, %v5273_v15 }
 0x467   : > { %v2074_v61 = vpop.xlane.xlu1 %2073  ;;  %v1823_v37 = vsub.f32 %v5262_v23, %v1741_v4  ;;  %v2253_v58 = vmul.f32 %v3533_v9, %v5276_v20 }
 0x468   : > { %3534 = vrcp.f32 %v2074_v61  ;;  %3280 = vmatmul.msk.f32.gmra.mxu3 %vm1576_vm2, %v2246_v63 }
 0x469   : > { %v1941_v62 = vmul.f32 1.442695, %v1823_v37  ;;  %3287 = vmatmul.msk.f32.gmra.mxu1 %vm1576_vm2, %v2253_v58 }
 0x46b   : > { %3536 = vpow2.f32 %v1941_v62 }
 0x46e   : > { %v3535_v10 = vpop.eup %3534  ;;  %v2053_v46 = vpop.xlane.xlu2 %2052 }
 0x46f   : > { %v2077_v16 = vpop.xlane.xlu1 %2076  ;;  %v2254_v21 = vmul.f32 %v3535_v10, %v5293_v13  ;;  %3538 = vrcp.f32 %v2053_v46  ;;  %v2464_v15 = vpop.f32.mrf.mxu2 }
 0x470   : > { %3540 = vrcp.f32 %v2077_v16  ;;  %v2823_v20 = vmul.f32 %v5223_v7, %v2464_v15 }
 0x471   : > { %v5525_v23 = vpop.eup %3536  ;;  %3288 = vmatmul.msk.f32.gmra.mxu1 %vm1576_vm2, %v2254_v21 }
 0x472   : > { %v2123_v47 = vsel %vm1576_vm2, %v5525_v23, 0.0  ;;  %v2887_v19 = vadd.f32 %v3619_v52, %v2823_v20 }
 0x473   : > { %2124 = vadd.xlane.f32.xlu1 %v2123_v47 }
 0x474   : > { %2951 = vst.msk [vmem:[%s5234_s9 + $0xa0] sm:$0xff] %vm269_vm0, %v2887_v19 }
 0x475   : > { %v3539_v40 = vpop.eup %3538 }
 0x476   : > { %v3541_v13 = vpop.eup %3540  ;;  %v1744_v27 = vpop.xlane.xlu2 %1743  ;;  %v2247_v30 = vmul.f32 %v3539_v40, %v5307_v11 }
 0x477   : > { %v2080_v33 = vpop.xlane.xlu1 %2079  ;;  %v1824_v49 = vsub.f32 %v5283_v41, %v1744_v27  ;;  %v2255_v44 = vmul.f32 %v3541_v13, %v5310_v8  ;;  %v2467_v22 = vpop.f32.mrf.mxu2 }
 0x478   : > { %3542 = vrcp.f32 %v2080_v33  ;;  %3281 = vmatmul.msk.f32.gmra.mxu3 %vm1576_vm2, %v2247_v30  ;;  %v2824_v3 = vmul.f32 %v5223_v7, %v2467_v22 }
 0x479   : > { %v1943_v38 = vmul.f32 1.442695, %v1824_v49  ;;  %3289 = vmatmul.msk.f32.gmra.mxu1 %vm1576_vm2, %v2255_v44 }
 0x47a   : > { %v2888_v24 = vadd.f32 %v3620_v0, %v2824_v3 }
 0x47b   : > { %3544 = vpow2.f32 %v1943_v38 }
 0x47c   : > { %2952 = vst.msk [vmem:[%s5234_s9 + $0xa8] sm:$0xff] %vm269_vm0, %v2888_v24 }
 0x47e   : > { %v3543_v28 = vpop.eup %3542  ;;  %v2056_v41 = vpop.xlane.xlu2 %2055 }
 0x47f   : > { %v2131_v11 = vpop.xlane.xlu1 %2130  ;;  %v2256_v8 = vmul.f32 %v3543_v28, %v5327_v48  ;;  %3546 = vrcp.f32 %v2056_v41  ;;  %v2470_v39 = vpop.f32.mrf.mxu2  ;;  %v3624_v41 = vld [vmem:[%s3723_s25 + $0xc8] sm:$0xff] }
 0x480   : > { %3548 = vrcp.f32 %v2131_v11  ;;  %v2825_v59 = vmul.f32 %v5223_v7, %v2470_v39 }
 0x481   : > { %v5544_v2 = vpop.eup %3544  ;;  %3290 = vmatmul.msk.f32.gmra.mxu1 %vm1576_vm2, %v2256_v8 }
 0x482   : > { %v2126_v1 = vsel %vm1576_vm2, %v5544_v2, 0.0  ;;  %v2889_v17 = vadd.f32 %v3621_v36, %v2825_v59 }
 0x483   : > { %2127 = vadd.xlane.f32.xlu1 %v2126_v1 }
 0x484   : > { %2953 = vst.msk [vmem:[%s5234_s9 + $0xb0] sm:$0xff] %vm269_vm0, %v2889_v17 }
 0x485   : > { %v3547_v9 = vpop.eup %3546 }
 0x486   : > { %v3549_v4 = vpop.eup %3548  ;;  %v2107_v48 = vpop.xlane.xlu2 %2106  ;;  %v2248_v63 = vmul.f32 %v3547_v9, %v5340_v42  ;;  %v3622_v42 = vld [vmem:[%s3723_s25 + $0xb8] sm:$0xff] }
 0x487   : > { %v1768_v61 = vpop.xlane.xlu1 %1767  ;;  %v2273_v37 = vmul.f32 %v3549_v4, %v5343_v55  ;;  %3550 = vrcp.f32 %v2107_v48  ;;  %v2083_v62 = vpop.xlane.xlu0 %2082 }
 0x488   : > { %v1832_v58 = vsub.f32 %v5358_v25, %v1768_v61  ;;  %v2473_v10 = vpop.f32.mrf.mxu2  ;;  %3552 = vrcp.f32 %v2083_v62  ;;  %3282 = vmatmul.msk.f32.gmra.mxu3 %vm1576_vm2, %v2248_v63  ;;  %v3623_v25 = vld [vmem:[%s3723_s25 + $0xc0] sm:$0xff] }
 0x489   : > { %v2826_v16 = vmul.f32 %v5223_v7, %v2473_v10  ;;  %3307 = vmatmul.msk.f32.vlgmr.msrb.gmra.mxu1 %vm1576_vm2, %v2273_v37 }
 0x48a   : > { %v1959_v46 = vmul.f32 1.442695, %v1832_v58  ;;  %v2517_v21 = vpop.f32.mrf.mxu3 }
 0x48b   : > { %v2890_v55 = vadd.f32 %v3622_v42, %v2826_v16  ;;  %v2827_v15 = vmul.f32 %v5223_v7, %v2517_v21 }
 0x48c   : > { %3554 = vpow2.f32 %v1959_v46 }
 0x48d   : > { %v3551_v20 = vpop.eup %3550  ;;  %2954 = vst.msk [vmem:[%s5234_s9 + $0xb8] sm:$0xff] %vm269_vm0, %v2890_v55  ;;  %v2891_v47 = vadd.f32 %v3623_v25, %v2827_v15 }
 0x48e   : > { %v3553_v52 = vpop.eup %3552  ;;  %v2265_v19 = vmul.f32 %v3551_v20, %v5356_v56  ;;  %v2110_v40 = vpop.xlane.xlu2 %2109  ;;  %v3625_v20 = vld [vmem:[%s3723_s25 + $0xd0] sm:$0xff] }
 0x48f   : > { %v2257_v13 = vmul.f32 %v3553_v52, %v5364_v45  ;;  %2955 = vst.msk [vmem:[%s5234_s9 + $0xc0] sm:$0xff] %vm269_vm0, %v2891_v47  ;;  %3556 = vrcp.f32 %v2110_v40  ;;  %v2086_v27 = vpop.xlane.xlu0 %2085 }
 0x490   : > { %3558 = vrcp.f32 %v2086_v27  ;;  %3299 = vmatmul.msk.f32.vlgmr.msra.gmra.mxu3 %vm1576_vm2, %v2265_v19 }
 0x491   : > { %3291 = vmatmul.msk.f32.vlgmr.msrb.gmra.mxu2 %vm1576_vm2, %v2257_v13 }
 0x492   : > { %v5569_v33 = vpop.eup %3554 }
 0x493   : > { %v2150_v30 = vsel %vm1576_vm2, %v5569_v33, 0.0 }
 0x494   : > { %2151 = vadd.xlane.f32.xlu0 %v2150_v30 }
 0x495   : > { %v3557_v56 = vpop.eup %3556  ;;  %v2113_v49 = vpop.xlane.xlu1 %2112 }
 0x496   : > { %v3559_v44 = vpop.eup %3558  ;;  %3560 = vrcp.f32 %v2113_v49  ;;  %v2266_v45 = vmul.f32 %v3557_v56, %v5374_v14 }
 0x497   : > { %v2134_v22 = vpop.xlane.xlu0 %2133  ;;  %v2258_v38 = vmul.f32 %v3559_v44, %v5378_v34  ;;  %v2089_v3 = vpop.xlane.xlu2 %2088 }
 0x498   : > { %3562 = vrcp.f32 %v2134_v22  ;;  %3300 = vmatmul.msk.f32.gmra.mxu3 %vm1576_vm2, %v2266_v45 }
 0x499   : > { %3564 = vrcp.f32 %v2089_v3  ;;  %3292 = vmatmul.msk.f32.gmra.mxu2 %vm1576_vm2, %v2258_v38  ;;  %v3627_v38 = vld [vmem:[%s3723_s25 + $0x108] sm:$0xff] }
 0x49a   : > { %v2520_v0 = vpop.f32.mrf.mxu3 }
 0x49b   : > { %v2828_v24 = vmul.f32 %v5223_v7, %v2520_v0 }
 0x49c   : > { %v3561_v28 = vpop.eup %3560 }
 0x49d   : > { %v2892_v11 = vadd.f32 %v3624_v41, %v2828_v24  ;;  %v2267_v8 = vmul.f32 %v3561_v28, %v5387_v6 }
 0x49e   : > { %v3563_v14 = vpop.eup %3562 }
 0x49f   : > { %v3565_v39 = vpop.eup %3564  ;;  %2956 = vst.msk [vmem:[%s5234_s9 + $0xc8] sm:$0xff] %vm269_vm0, %v2892_v11  ;;  %v2137_v34 = vpop.xlane.xlu0 %2136  ;;  %v2274_v59 = vmul.f32 %v3563_v14, %v5385_v43 }
 0x4a0   : > { %v2092_v1 = vpop.xlane.xlu2 %2091  ;;  %3566 = vrcp.f32 %v2137_v34  ;;  %3301 = vmatmul.msk.f32.gmra.mxu3 %vm1576_vm2, %v2267_v8  ;;  %v2259_v36 = vmul.f32 %v3565_v39, %v5393_v57  ;;  %v3629_v39 = vld [vmem:[%s3723_s25 + $0x110] sm:$0xff] }
 0x4a1   : > { %3568 = vrcp.f32 %v2092_v1  ;;  %3308 = vmatmul.msk.f32.gmra.mxu1 %vm1576_vm2, %v2274_v59 }
 0x4a2   : > { %3293 = vmatmul.msk.f32.gmra.mxu2 %vm1576_vm2, %v2259_v36  ;;  %v3630_v36 = vld [vmem:[%s3723_s25 + $0xe0] sm:$0xff] }
 0x4a6   : > { %v3567_v17 = vpop.eup %3566 }
 0x4a7   : > { %v3569_v6 = vpop.eup %3568  ;;  %v2140_v9 = vpop.xlane.xlu0 %2139  ;;  %v2275_v4 = vmul.f32 %v3567_v17, %v5399_v50 }
 0x4a8   : > { %v2095_v48 = vpop.xlane.xlu2 %2094  ;;  %3570 = vrcp.f32 %v2140_v9  ;;  %v2260_v43 = vmul.f32 %v3569_v6, %v5403_v51 }
 0x4a9   : > { %3572 = vrcp.f32 %v2095_v48  ;;  %3309 = vmatmul.msk.f32.gmra.mxu1 %vm1576_vm2, %v2275_v4  ;;  %v3631_v48 = vld [vmem:[%s3723_s25 + $0x118] sm:$0xff] }
 0x4aa   : > { %3294 = vmatmul.msk.f32.gmra.mxu2 %vm1576_vm2, %v2260_v43 }
 0x4ae   : > { %v3571_v57 = vpop.eup %3570 }
 0x4af   : > { %v3573_v61 = vpop.eup %3572  ;;  %v2143_v63 = vpop.xlane.xlu0 %2142  ;;  %v2276_v37 = vmul.f32 %v3571_v57, %v5410_v35 }
 0x4b0   : > { %v2098_v58 = vpop.xlane.xlu2 %2097  ;;  %3574 = vrcp.f32 %v2143_v63  ;;  %v2261_v62 = vmul.f32 %v3573_v61, %v5417_v12 }
 0x4b1   : > { %3576 = vrcp.f32 %v2098_v58  ;;  %3310 = vmatmul.msk.f32.gmra.mxu1 %vm1576_vm2, %v2276_v37 }
 0x4b2   : > { %3295 = vmatmul.msk.f32.gmra.mxu2 %vm1576_vm2, %v2261_v62 }
 0x4b6   : > { %v3575_v50 = vpop.eup %3574  ;;  %v2116_v51 = vpop.xlane.xlu1 %2115 }
 0x4b7   : > { %v3577_v10 = vpop.eup %3576  ;;  %3578 = vrcp.f32 %v2116_v51  ;;  %v2146_v46 = vpop.xlane.xlu0 %2145  ;;  %v2277_v16 = vmul.f32 %v3575_v50, %v5426_v54  ;;  %v3633_v51 = vld [vmem:[%s3723_s25 + $0xe8] sm:$0xff] }
 0x4b8   : > { %v2101_v21 = vpop.xlane.xlu2 %2100  ;;  %3580 = vrcp.f32 %v2146_v46  ;;  %v2262_v35 = vmul.f32 %v3577_v10, %v5434_v29 }
 0x4b9   : > { %3582 = vrcp.f32 %v2101_v21  ;;  %3311 = vmatmul.msk.f32.gmra.mxu1 %vm1576_vm2, %v2277_v16 }
 0x4ba   : > { %3296 = vmatmul.msk.f32.gmra.mxu2 %vm1576_vm2, %v2262_v35  ;;  %v3634_v35 = vld [vmem:[%s3723_s25 + $0x128] sm:$0xff] }
 0x4bb   : > { %v2523_v12 = vpop.f32.mrf.mxu3 }
 0x4bc   : > { %v2829_v42 = vmul.f32 %v5223_v7, %v2523_v12 }
 0x4bd   : > { %v3579_v55 = vpop.eup %3578 }
 0x4be   : > { %v3581_v15 = vpop.eup %3580  ;;  %v2893_v25 = vadd.f32 %v3625_v20, %v2829_v42  ;;  %v2268_v54 = vmul.f32 %v3579_v55, %v5444_v53  ;;  %v3626_v53 = vld [vmem:[%s3723_s25 + $0x100] sm:$0xff] }
 0x4bf   : > { %v3583_v47 = vpop.eup %3582  ;;  %v2149_v52 = vpop.xlane.xlu0 %2148  ;;  %v2278_v29 = vmul.f32 %v3581_v15, %v5441_v60 }
 0x4c0   : > { %2957 = vst.msk [vmem:[%s5234_s9 + $0xd0] sm:$0xff] %vm269_vm0, %v2893_v25  ;;  %3584 = vrcp.f32 %v2149_v52  ;;  %v2582_v40 = vpop.f32.mrf.mxu1  ;;  %3302 = vmatmul.msk.f32.gmra.mxu3 %vm1576_vm2, %v2268_v54  ;;  %v2263_v13 = vmul.f32 %v3583_v47, %v5453_v31 }
 0x4c1   : > { %v2104_v19 = vpop.xlane.xlu2 %2103  ;;  %v2835_v27 = vmul.f32 %v5223_v7, %v2582_v40  ;;  %3312 = vmatmul.msk.f32.gmra.mxu1 %vm1576_vm2, %v2278_v29  ;;  %v3636_v29 = vld [vmem:[%s3723_s25 + $0xf0] sm:$0xff] }
 0x4c2   : > { %3586 = vrcp.f32 %v2104_v19  ;;  %3297 = vmatmul.msk.f32.gmra.mxu2 %vm1576_vm2, %v2263_v13 }
 0x4c3   : > { %v2899_v30 = vadd.f32 %v3626_v53, %v2835_v27  ;;  %v3637_v27 = vld [vmem:[%s3723_s25 + $0x138] sm:$0xff] }
 0x4c5   : > { %2963 = vst.msk [vmem:[%s5234_s9 + $0x100] sm:$0xff] %vm269_vm0, %v2899_v30 }
 0x4c6   : > { %v3585_v60 = vpop.eup %3584  ;;  %v2119_v56 = vpop.xlane.xlu1 %2118 }
 0x4c7   : > { %3588 = vrcp.f32 %v2119_v56  ;;  %v2279_v31 = vmul.f32 %v3585_v60, %v5465_v18  ;;  %v3628_v18 = vld [vmem:[%s3723_s25 + $0xd8] sm:$0xff]  ;;  %v3638_v56 = vld [vmem:[%s3723_s25 + $0x1c0] sm:$0xff] }
 0x4c8   : > { %v3587_v49 = vpop.eup %3586 }
 0x4c9   : > { %v2264_v44 = vmul.f32 %v3587_v49, %v5473_v32  ;;  %v2585_v45 = vpop.f32.mrf.mxu1  ;;  %3313 = vmatmul.msk.f32.gmra.mxu1 %vm1576_vm2, %v2279_v31 }
 0x4ca   : > { %v2836_v22 = vmul.f32 %v5223_v7, %v2585_v45 }
 0x4cb   : > { %3298 = vmatmul.msk.f32.gmra.mxu2 %vm1576_vm2, %v2264_v44  ;;  %v2526_v0 = vpop.f32.mrf.mxu3 }
 0x4cc   : > { %v2900_v3 = vadd.f32 %v3627_v38, %v2836_v22  ;;  %v2830_v24 = vmul.f32 %v5223_v7, %v2526_v0  ;;  %v3639_v38 = vld [vmem:[%s3723_s25 + $0xf8] sm:$0xff] }
 0x4cd   : > { %v3589_v28 = vpop.eup %3588 }
 0x4ce   : > { %2964 = vst.msk [vmem:[%s5234_s9 + $0x108] sm:$0xff] %vm269_vm0, %v2900_v3  ;;  %v2894_v32 = vadd.f32 %v3628_v18, %v2830_v24  ;;  %v2269_v41 = vmul.f32 %v3589_v28, %v5482_v5 }
 0x4d0   : > { %2958 = vst.msk [vmem:[%s5234_s9 + $0xd8] sm:$0xff] %vm269_vm0, %v2894_v32  ;;  %3303 = vmatmul.msk.f32.gmra.mxu3 %vm1576_vm2, %v2269_v41  ;;  %v3640_v32 = vld [vmem:[%s3723_s25 + $0x180] sm:$0xff] }
 0x4d6   : > { %v2588_v11 = vpop.f32.mrf.mxu1  ;;  %v2122_v8 = vpop.xlane.xlu1 %2121 }
 0x4d7   : > { %v2837_v14 = vmul.f32 %v5223_v7, %v2588_v11  ;;  %3590 = vrcp.f32 %v2122_v8  ;;  %v3641_v11 = vld [vmem:[%s3723_s25 + $0x140] sm:$0xff] }
 0x4d9   : > { %v2901_v34 = vadd.f32 %v3629_v39, %v2837_v14 }
 0x4db   : > { %2965 = vst.msk [vmem:[%s5234_s9 + $0x110] sm:$0xff] %vm269_vm0, %v2901_v34  ;;  %v2529_v59 = vpop.f32.mrf.mxu3 }
 0x4dc   : > { %v2831_v1 = vmul.f32 %v5223_v7, %v2529_v59  ;;  %v3642_v59 = vld [vmem:[%s3723_s25 + $0x188] sm:$0xff] }
 0x4dd   : > { %v3591_v5 = vpop.eup %3590 }
 0x4de   : > { %v2895_v17 = vadd.f32 %v3630_v36, %v2831_v1  ;;  %v2591_v6 = vpop.f32.mrf.mxu1  ;;  %v2270_v9 = vmul.f32 %v3591_v5, %v5508_v26  ;;  %v3632_v26 = vld [vmem:[%s3723_s25 + $0x120] sm:$0xff]  ;;  %v3643_v36 = vld [vmem:[%s3723_s25 + $0x148] sm:$0xff] }
 0x4df   : > { %v2838_v4 = vmul.f32 %v5223_v7, %v2591_v6 }
 0x4e0   : > { %2959 = vst.msk [vmem:[%s5234_s9 + $0xe0] sm:$0xff] %vm269_vm0, %v2895_v17  ;;  %3304 = vmatmul.msk.f32.gmra.mxu3 %vm1576_vm2, %v2270_v9  ;;  %v3644_v9 = vld [vmem:[%s3723_s25 + $0x1c8] sm:$0xff] }
 0x4e1   : > { %v2902_v43 = vadd.f32 %v3631_v48, %v2838_v4 }
 0x4e3   : > { %2966 = vst.msk [vmem:[%s5234_s9 + $0x118] sm:$0xff] %vm269_vm0, %v2902_v43 }
 0x4e6   : > { %v2594_v57 = vpop.f32.mrf.mxu1  ;;  %v2125_v61 = vpop.xlane.xlu1 %2124 }
 0x4e7   : > { %v2839_v63 = vmul.f32 %v5223_v7, %v2594_v57  ;;  %3592 = vrcp.f32 %v2125_v61  ;;  %v3645_v61 = vld [vmem:[%s3723_s25 + $0x190] sm:$0xff] }
 0x4e9   : > { %v2903_v37 = vadd.f32 %v3632_v26, %v2839_v63 }
 0x4eb   : > { %2967 = vst.msk [vmem:[%s5234_s9 + $0x120] sm:$0xff] %vm269_vm0, %v2903_v37  ;;  %v2532_v58 = vpop.f32.mrf.mxu3 }
 0x4ec   : > { %v2832_v62 = vmul.f32 %v5223_v7, %v2532_v58 }
 0x4ed   : > { %v3593_v50 = vpop.eup %3592 }
 0x4ee   : > { %v2896_v10 = vadd.f32 %v3633_v51, %v2832_v62  ;;  %v2597_v46 = vpop.f32.mrf.mxu1  ;;  %v2271_v16 = vmul.f32 %v3593_v50, %v5525_v23  ;;  %v3635_v23 = vld [vmem:[%s3723_s25 + $0x130] sm:$0xff] }
 0x4ef   : > { %v2840_v21 = vmul.f32 %v5223_v7, %v2597_v46  ;;  %v3646_v62 = vld [vmem:[%s3723_s25 + $0x150] sm:$0xff] }
 0x4f0   : > { %2960 = vst.msk [vmem:[%s5234_s9 + $0xe8] sm:$0xff] %vm269_vm0, %v2896_v10  ;;  %3305 = vmatmul.msk.f32.gmra.mxu3 %vm1576_vm2, %v2271_v16  ;;  %v3647_v51 = vld [vmem:[%s3723_s25 + $0x1d0] sm:$0xff] }
 0x4f1   : > { %v2904_v12 = vadd.f32 %v3634_v35, %v2840_v21 }
 0x4f3   : > { %2968 = vst.msk [vmem:[%s5234_s9 + $0x128] sm:$0xff] %vm269_vm0, %v2904_v12  ;;  %v3648_v12 = vld [vmem:[%s3723_s25 + $0x158] sm:$0xff] }
 0x4f6   : > { %v2600_v42 = vpop.f32.mrf.mxu1  ;;  %v2128_v55 = vpop.xlane.xlu1 %2127 }
 0x4f7   : > { %v2841_v15 = vmul.f32 %v5223_v7, %v2600_v42  ;;  %3594 = vrcp.f32 %v2128_v55  ;;  %v3649_v55 = vld [vmem:[%s3723_s25 + $0x1d8] sm:$0xff] }
 0x4f9   : > { %v2905_v20 = vadd.f32 %v3635_v23, %v2841_v15 }
 0x4fb   : > { %2969 = vst.msk [vmem:[%s5234_s9 + $0x130] sm:$0xff] %vm269_vm0, %v2905_v20  ;;  %v2535_v25 = vpop.f32.mrf.mxu3 }
 0x4fc   : > { %v2833_v54 = vmul.f32 %v5223_v7, %v2535_v25 }
 0x4fd   : > { %v3595_v47 = vpop.eup %3594 }
 0x4fe   : > { %v2272_v52 = vmul.f32 %v3595_v47, %v5544_v2  ;;  %v2897_v19 = vadd.f32 %v3636_v29, %v2833_v54  ;;  %v2603_v40 = vpop.f32.mrf.mxu1  ;;  %v3650_v47 = vld [vmem:[%s3723_s25 + $0x160] sm:$0xff] }
 0x4ff   : > { %v2842_v13 = vmul.f32 %v5223_v7, %v2603_v40  ;;  %v3651_v29 = vld [vmem:[%s3723_s25 + $0x1e0] sm:$0xff] }
 0x500   : > { %2961 = vst.msk [vmem:[%s5234_s9 + $0xf0] sm:$0xff] %vm269_vm0, %v2897_v19  ;;  %3306 = vmatmul.msk.f32.gmra.mxu3 %vm1576_vm2, %v2272_v52 }
 0x501   : > { %v2906_v53 = vadd.f32 %v3637_v27, %v2842_v13 }
 0x503   : > { %2970 = vst.msk [vmem:[%s5234_s9 + $0x138] sm:$0xff] %vm269_vm0, %v2906_v53 }
 0x506   : > { %v2777_v30 = vpop.f32.mrf.mxu1 }
 0x507   : > { %v2152_v60 = vpop.xlane.xlu0 %2151  ;;  %v2859_v2 = vmul.f32 %v5223_v7, %v2777_v30  ;;  %v3652_v30 = vld [vmem:[%s3723_s25 + $0x168] sm:$0xff] }
 0x508   : > { %3596 = vrcp.f32 %v2152_v60 }
 0x509   : > { %v2923_v49 = vadd.f32 %v3638_v56, %v2859_v2  ;;  %v3653_v2 = vld [vmem:[%s3723_s25 + $0x1e8] sm:$0xff] }
 0x50b   : > { %2987 = vst.msk [vmem:[%s5234_s9 + $0x1c0] sm:$0xff] %vm269_vm0, %v2923_v49  ;;  %v2538_v31 = vpop.f32.mrf.mxu3 }
 0x50c   : > { %v2834_v44 = vmul.f32 %v5223_v7, %v2538_v31 }
 0x50e   : > { %v3597_v45 = vpop.eup %3596  ;;  %v2898_v3 = vadd.f32 %v3639_v38, %v2834_v44 }
 0x50f   : > { %v2280_v22 = vmul.f32 %v3597_v45, %v5569_v33  ;;  %v3654_v45 = vld [vmem:[%s3723_s25 + $0x198] sm:$0xff] }
 0x510   : > { %2962 = vst.msk [vmem:[%s5234_s9 + $0xf8] sm:$0xff] %vm269_vm0, %v2898_v3 }
 0x511   : > { %3314 = vmatmul.msk.f32.gmra.mxu1 %vm1576_vm2, %v2280_v22 }
 0x513   : > { %v2712_v0 = vpop.f32.mrf.mxu3 }
 0x514   : > { %v2851_v24 = vmul.f32 %v5223_v7, %v2712_v0  ;;  %v2647_v28 = vpop.f32.mrf.mxu2 }
 0x515   : > { %v2843_v18 = vmul.f32 %v5223_v7, %v2647_v28 }
 0x516   : > { %v2915_v41 = vadd.f32 %v3640_v32, %v2851_v24  ;;  %v3655_v24 = vld [vmem:[%s3723_s25 + $0x170] sm:$0xff] }
 0x517   : > { %v2907_v33 = vadd.f32 %v3641_v11, %v2843_v18  ;;  %v3656_v18 = vld [vmem:[%s3723_s25 + $0x1f0] sm:$0xff] }
 0x518   : > { %2979 = vst.msk [vmem:[%s5234_s9 + $0x180] sm:$0xff] %vm269_vm0, %v2915_v41 }
 0x519   : > { %2971 = vst.msk [vmem:[%s5234_s9 + $0x140] sm:$0xff] %vm269_vm0, %v2907_v33  ;;  %v3657_v33 = vld [vmem:[%s3723_s25 + $0x178] sm:$0xff] }
 0x51b   : > { %v2715_v8 = vpop.f32.mrf.mxu3 }
 0x51c   : > { %v2852_v14 = vmul.f32 %v5223_v7, %v2715_v8  ;;  %v2650_v39 = vpop.f32.mrf.mxu2 }
 0x51d   : > { %v2844_v34 = vmul.f32 %v5223_v7, %v2650_v39 }
 0x51e   : > { %v2916_v1 = vadd.f32 %v3642_v59, %v2852_v14  ;;  %v2780_v5 = vpop.f32.mrf.mxu1 }
 0x51f   : > { %v2908_v17 = vadd.f32 %v3643_v36, %v2844_v34  ;;  %v2860_v6 = vmul.f32 %v5223_v7, %v2780_v5  ;;  %v3658_v34 = vld [vmem:[%s3723_s25 + $0x1a0] sm:$0xff]  ;;  %v3659_v36 = vld [vmem:[%s3723_s25 + $0x1a8] sm:$0xff] }
 0x520   : > { %2980 = vst.msk [vmem:[%s5234_s9 + $0x188] sm:$0xff] %vm269_vm0, %v2916_v1 }
 0x521   : > { %2972 = vst.msk [vmem:[%s5234_s9 + $0x148] sm:$0xff] %vm269_vm0, %v2908_v17  ;;  %v2924_v4 = vadd.f32 %v3644_v9, %v2860_v6 }
 0x523   : > { %2988 = vst.msk [vmem:[%s5234_s9 + $0x1c8] sm:$0xff] %vm269_vm0, %v2924_v4  ;;  %v2718_v48 = vpop.f32.mrf.mxu3  ;;  %v3660_v4 = vld [vmem:[%s3723_s25 + $0x1b0] sm:$0xff] }
 0x524   : > { %v2853_v43 = vmul.f32 %v5223_v7, %v2718_v48 }
 0x525   : > { %v2653_v57 = vpop.f32.mrf.mxu2 }
 0x526   : > { %v2917_v63 = vadd.f32 %v3645_v61, %v2853_v43  ;;  %v2845_v26 = vmul.f32 %v5223_v7, %v2653_v57  ;;  %v2783_v37 = vpop.f32.mrf.mxu1  ;;  %v3661_v61 = vld [vmem:[%s3723_s25 + $0x1b8] sm:$0xff] }
 0x527   : > { %v2861_v58 = vmul.f32 %v5223_v7, %v2783_v37 }
 0x528   : > { %2981 = vst.msk [vmem:[%s5234_s9 + $0x190] sm:$0xff] %vm269_vm0, %v2917_v63  ;;  %v2909_v50 = vadd.f32 %v3646_v62, %v2845_v26 }
 0x529   : > { %v2925_v10 = vadd.f32 %v3647_v51, %v2861_v58  ;;  %v3662_v58 = vld [vmem:[%s3723_s25 + $0x1f8] sm:$0xff] }
 0x52a   : > { %2973 = vst.msk [vmem:[%s5234_s9 + $0x150] sm:$0xff] %vm269_vm0, %v2909_v50 }
 0x52b   : > { %2989 = vst.msk [vmem:[%s5234_s9 + $0x1d0] sm:$0xff] %vm269_vm0, %v2925_v10 }
 0x52d   : > { %v2656_v46 = vpop.f32.mrf.mxu2 }
 0x52e   : > { %v2846_v16 = vmul.f32 %v5223_v7, %v2656_v46  ;;  %v2786_v21 = vpop.f32.mrf.mxu1 }
 0x52f   : > { %v2862_v35 = vmul.f32 %v5223_v7, %v2786_v21 }
 0x530   : > { %v2910_v42 = vadd.f32 %v3648_v12, %v2846_v16 }
 0x531   : > { %v2926_v15 = vadd.f32 %v3649_v55, %v2862_v35 }
 0x532   : > { %2974 = vst.msk [vmem:[%s5234_s9 + $0x158] sm:$0xff] %vm269_vm0, %v2910_v42 }
 0x533   : > { %2990 = vst.msk [vmem:[%s5234_s9 + $0x1d8] sm:$0xff] %vm269_vm0, %v2926_v15 }
 0x535   : > { %v2659_v23 = vpop.f32.mrf.mxu2 }
 0x536   : > { %v2847_v20 = vmul.f32 %v5223_v7, %v2659_v23  ;;  %v2789_v25 = vpop.f32.mrf.mxu1 }
 0x537   : > { %v2863_v54 = vmul.f32 %v5223_v7, %v2789_v25 }
 0x538   : > { %v2911_v52 = vadd.f32 %v3650_v47, %v2847_v20 }
 0x539   : > { %v2927_v19 = vadd.f32 %v3651_v29, %v2863_v54 }
 0x53a   : > { %2975 = vst.msk [vmem:[%s5234_s9 + $0x160] sm:$0xff] %vm269_vm0, %v2911_v52 }
 0x53b   : > { %2991 = vst.msk [vmem:[%s5234_s9 + $0x1e0] sm:$0xff] %vm269_vm0, %v2927_v19 }
 0x53d   : > { %v2662_v40 = vpop.f32.mrf.mxu2 }
 0x53e   : > { %v2848_v13 = vmul.f32 %v5223_v7, %v2662_v40  ;;  %v2792_v27 = vpop.f32.mrf.mxu1 }
 0x53f   : > { %v2864_v53 = vmul.f32 %v5223_v7, %v2792_v27 }
 0x540   : > { %v2912_v60 = vadd.f32 %v3652_v30, %v2848_v13 }
 0x541   : > { %v2928_v56 = vadd.f32 %v3653_v2, %v2864_v53 }
 0x542   : > { %2976 = vst.msk [vmem:[%s5234_s9 + $0x168] sm:$0xff] %vm269_vm0, %v2912_v60 }
 0x543   : > { %2992 = vst.msk [vmem:[%s5234_s9 + $0x1e8] sm:$0xff] %vm269_vm0, %v2928_v56  ;;  %v2721_v49 = vpop.f32.mrf.mxu3 }
 0x544   : > { %v2854_v31 = vmul.f32 %v5223_v7, %v2721_v49 }
 0x545   : > { %v2665_v44 = vpop.f32.mrf.mxu2 }
 0x546   : > { %v2918_v22 = vadd.f32 %v3654_v45, %v2854_v31  ;;  %v2849_v38 = vmul.f32 %v5223_v7, %v2665_v44  ;;  %v2795_v3 = vpop.f32.mrf.mxu1 }
 0x547   : > { %v2865_v0 = vmul.f32 %v5223_v7, %v2795_v3 }
 0x548   : > { %2982 = vst.msk [vmem:[%s5234_s9 + $0x198] sm:$0xff] %vm269_vm0, %v2918_v22  ;;  %v2913_v28 = vadd.f32 %v3655_v24, %v2849_v38 }
 0x549   : > { %v2929_v32 = vadd.f32 %v3656_v18, %v2865_v0 }
 0x54a   : > { %2977 = vst.msk [vmem:[%s5234_s9 + $0x170] sm:$0xff] %vm269_vm0, %v2913_v28 }
 0x54b   : > { %2993 = vst.msk [vmem:[%s5234_s9 + $0x1f0] sm:$0xff] %vm269_vm0, %v2929_v32 }
 0x54e   : > { %v2668_v41 = vpop.f32.mrf.mxu2 }
 0x54f   : > { %v2850_v11 = vmul.f32 %v5223_v7, %v2668_v41 }
 0x551   : > { %v2914_v8 = vadd.f32 %v3657_v33, %v2850_v11 }
 0x553   : > { %2978 = vst.msk [vmem:[%s5234_s9 + $0x178] sm:$0xff] %vm269_vm0, %v2914_v8  ;;  %v2724_v14 = vpop.f32.mrf.mxu3 }
 0x554   : > { %v2855_v39 = vmul.f32 %v5223_v7, %v2724_v14 }
 0x556   : > { %v2919_v59 = vadd.f32 %v3658_v34, %v2855_v39 }
 0x558   : > { %2983 = vst.msk [vmem:[%s5234_s9 + $0x1a0] sm:$0xff] %vm269_vm0, %v2919_v59 }
 0x563   : > { %v2727_v1 = vpop.f32.mrf.mxu3 }
 0x564   : > { %v2856_v5 = vmul.f32 %v5223_v7, %v2727_v1 }
 0x566   : > { %v2920_v17 = vadd.f32 %v3659_v36, %v2856_v5 }
 0x568   : > { %2984 = vst.msk [vmem:[%s5234_s9 + $0x1a8] sm:$0xff] %vm269_vm0, %v2920_v17 }
 0x573   : > { %v2730_v6 = vpop.f32.mrf.mxu3 }
 0x574   : > { %v2857_v9 = vmul.f32 %v5223_v7, %v2730_v6 }
 0x576   : > { %v2921_v48 = vadd.f32 %v3660_v4, %v2857_v9 }
 0x578   : > { %2985 = vst.msk [vmem:[%s5234_s9 + $0x1b0] sm:$0xff] %vm269_vm0, %v2921_v48 }
 0x583   : > { %v2733_v43 = vpop.f32.mrf.mxu3 }
 0x584   : > { %v2858_v57 = vmul.f32 %v5223_v7, %v2733_v43 }
 0x586   : > { %v2922_v63 = vadd.f32 %v3661_v61, %v2858_v57 }
 0x588   : > { %2986 = vst.msk [vmem:[%s5234_s9 + $0x1b8] sm:$0xff] %vm269_vm0, %v2922_v63 }
 0x58e   : > { %v2798_v26 = vpop.f32.mrf.mxu1 }
 0x58f   : > { %v2866_v37 = vmul.f32 %v5223_v7, %v2798_v26 }
 0x591   : > { %v2930_v62 = vadd.f32 %v3662_v58, %v2866_v37 }
 0x593   : > { %2994 = vst.msk [vmem:[%s5234_s9 + $0x1f8] sm:$0xff] %vm269_vm0, %v2930_v62 }
 0x594 PF: > { %s15_s17 = sadd.s32 1, %s3669_s17  }
 0x595   : > { %p12_p4 = scmp.ge.s32.totalorder %s15_s17, 4  }
 0x597   :  { %14 = sbr.rel (!%p12_p4) target bundleno = 2 (0x2), region = 66 }

</bundles_post_ra>
